<compile_context>
chip_gen: v5e
topology: v5e:2x2
jax: 0.10.0
libtpu: 0.0.40
codegen_flags: <defaults>
</compile_context>

<pallas_src>
import functools

import jax
import jax.numpy as jnp
from jax.experimental import pallas as pl
from jax.experimental.pallas import tpu as pltpu

N_EMB = 384          # nEmb in the torch module (hard-coded there)
HEAD_SIZE = 64       # headSiz passed to Head(...)
BLOCK_SIZE = 256     # blockSiz (tril buffer size); only [:T, :T] of it is ever used


def head_kernel(x_ref, w_ref, o_ref, *, head_size, scale):
    # x_ref block: (B_blk, T, C) bf16, w_ref: (C, 3H) bf16 (k | q | v fused).
    B_blk, T, C = x_ref.shape
    H = head_size

    # Fused QKV projection: one (B_blk*T, C) @ (C, 3H) bf16 matmul, f32 accumulate.
    x2d = x_ref[...].reshape(B_blk * T, C)                       # major-dim reshape (free)
    qkv = jnp.dot(x2d, w_ref[...],
                  preferred_element_type=jnp.float32)            # (B_blk*T, 3H) f32
    qkv = qkv.reshape(B_blk, T, 3 * H)

    k = qkv[:, :, 0 * H:1 * H]                                   # (B_blk, T, H) f32
    # Scale q (T*H elems) instead of the (T*T) score matrix; `scale` is a Python const.
    q = qkv[:, :, 1 * H:2 * H] * scale
    v = qkv[:, :, 2 * H:3 * H]

    # Attention scores: contraction over H (rhs-transposed batched dot on the MXU).
    s = jnp.einsum('bth,bsh->bts',
                   q.astype(jnp.bfloat16), k.astype(jnp.bfloat16),
                   preferred_element_type=jnp.float32)           # (B_blk, T, T) f32

    # Causal mask == tril[:T, :T] (mask future positions with -inf).
    row = jax.lax.broadcasted_iota(jnp.int32, (T, T), 0)
    col = jax.lax.broadcasted_iota(jnp.int32, (T, T), 1)
    s = jnp.where(col <= row, s, -jnp.inf)

    # Numerically-stable softmax over the last axis (all f32 on VPU/EUP).
    s = s - jnp.max(s, axis=-1, keepdims=True)
    e = jnp.exp(s)
    p = e * pl.reciprocal(jnp.sum(e, axis=-1, keepdims=True), approx=True)

    # TODO(synk): nn.Dropout(0.2) omitted — kernel implements eval-mode (identity) behavior.

    out = jnp.einsum('bts,bsh->bth',
                     p.astype(jnp.bfloat16), v.astype(jnp.bfloat16),
                     preferred_element_type=jnp.float32)         # (B_blk, T, H) f32
    o_ref[...] = out.astype(o_ref.dtype)


def _pick_batch_block(B, max_b_blk=8):
    """Largest divisor of B that is <= max_b_blk while keeping >=2 grid steps (v7x)."""
    cap = max(1, min(max_b_blk, B // 2 if B >= 2 else 1))
    return max(d for d in range(1, cap + 1) if B % d == 0)


def head_forward(x, wk, wq, wv, *, b_blk=None):
    """x: (B, T, C) float32; wk/wq/wv: (C, H). Returns (B, T, H) float32."""
    B, T, C = x.shape
    H = wk.shape[1]
    assert wq.shape == (C, H) and wv.shape == (C, H)
    assert T <= BLOCK_SIZE, "sequence length exceeds the module's tril buffer"
    assert T % 8 == 0 and C % 128 == 0, "block shape must satisfy (8, 128) tiling"

    if b_blk is None:
        b_blk = _pick_batch_block(B)
    assert B % b_blk == 0

    scale = float(C) ** -0.5   # torch code scales by C**-0.5 (embedding dim), reproduced here.

    # Fuse weights once in the wrapper; bf16 inputs halve DMA / VMEM, f32 accumulate on MXU.
    w_qkv = jnp.concatenate([wk, wq, wv], axis=1).astype(jnp.bfloat16)   # (C, 3H)
    x_bf = x.astype(jnp.bfloat16)

    kernel = functools.partial(head_kernel, head_size=H, scale=scale)

    return pl.pallas_call(
        kernel,
        out_shape=jax.ShapeDtypeStruct((B, T, H), jnp.float32),
        grid=(B // b_blk,),
        in_specs=[
            pl.BlockSpec((b_blk, T, C), lambda b: (b, 0, 0)),
            pl.BlockSpec((C, 3 * H), lambda b: (0, 0)),
        ],
        out_specs=pl.BlockSpec((b_blk, T, H), lambda b: (b, 0, 0)),
        compiler_params=pltpu.CompilerParams(dimension_semantics=("parallel",)),
    )(x_bf, w_qkv)


def reference_head(x, wk, wq, wv):
    """Pure-JAX f32 reference matching the torch forward (eval mode)."""
    B, T, C = x.shape
    k = x @ wk
    q = x @ wq
    v = x @ wv
    w = (q @ jnp.swapaxes(k, -2, -1)) * (C ** -0.5)
    mask = jnp.tril(jnp.ones((T, T), dtype=bool))
    w = jnp.where(mask, w, -jnp.inf)
    w = jax.nn.softmax(w, axis=-1)
    return w @ v


if __name__ == "__main__":
    key = jax.random.PRNGKey(0)
    kx, kk, kq, kv = jax.random.split(key, 4)

    B, T, C, H = 8, 128, N_EMB, HEAD_SIZE   # T <= BLOCK_SIZE; B gives a 2-step parallel grid

    x = jax.random.normal(kx, (B, T, C), dtype=jnp.float32)

    # Deterministic init matching nn.Linear(bias=False): U(-1/sqrt(in), 1/sqrt(in)),
    # stored transposed as (in_features, out_features).
    bound = 1.0 / (C ** 0.5)
    wk = jax.random.uniform(kk, (C, H), jnp.float32, -bound, bound)
    wq = jax.random.uniform(kq, (C, H), jnp.float32, -bound, bound)
    wv = jax.random.uniform(kv, (C, H), jnp.float32, -bound, bound)

    out = head_forward(x, wk, wq, wv)
    out = jax.block_until_ready(out)

    ref = reference_head(x, wk, wq, wv)
    assert out.shape == (B, T, H)
    # bf16 MXU inputs with f32 accumulation: tolerance relaxed accordingly.
    assert jnp.allclose(out, ref, atol=2e-2, rtol=2e-2), "mismatch vs reference"

    print("KERNEL_OK")
</pallas_src>

<mosaic_0001>
module attributes {stable_mosaic.version = 11 : i64} {
  func.func @head_kernel(%arg0: i32, %arg1: memref<4x128x384xbf16, #tpu.memory_space<vmem>>, %arg2: memref<384x192xbf16, #tpu.memory_space<vmem>>, %arg3: memref<4x128x64xf32, #tpu.memory_space<vmem>>) attributes {dimension_semantics = [#tpu.dimension_semantics<parallel>], iteration_bounds = array<i64: 2>, scalar_prefetch = 0 : i64, scratch_operands = 0 : i64, tpu.core_type = #tpu.core_type<tc>, window_params = [{transform_indices = @transform_0, window_bounds = array<i64: 4, 128, 384>}, {pipeline_mode = #tpu.pipeline_mode<synchronous>, transform_indices = @transform_1, window_bounds = array<i64: 384, 192>}, {transform_indices = @transform_2, window_bounds = array<i64: 4, 128, 64>}]} {
    %c0 = arith.constant 0 : index
    %c0_0 = arith.constant 0 : index
    %c0_1 = arith.constant 0 : index
    %0 = vector.load %arg1[%c0, %c0_0, %c0_1] : memref<4x128x384xbf16, #tpu.memory_space<vmem>>, vector<4x128x384xbf16>
    %1 = vector.shape_cast %0 : vector<4x128x384xbf16> to vector<512x384xbf16>
    %c0_2 = arith.constant 0 : index
    %c0_3 = arith.constant 0 : index
    %2 = vector.load %arg2[%c0_2, %c0_3] : memref<384x192xbf16, #tpu.memory_space<vmem>>, vector<384x192xbf16>
    %cst = arith.constant dense<0.000000e+00> : vector<512x192xf32>
    %3 = tpu.matmul %1, %2, %cst {dimension_numbers = #tpu.dot_dimension_numbers<[1], [0], [0], [1], [0, 0, 1, 1], [], []>} : vector<512x384xbf16>, vector<384x192xbf16>, vector<512x192xf32> -> vector<512x192xf32>
    %4 = vector.shape_cast %3 : vector<512x192xf32> to vector<4x128x192xf32>
    %5 = vector.extract_strided_slice %4 {offsets = [0, 0, 0], sizes = [4, 128, 64], strides = [1, 1, 1]} : vector<4x128x192xf32> to vector<4x128x64xf32>
    %6 = vector.extract_strided_slice %4 {offsets = [0, 0, 64], sizes = [4, 128, 64], strides = [1, 1, 1]} : vector<4x128x192xf32> to vector<4x128x64xf32>
    %cst_4 = arith.constant 0.0510310382 : f32
    %7 = vector.broadcast %cst_4 : f32 to vector<4x128x64xf32>
    %8 = arith.mulf %6, %7 : vector<4x128x64xf32>
    %9 = vector.extract_strided_slice %4 {offsets = [0, 0, 128], sizes = [4, 128, 64], strides = [1, 1, 1]} : vector<4x128x192xf32> to vector<4x128x64xf32>
    %10 = arith.truncf %8 : vector<4x128x64xf32> to vector<4x128x64xbf16>
    %11 = arith.truncf %5 : vector<4x128x64xf32> to vector<4x128x64xbf16>
    "tpu.trace_start"() <{level = 10 : i32, message = "bth,bsh->bts"}> : () -> ()
    %cst_5 = arith.constant dense<0.000000e+00> : vector<4x128x128xf32>
    %12 = tpu.matmul %10, %11, %cst_5 {dimension_numbers = #tpu.dot_dimension_numbers<[2], [2], [1], [1], [0, 0, 0, 1, 1, 1], [0], [0]>} : vector<4x128x64xbf16>, vector<4x128x64xbf16>, vector<4x128x128xf32> -> vector<4x128x128xf32>
    "tpu.trace_stop"() : () -> ()
    %13 = tpu.iota {dimensions = array<i32: 0>} : vector<128x128xi32>
    %14 = tpu.iota {dimensions = array<i32: 1>} : vector<128x128xi32>
    %15 = arith.cmpi sle, %14, %13 : vector<128x128xi32>
    %cst_6 = arith.constant 0xFF800000 : f32
    %16 = vector.shape_cast %15 : vector<128x128xi1> to vector<1x128x128xi1>
    %17 = vector.broadcast %16 : vector<1x128x128xi1> to vector<4x128x128xi1>
    %18 = vector.broadcast %cst_6 : f32 to vector<4x128x128xf32>
    %19 = arith.select %17, %12, %18 : vector<4x128x128xi1>, vector<4x128x128xf32>
    %cst_7 = arith.constant dense<0xFF800000> : vector<4x128xf32>
    %20 = vector.multi_reduction <maximumf>, %19, %cst_7 [2] : vector<4x128x128xf32> to vector<4x128xf32>
    %21 = vector.shape_cast %20 : vector<4x128xf32> to vector<4x128x1xf32>
    %22 = vector.broadcast %21 : vector<4x128x1xf32> to vector<4x128x128xf32>
    %23 = arith.subf %19, %22 : vector<4x128x128xf32>
    %24 = math.exp %23 : vector<4x128x128xf32>
    %cst_8 = arith.constant dense<0.000000e+00> : vector<4x128xf32>
    %25 = vector.multi_reduction <add>, %24, %cst_8 [2] : vector<4x128x128xf32> to vector<4x128xf32>
    %26 = vector.shape_cast %25 : vector<4x128xf32> to vector<4x128x1xf32>
    %27 = tpu.reciprocal %26 {approx = true} : vector<4x128x1xf32> -> vector<4x128x1xf32>
    %28 = vector.broadcast %27 : vector<4x128x1xf32> to vector<4x128x128xf32>
    %29 = arith.mulf %24, %28 : vector<4x128x128xf32>
    %30 = arith.truncf %29 : vector<4x128x128xf32> to vector<4x128x128xbf16>
    %31 = arith.truncf %9 : vector<4x128x64xf32> to vector<4x128x64xbf16>
    "tpu.trace_start"() <{level = 10 : i32, message = "bts,bsh->bth"}> : () -> ()
    %cst_9 = arith.constant dense<0.000000e+00> : vector<4x128x64xf32>
    %32 = tpu.matmul %30, %31, %cst_9 {dimension_numbers = #tpu.dot_dimension_numbers<[2], [1], [1], [2], [0, 0, 0, 1, 1, 2], [0], [0]>} : vector<4x128x128xbf16>, vector<4x128x64xbf16>, vector<4x128x64xf32> -> vector<4x128x64xf32>
    "tpu.trace_stop"() : () -> ()
    %c0_10 = arith.constant 0 : index
    %c0_11 = arith.constant 0 : index
    %c0_12 = arith.constant 0 : index
    %33 = vector.load %arg3[%c0_10, %c0_11, %c0_12] : memref<4x128x64xf32, #tpu.memory_space<vmem>>, vector<4x128x64xf32>
    tpu.vector_store %arg3[%c0_10, %c0_11, %c0_12], %32 {strides = array<i32>} : memref<4x128x64xf32, #tpu.memory_space<vmem>>, vector<4x128x64xf32>,
    return
  }
  func.func @transform_0(%arg0: i32) -> (i32, i32, i32) {
    %c0_i32 = arith.constant 0 : i32
    %c0_i32_0 = arith.constant 0 : i32
    %c0_i32_1 = arith.constant 0 : i32
    return %arg0, %c0_i32, %c0_i32_0 : i32, i32, i32
  }
  func.func @transform_1(%arg0: i32) -> (i32, i32) {
    %c0_i32 = arith.constant 0 : i32
    %c0_i32_0 = arith.constant 0 : i32
    %c0_i32_1 = arith.constant 0 : i32
    return %c0_i32, %c0_i32_0 : i32, i32
  }
  func.func @transform_2(%arg0: i32) -> (i32, i32, i32) {
    %c0_i32 = arith.constant 0 : i32
    %c0_i32_0 = arith.constant 0 : i32
    %c0_i32_1 = arith.constant 0 : i32
    return %arg0, %c0_i32, %c0_i32_0 : i32, i32, i32
  }
}

</mosaic_0001>

<bundles_post_ra>
// kernel: tpu_custom_call.1
= control target key start
LH: loop header
LB: loop body
LE: loop exit
PB: predicated region body
PF: predicated region fallthrough
CT: control target
= control target key end

     0   :  { %7 = vsyncpa [#allocation3], 0  ;;  %s8485_s0 = inlined_call_operand.hbm [shape: bf16[8,128,384], index: 0, kind: input, shape index: {}]   ;;  %s8486_s1 = inlined_call_operand.vmem [shape: bf16[384,192], index: 1, kind: input, shape index: {}]   ;;  %s8487_s2 = inlined_call_operand.vmem [shape: f32[8,128,64], index: 2, kind: output, shape index: {}]  }
   0x1   :  { %9 = vsyncpa [#allocation3 + $0x1], 0  ;;  %s5777_s9 = smov 0   ;;  %s5779_s10 = smov 0  }
   0x2   :  { %s5781_s11 = smov 0   ;;  %s5783_s12 = smov 0  }
   0x3 LB: > { %s4626_s13 = sadd.s32 4294967295, %s5757_s12   ;;  %s5797_s14 = sadd.s32 1, %s5757_s12   ;;  %s5757_s12 = sphi %s5783_s12, %s9022_s12   ;;  %s5753_s11 = sphi %s5781_s11, %s9021_s11   ;;  %s5749_s10 = sphi %s5779_s10, %s9020_s10   ;;  %s5745_s9 = sphi %s5777_s9, %s9019_s9  }
   0x4   : > { %s19_s15 = ssub.s32 %s5757_s12, %s5797_s14  ;;  %s22_s16 = sadd.s32 1, %s5753_s11 }
   0x5   : > { %p20_p0 = scmp.eq.s32.totalorder %s19_s15, 0  ;;  %p29_p1 = scmp.ne.s32.totalorder %s5753_s11, %s5749_s10 }
   0x6   : > { %p30_p2 = scmp.eq.s32.totalorder %s5757_s12, 0  ;;  %p35_p3 = scmp.ne.s32.totalorder %s5749_s10, %s5745_s9 }
   0x7   : > { %s5807_s17 = scalar_select %p20_p0, %s5753_s11, %s22_s16  }
   0x8   : > { %p31_p4 = por %p30_p2, %p29_p1  ;;  %p36_p5 = scmp.eq.s32.totalorder %s4626_s13, 0 }
   0x9   : > { %p5401_p6 = scmp.lt.s32.totalorder %s5757_s12, 2  ;;  %s109_s19 = sand.u32 1, %s5753_s11  }
   0xa   : > { %p5812_p7 = por %p36_p5, %p35_p3  ;;  %s5392_s20 = smul.u32 768, %s109_s19 }
   0xb   : > { %s5393_s21 = smul.u32 768, %s5757_s12  ;;  %p5818_p8 = pnand %p5401_p6, %p31_p4 }
   0xc   : > { %s113_s26 = scalar_lea.vmem [#allocation2], %s5392_s20  ;;  %p4633_p9 = scmp.ge.s32.totalorder %s5757_s12, 1 }
   0xd   : > { %s119_s25 = scalar_lea.hbm %s8485_s0, %s5393_s21  ;;  %s122_s27 = sshll.u32 %s113_s26, 4  ;;  %s123_s27 = int_to_ptr.vmem [resolvable:$true] %s122_s27 }
   0xe   : > { %s120_s28 = sshll.u32 %s119_s25, 4  ;;  %s110_s29 = scalar_lea.sflag [#allocation3], %s109_s19  ;;  %s121_s28 = int_to_ptr.hbm [resolvable:$true] %s120_s28 }
   0xf   : > { %s5693_s30 = sshra.s32 %s121_s28, 4  ;;  %p5697_p11 = pneg %p5818_p8  ;;  %s5694_s30 = int_to_ptr.hbm [resolvable:$true] %s5693_s30 }
  0x10   : > { %s5695_s3 = scalar_lea.hbm %s5694_s30, 768  ;;  %s5700_s6 = scalar_lea.hbm %s8485_s0, 1536 }
  0x11   : > { %p5696_p10 = scmp.ne.s32.totalorder %s5694_s30, %s5695_s3  ;;  %p5701_p0 = scmp.lt.s32.totalorder %s5694_s30, %s8485_s0 }
  0x12   : > { %p5702_p1 = scmp.lt.s32.totalorder %s5700_s6, %s5695_s3 }
  0x13   : > { %p5698_p12 = pnand %p5697_p11, %p5696_p10 }
  0x14   : > { %p5703_p2 = por %p5702_p1, %p5701_p0 }
  0x15   : > { %p5699_p13 = pneg %p5698_p12 }
  0x17   : > { %p5704_p3 = pnand %p5703_p2, %p5699_p13 }
  0x19   : > { %5707 = shalt.err (!%p5704_p3)
}
  0x1a   : > { %s5759_s9 = smov 192   ;;  %s5760_s15 = smov 12  }
  0x1b   : > { %5400 = dma.hbm_to_vmem [thread:$0]  (!%p5818_p8), %s121_s28, 12288, %s123_s27, %s110_s29, %s5759_s9, %s5759_s9, %s5760_s15  }
  0x1c   : > { %p130_p4 = scmp.lt.s32.totalorder %s5757_s12, 3 }
  0x1e   : > { %p131_p5 = pnand %p4633_p9, %p130_p4 }
  0x20   : > { %134 = sbr.rel (%p131_p5) target bundleno = 1556 (0x614), region = 28 }
  0x25   : > { %s136_s16 = sand.u32 1, %s5749_s10  }
  0x26   : > { %s5394_s19 = smul.u32 768, %s136_s16  ;;  %s137_s20 = scalar_lea.sflag [#allocation3], %s136_s16 }
  0x28   : > { %s5840_s21 = scalar_lea.vmem [#allocation2], %s5394_s19 }
  0x29   : > { %5740 = dma.done.wait (%p5812_p7), %s137_s20, 12288  }
  0x2a   : > { %5742 = vsyncadd (%p5812_p7), %s137_s20, 4294955008  ;;  %v5079_v0 = vld [vmem:[%s8486_s1 + $0x70] sm:$0xf]  ;;  %v5359_v1 = vld [vmem:[%s8486_s1 + $0x74] sm:$0xf0]  ;;  %s5761_s22 = smov 64  }
  0x2b   : > { %v5143_v2 = vld [vmem:[%s8486_s1 + $0xf0] sm:$0xf]  ;;  %v5080_v3 = vor.u32 %v5359_v1, %v5079_v0  ;;  %v5375_v4 = vld [vmem:[%s8486_s1 + $0xf4] sm:$0xf0]  ;;  %v5358_v9 = vld [vmem:[%s8486_s1 + $0x74] sm:$0xf] }
  0x2c   : > { %v5207_v5 = vld [vmem:[%s8486_s1 + $0x170] sm:$0xf]  ;;  %v5391_v6 = vld [vmem:[%s8486_s1 + $0x174] sm:$0xf0]  ;;  %v5144_v7 = vor.u32 %v5375_v4, %v5143_v2  ;;  %v5081_v10 = vld [vmem:[%s8486_s1 + $0x78] sm:$0xf0] }
  0x2d   : > { %v5208_v8 = vor.u32 %v5391_v6, %v5207_v5  ;;  %v5071_v11 = vld [vmem:[%s8486_s1 + $0x60] sm:$0xf]  ;;  %1099 = vmatpush.bf16.msra.mxu0 %v5080_v3  ;;  %v5084_v12 = vor.u32 %v5358_v9, %v5081_v10  ;;  %v5357_v13 = vld [vmem:[%s8486_s1 + $0x64] sm:$0xf0]  ;;  %v5356_v20 = vld [vmem:[%s8486_s1 + $0x64] sm:$0xf] }
  0x2e   : > { %v5135_v14 = vld [vmem:[%s8486_s1 + $0xe0] sm:$0xf]  ;;  %v5373_v15 = vld [vmem:[%s8486_s1 + $0xe4] sm:$0xf0]  ;;  %1268 = vmatpush.bf16.msra.mxu1 %v5144_v7  ;;  %v5072_v16 = vor.u32 %v5357_v13, %v5071_v11  ;;  %v5073_v22 = vld [vmem:[%s8486_s1 + $0x68] sm:$0xf0] }
  0x2f   : > { %1437 = vmatpush.bf16.msra.mxu2 %v5208_v8  ;;  %v5136_v17 = vor.u32 %v5373_v15, %v5135_v14  ;;  %v5199_v18 = vld [vmem:[%s8486_s1 + $0x160] sm:$0xf]  ;;  %v5389_v19 = vld [vmem:[%s8486_s1 + $0x164] sm:$0xf0]  ;;  %1606 = vmatpush.bf16.msra.mxu3 %v5084_v12  ;;  %v5063_v23 = vld [vmem:[%s8486_s1 + $0x50] sm:$0xf]  ;;  %v5076_v25 = vor.u32 %v5356_v20, %v5073_v22 }
  0x30   : > { %v5200_v21 = vor.u32 %v5389_v19, %v5199_v18  ;;  %v5355_v24 = vld [vmem:[%s8486_s1 + $0x54] sm:$0xf0]  ;;  %v5127_v26 = vld [vmem:[%s8486_s1 + $0xd0] sm:$0xf]  ;;  %v5354_v31 = vld [vmem:[%s8486_s1 + $0x54] sm:$0xf] }
  0x31   : > { %v5371_v27 = vld [vmem:[%s8486_s1 + $0xd4] sm:$0xf0]  ;;  %v5191_v28 = vld [vmem:[%s8486_s1 + $0x150] sm:$0xf]  ;;  %1100 = vmatpush.bf16.msra.mxu0 %v5072_v16  ;;  %v5064_v29 = vor.u32 %v5355_v24, %v5063_v23  ;;  %v5065_v32 = vld [vmem:[%s8486_s1 + $0x58] sm:$0xf0] }
  0x32   : > { %v5387_v30 = vld [vmem:[%s8486_s1 + $0x154] sm:$0xf0]  ;;  %1269 = vmatpush.bf16.msra.mxu1 %v5136_v17  ;;  %v5128_v33 = vor.u32 %v5371_v27, %v5127_v26  ;;  %v5055_v35 = vld [vmem:[%s8486_s1 + $0x40] sm:$0xf]  ;;  %v5353_v36 = vld [vmem:[%s8486_s1 + $0x44] sm:$0xf0]  ;;  %v5068_v38 = vor.u32 %v5354_v31, %v5065_v32 }
  0x33   : > { %1438 = vmatpush.bf16.msra.mxu2 %v5200_v21  ;;  %v5192_v34 = vor.u32 %v5387_v30, %v5191_v28  ;;  %v5119_v37 = vld [vmem:[%s8486_s1 + $0xc0] sm:$0xf]  ;;  %1607 = vmatpush.bf16.msra.mxu3 %v5076_v25  ;;  %v5369_v39 = vld [vmem:[%s8486_s1 + $0xc4] sm:$0xf0]  ;;  %v5352_v42 = vld [vmem:[%s8486_s1 + $0x44] sm:$0xf]  ;;  %v5056_v44 = vor.u32 %v5353_v36, %v5055_v35 }
  0x34   : > { %v5183_v40 = vld [vmem:[%s8486_s1 + $0x140] sm:$0xf]  ;;  %v5385_v41 = vld [vmem:[%s8486_s1 + $0x144] sm:$0xf0]  ;;  %v5057_v43 = vld [vmem:[%s8486_s1 + $0x48] sm:$0xf0]  ;;  %v5120_v45 = vor.u32 %v5369_v39, %v5119_v37 }
  0x35   : > { %1101 = vmatpush.bf16.msra.mxu0 %v5064_v29  ;;  %v5184_v46 = vor.u32 %v5385_v41, %v5183_v40  ;;  %v5047_v47 = vld [vmem:[%s8486_s1 + $0x30] sm:$0xf]  ;;  %v5351_v48 = vld [vmem:[%s8486_s1 + $0x34] sm:$0xf0]  ;;  %v5060_v50 = vor.u32 %v5352_v42, %v5057_v43  ;;  %v5350_v54 = vld [vmem:[%s8486_s1 + $0x34] sm:$0xf] }
  0x36   : > { %1270 = vmatpush.bf16.msra.mxu1 %v5128_v33  ;;  %v5111_v49 = vld [vmem:[%s8486_s1 + $0xb0] sm:$0xf]  ;;  %v5367_v51 = vld [vmem:[%s8486_s1 + $0xb4] sm:$0xf0]  ;;  %v5049_v55 = vld [vmem:[%s8486_s1 + $0x38] sm:$0xf0]  ;;  %v5048_v56 = vor.u32 %v5351_v48, %v5047_v47 }
  0x37   : > { %1439 = vmatpush.bf16.msra.mxu2 %v5192_v34  ;;  %1608 = vmatpush.bf16.msra.mxu3 %v5068_v38  ;;  %v5175_v52 = vld [vmem:[%s8486_s1 + $0x130] sm:$0xf]  ;;  %v5383_v53 = vld [vmem:[%s8486_s1 + $0x134] sm:$0xf0]  ;;  %v5112_v57 = vor.u32 %v5367_v51, %v5111_v49  ;;  %v5039_v59 = vld [vmem:[%s8486_s1 + $0x20] sm:$0xf]  ;;  %v5052_v62 = vor.u32 %v5350_v54, %v5049_v55 }
  0x38   : > { %v5176_v58 = vor.u32 %v5383_v53, %v5175_v52  ;;  %v5349_v60 = vld [vmem:[%s8486_s1 + $0x24] sm:$0xf0]  ;;  %v5103_v61 = vld [vmem:[%s8486_s1 + $0xa0] sm:$0xf]  ;;  %v5348_v2 = vld [vmem:[%s8486_s1 + $0x24] sm:$0xf] }
  0x39   : > { %1102 = vmatpush.bf16.msra.mxu0 %v5056_v44  ;;  %v5365_v63 = vld [vmem:[%s8486_s1 + $0xa4] sm:$0xf0]  ;;  %v5167_v0 = vld [vmem:[%s8486_s1 + $0x120] sm:$0xf]  ;;  %v5041_v3 = vld [vmem:[%s8486_s1 + $0x28] sm:$0xf0]  ;;  %v5040_v4 = vor.u32 %v5349_v60, %v5039_v59 }
  0x3a   : > { %1271 = vmatpush.bf16.msra.mxu1 %v5120_v45  ;;  %v5381_v1 = vld [vmem:[%s8486_s1 + $0x124] sm:$0xf0]  ;;  %v5104_v5 = vor.u32 %v5365_v63, %v5103_v61  ;;  %v5031_v7 = vld [vmem:[%s8486_s1 + $0x10] sm:$0xf]  ;;  %v5347_v8 = vld [vmem:[%s8486_s1 + $0x14] sm:$0xf0]  ;;  %v5044_v10 = vor.u32 %v5348_v2, %v5041_v3 }
  0x3b   : > { %1440 = vmatpush.bf16.msra.mxu2 %v5184_v46  ;;  %1609 = vmatpush.bf16.msra.mxu3 %v5060_v50  ;;  %v5168_v6 = vor.u32 %v5381_v1, %v5167_v0  ;;  %v5095_v9 = vld [vmem:[%s8486_s1 + $0x90] sm:$0xf]  ;;  %v5363_v11 = vld [vmem:[%s8486_s1 + $0x94] sm:$0xf0]  ;;  %v5346_v14 = vld [vmem:[%s8486_s1 + $0x14] sm:$0xf]  ;;  %v5032_v16 = vor.u32 %v5347_v8, %v5031_v7 }
  0x3c   : > { %v5159_v12 = vld [vmem:[%s8486_s1 + $0x110] sm:$0xf]  ;;  %v5379_v13 = vld [vmem:[%s8486_s1 + $0x114] sm:$0xf0]  ;;  %v5033_v15 = vld [vmem:[%s8486_s1 + $0x18] sm:$0xf0]  ;;  %v5096_v17 = vor.u32 %v5363_v11, %v5095_v9 }
  0x3d   : > { %1103 = vmatpush.bf16.msra.mxu0 %v5048_v56  ;;  %v5160_v18 = vor.u32 %v5379_v13, %v5159_v12  ;;  %v5023_v19 = vld [vmem:[%s8486_s1] sm:$0xf]  ;;  %v5345_v20 = vld [vmem:[%s8486_s1 + $0x4] sm:$0xf0]  ;;  %v5036_v22 = vor.u32 %v5346_v14, %v5033_v15  ;;  %v5344_v26 = vld [vmem:[%s8486_s1 + $0x4] sm:$0xf] }
  0x3e   : > { %1272 = vmatpush.bf16.msra.mxu1 %v5112_v57  ;;  %v5087_v21 = vld [vmem:[%s8486_s1 + $0x80] sm:$0xf]  ;;  %v5361_v23 = vld [vmem:[%s8486_s1 + $0x84] sm:$0xf0]  ;;  %v5025_v27 = vld [vmem:[%s8486_s1 + $0x8] sm:$0xf0]  ;;  %v5024_v28 = vor.u32 %v5345_v20, %v5023_v19 }
  0x3f   : > { %1441 = vmatpush.bf16.msra.mxu2 %v5176_v58  ;;  %1610 = vmatpush.bf16.msra.mxu3 %v5052_v62  ;;  %v5151_v24 = vld [vmem:[%s8486_s1 + $0x100] sm:$0xf]  ;;  %v5377_v25 = vld [vmem:[%s8486_s1 + $0x104] sm:$0xf0]  ;;  %v5249_v30 = vld [vmem:[%s5840_s21 + $0x8] sm:$0xf0]  ;;  %v5088_v32 = vor.u32 %v5361_v23, %v5087_v21  ;;  %v5028_v37 = vor.u32 %v5344_v26, %v5025_v27 }
  0x40   : > { %v4639_v29 = vld [vmem:[%s5840_s21] sm:$0xf]  ;;  %v5248_v31 = vld [vmem:[%s5840_s21 + $0x4] sm:$0xf]  ;;  %v5152_v33 = vor.u32 %v5377_v25, %v5151_v24  ;;  %v4641_v34 = vld [vmem:[%s5840_s21 + $0xc] sm:$0xf0] }
  0x41   : > { %1104 = vmatpush.bf16.msra.mxu0 %v5040_v4  ;;  %v4647_v35 = vld [vmem:[%s5840_s21 + $0x8] sm:$0xf]  ;;  %v5250_v36 = vld [vmem:[%s5840_s21 + $0x10] sm:$0xf0]  ;;  %v4640_v38 = vor.u32 %v5249_v30, %v4639_v29  ;;  %v6044_v39 = vor.u32 %v5248_v31, %v4641_v34  ;;  %v4651_v41 = vld [vmem:[%s5840_s21 + $0x18] sm:$0xf] }
  0x42   : > { %1273 = vmatpush.bf16.msra.mxu1 %v5104_v5  ;;  %v6046_v40 = vor.u32 %v5250_v36, %v4647_v35  ;;  %v5252_v42 = vld [vmem:[%s5840_s21 + $0x20] sm:$0xf0]  ;;  %v5251_v43 = vld [vmem:[%s5840_s21 + $0x1c] sm:$0xf]  ;;  %v4653_v44 = vld [vmem:[%s5840_s21 + $0x24] sm:$0xf0] }
  0x43   : > { %1442 = vmatpush.bf16.msra.mxu2 %v5168_v6  ;;  %1611 = vmatpush.bf16.msra.mxu3 %v5044_v10  ;;  %v4659_v45 = vld [vmem:[%s5840_s21 + $0x20] sm:$0xf]  ;;  %v5253_v46 = vld [vmem:[%s5840_s21 + $0x28] sm:$0xf0]  ;;  %v4652_v47 = vor.u32 %v5252_v42, %v4651_v41  ;;  %v6056_v48 = vor.u32 %v5251_v43, %v4653_v44  ;;  %v4663_v50 = vld [vmem:[%s5840_s21 + $0x30] sm:$0xf] }
  0x44   : > { %v6058_v49 = vor.u32 %v5253_v46, %v4659_v45  ;;  %v5255_v51 = vld [vmem:[%s5840_s21 + $0x38] sm:$0xf0]  ;;  %v5254_v52 = vld [vmem:[%s5840_s21 + $0x34] sm:$0xf]  ;;  %v4665_v53 = vld [vmem:[%s5840_s21 + $0x3c] sm:$0xf0] }
  0x45   : > { %1105 = vmatpush.bf16.msra.mxu0 %v5032_v16  ;;  %v4671_v54 = vld [vmem:[%s5840_s21 + $0x38] sm:$0xf]  ;;  %v5256_v55 = vld [vmem:[%s5840_s21 + $0x40] sm:$0xf0]  ;;  %v4664_v56 = vor.u32 %v5255_v51, %v4663_v50  ;;  %v6068_v57 = vor.u32 %v5254_v52, %v4665_v53  ;;  %v4675_v59 = vld [vmem:[%s5840_s21 + $0x48] sm:$0xf] }
  0x46   : > { %1274 = vmatpush.bf16.msra.mxu1 %v5096_v17  ;;  %v6070_v58 = vor.u32 %v5256_v55, %v4671_v54  ;;  %v5258_v60 = vld [vmem:[%s5840_s21 + $0x50] sm:$0xf0]  ;;  %v5257_v61 = vld [vmem:[%s5840_s21 + $0x4c] sm:$0xf]  ;;  %v4677_v62 = vld [vmem:[%s5840_s21 + $0x54] sm:$0xf0] }
  0x47   : > { %1443 = vmatpush.bf16.msra.mxu2 %v5160_v18  ;;  %1612 = vmatpush.bf16.msra.mxu3 %v5036_v22  ;;  %v4683_v63 = vld [vmem:[%s5840_s21 + $0x50] sm:$0xf]  ;;  %v5259_v0 = vld [vmem:[%s5840_s21 + $0x58] sm:$0xf0]  ;;  %v4676_v1 = vor.u32 %v5258_v60, %v4675_v59  ;;  %v6080_v2 = vor.u32 %v5257_v61, %v4677_v62  ;;  %v4687_v4 = vld [vmem:[%s5840_s21 + $0x60] sm:$0xf] }
  0x48   : > { %v6082_v3 = vor.u32 %v5259_v0, %v4683_v63  ;;  %v5261_v5 = vld [vmem:[%s5840_s21 + $0x68] sm:$0xf0]  ;;  %v5260_v6 = vld [vmem:[%s5840_s21 + $0x64] sm:$0xf]  ;;  %v4689_v7 = vld [vmem:[%s5840_s21 + $0x6c] sm:$0xf0] }
  0x49   : > { %1106 = vmatpush.bf16.msra.mxu0 %v5024_v28  ;;  %v4695_v8 = vld [vmem:[%s5840_s21 + $0x68] sm:$0xf]  ;;  %v5262_v9 = vld [vmem:[%s5840_s21 + $0x70] sm:$0xf0]  ;;  %v4688_v10 = vor.u32 %v5261_v5, %v4687_v4  ;;  %v6092_v11 = vor.u32 %v5260_v6, %v4689_v7  ;;  %v4699_v13 = vld [vmem:[%s5840_s21 + $0x78] sm:$0xf] }
  0x4a   : > { %1275 = vmatpush.bf16.msra.mxu1 %v5088_v32  ;;  %v6094_v12 = vor.u32 %v5262_v9, %v4695_v8  ;;  %v5264_v14 = vld [vmem:[%s5840_s21 + $0x80] sm:$0xf0]  ;;  %v5263_v15 = vld [vmem:[%s5840_s21 + $0x7c] sm:$0xf]  ;;  %v4701_v16 = vld [vmem:[%s5840_s21 + $0x84] sm:$0xf0] }
  0x4b   : > { %1444 = vmatpush.bf16.msra.mxu2 %v5152_v33  ;;  %1613 = vmatpush.bf16.msra.mxu3 %v5028_v37  ;;  %v4707_v17 = vld [vmem:[%s5840_s21 + $0x80] sm:$0xf]  ;;  %v5265_v18 = vld [vmem:[%s5840_s21 + $0x88] sm:$0xf0]  ;;  %v4700_v19 = vor.u32 %v5264_v14, %v4699_v13  ;;  %v6104_v20 = vor.u32 %v5263_v15, %v4701_v16  ;;  %v4711_v22 = vld [vmem:[%s5840_s21 + $0x90] sm:$0xf] }
  0x4c   : > { %1107 = vmatmul.bf16.vlgmr.msra.gmra.mxu0 %v4640_v38  ;;  %v6106_v21 = vor.u32 %v5265_v18, %v4707_v17  ;;  %v5267_v23 = vld [vmem:[%s5840_s21 + $0x98] sm:$0xf0]  ;;  %v5266_v24 = vld [vmem:[%s5840_s21 + $0x94] sm:$0xf]  ;;  %v4713_v25 = vld [vmem:[%s5840_s21 + $0x9c] sm:$0xf0] }
  0x4d   : > { %1276 = vmatmul.bf16.vlgmr.msra.gmra.mxu1 %v6044_v39  ;;  %v4719_v26 = vld [vmem:[%s5840_s21 + $0x98] sm:$0xf]  ;;  %v5268_v27 = vld [vmem:[%s5840_s21 + $0xa0] sm:$0xf0]  ;;  %v4712_v28 = vor.u32 %v5267_v23, %v4711_v22  ;;  %v6116_v29 = vor.u32 %v5266_v24, %v4713_v25  ;;  %v4723_v31 = vld [vmem:[%s5840_s21 + $0xa8] sm:$0xf] }
  0x4e   : > { %1445 = vmatmul.bf16.vlgmr.msra.gmra.mxu2 %v6046_v40  ;;  %1614 = vmatmul.bf16.vlgmr.msra.gmra.mxu3 %v4640_v38  ;;  %v6118_v30 = vor.u32 %v5268_v27, %v4719_v26  ;;  %v5270_v32 = vld [vmem:[%s5840_s21 + $0xb0] sm:$0xf0]  ;;  %v5269_v33 = vld [vmem:[%s5840_s21 + $0xac] sm:$0xf]  ;;  %v4725_v34 = vld [vmem:[%s5840_s21 + $0xb4] sm:$0xf0] }
  0x4f   : > { %v4731_v35 = vld [vmem:[%s5840_s21 + $0xb0] sm:$0xf]  ;;  %v5271_v36 = vld [vmem:[%s5840_s21 + $0xb8] sm:$0xf0]  ;;  %v4724_v37 = vor.u32 %v5270_v32, %v4723_v31  ;;  %v6128_v38 = vor.u32 %v5269_v33, %v4725_v34  ;;  %v4735_v42 = vld [vmem:[%s5840_s21 + $0xc0] sm:$0xf] }
  0x50   : > { %v6130_v41 = vor.u32 %v5271_v36, %v4731_v35  ;;  %v5273_v43 = vld [vmem:[%s5840_s21 + $0xc8] sm:$0xf0]  ;;  %v5272_v44 = vld [vmem:[%s5840_s21 + $0xc4] sm:$0xf]  ;;  %v4737_v45 = vld [vmem:[%s5840_s21 + $0xcc] sm:$0xf0] }
  0x51   : > { %v4743_v46 = vld [vmem:[%s5840_s21 + $0xc8] sm:$0xf]  ;;  %v4736_v50 = vor.u32 %v5273_v43, %v4735_v42  ;;  %v6140_v52 = vor.u32 %v5272_v44, %v4737_v45  ;;  %v4747_v63 = vld [vmem:[%s5840_s21 + $0xd8] sm:$0xf]  ;;  %v5276_v0 = vld [vmem:[%s5840_s21 + $0xe0] sm:$0xf0] }
  0x52   : > { %8623 = vst [vmem:[#allocation5_spill] sm:$0xff] %v6130_v41  ;;  %v4749_v4 = vld [vmem:[%s5840_s21 + $0xe4] sm:$0xf0]  ;;  %v4755_v5 = vld [vmem:[%s5840_s21 + $0xe0] sm:$0xf]  ;;  %vm2401_vm0 = vcmask 523264  }
  0x53   : > { %8624 = vst [vmem:[#allocation6_spill] sm:$0xff] %v6140_v52  ;;  %v5277_v6 = vld [vmem:[%s5840_s21 + $0xe8] sm:$0xf0]  ;;  %v4759_v44 = vld [vmem:[%s5840_s21 + $0xf0] sm:$0xf] }
  0x54   : > { %v6158_v18 = vor.u32 %v5277_v6, %v4755_v5  ;;  %v5279_v45 = vld [vmem:[%s5840_s21 + $0xf8] sm:$0xf0] }
  0x56   : > { %8629 = vst [vmem:[#allocation11_spill] sm:$0xff] %v6158_v18 }
  0x5c   : > { %1112 = vmatmul.bf16.gmra.mxu0 %v4652_v47 }
  0x5d   : > { %1281 = vmatmul.bf16.gmra.mxu1 %v6056_v48 }
  0x5e   : > { %1450 = vmatmul.bf16.gmra.mxu2 %v6058_v49  ;;  %1619 = vmatmul.bf16.gmra.mxu3 %v4652_v47  ;;  %v5274_v47 = vld [vmem:[%s5840_s21 + $0xd0] sm:$0xf0] }
  0x5f   : > { %v6142_v53 = vor.u32 %v5274_v47, %v4743_v46  ;;  %v5278_v46 = vld [vmem:[%s5840_s21 + $0xf4] sm:$0xf]  ;;  %v4761_v47 = vld [vmem:[%s5840_s21 + $0xfc] sm:$0xf0] }
  0x61   : > { %8625 = vst [vmem:[#allocation7_spill] sm:$0xff] %v6142_v53 }
  0x6c   : > { %1117 = vmatmul.bf16.gmra.mxu0 %v4664_v56 }
  0x6d   : > { %1286 = vmatmul.bf16.gmra.mxu1 %v6068_v57 }
  0x6e   : > { %1455 = vmatmul.bf16.gmra.mxu2 %v6070_v58  ;;  %1624 = vmatmul.bf16.gmra.mxu3 %v4664_v56 }
  0x7c   : > { %1122 = vmatmul.bf16.gmra.mxu0 %v4676_v1 }
  0x7d   : > { %1291 = vmatmul.bf16.gmra.mxu1 %v6080_v2 }
  0x7e   : > { %1460 = vmatmul.bf16.gmra.mxu2 %v6082_v3  ;;  %1629 = vmatmul.bf16.gmra.mxu3 %v4676_v1  ;;  %v5275_v1 = vld [vmem:[%s5840_s21 + $0xdc] sm:$0xf] }
  0x7f   : > { %v6156_v17 = vor.u32 %v5275_v1, %v4749_v4  ;;  %v6179_v1 = vor.u32 %v5278_v46, %v4761_v47 }
  0x81   : > { %8628 = vst [vmem:[#allocation10_spill] sm:$0xff] %v6156_v17 }
  0x82   : > { %8632 = vst [vmem:[#allocation14_spill] sm:$0xff] %v6179_v1 }
  0x8c   : > { %1127 = vmatmul.bf16.gmra.mxu0 %v4688_v10 }
  0x8d   : > { %1296 = vmatmul.bf16.gmra.mxu1 %v6092_v11 }
  0x8e   : > { %1465 = vmatmul.bf16.gmra.mxu2 %v6094_v12  ;;  %1634 = vmatmul.bf16.gmra.mxu3 %v4688_v10  ;;  %v4748_v10 = vor.u32 %v5276_v0, %v4747_v63 }
  0x9c   : > { %1132 = vmatmul.bf16.gmra.mxu0 %v4700_v19 }
  0x9d   : > { %1301 = vmatmul.bf16.gmra.mxu1 %v6104_v20 }
  0x9e   : > { %1470 = vmatmul.bf16.gmra.mxu2 %v6106_v21  ;;  %1639 = vmatmul.bf16.gmra.mxu3 %v4700_v19 }
  0xac   : > { %1137 = vmatmul.bf16.gmra.mxu0 %v4712_v28 }
  0xad   : > { %1306 = vmatmul.bf16.gmra.mxu1 %v6116_v29 }
  0xae   : > { %1475 = vmatmul.bf16.gmra.mxu2 %v6118_v30  ;;  %1644 = vmatmul.bf16.gmra.mxu3 %v4712_v28 }
  0xbc   : > { %1142 = vmatmul.bf16.gmra.mxu0 %v4724_v37 }
  0xbd   : > { %1311 = vmatmul.bf16.gmra.mxu1 %v6128_v38 }
  0xbe   : > { %1480 = vmatmul.bf16.gmra.mxu2 %v6130_v41  ;;  %1649 = vmatmul.bf16.gmra.mxu3 %v4724_v37 }
  0xc9   : > { %v1108_v51 = vpop.f32.mrf.mxu0 }
  0xca   : > { %v1277_v54 = vpop.f32.mrf.mxu1 }
  0xcb   : > { %v1278_v55 = vadd.f32 %v1277_v54, %v1108_v51  ;;  %v5280_v51 = vld [vmem:[%s5840_s21 + $0x100] sm:$0xf0] }
  0xcc   : > { %1147 = vmatmul.bf16.gmra.mxu0 %v4736_v50 }
  0xcd   : > { %1316 = vmatmul.bf16.gmra.mxu1 %v6140_v52 }
  0xce   : > { %1485 = vmatmul.bf16.gmra.mxu2 %v6142_v53  ;;  %1654 = vmatmul.bf16.gmra.mxu3 %v4736_v50  ;;  %v4767_v50 = vld [vmem:[%s5840_s21 + $0xf8] sm:$0xf] }
  0xcf   : > { %v6181_v4 = vor.u32 %v5280_v51, %v4767_v50 }
  0xd1   : > { %v1446_v56 = vpop.f32.mrf.mxu2  ;;  %v6146_v59 = vpop.f32.mrf.mxu3  ;;  %8633 = vst [vmem:[#allocation15_spill] sm:$0xff] %v6181_v4 }
  0xd2   : > { %8626 = vst [vmem:[#allocation8_spill] sm:$0xff] %v6146_v59  ;;  %v1110_v60 = vpop.f32.mrf.mxu0  ;;  %v1279_v61 = vpop.f32.mrf.mxu1  ;;  %v1447_v62 = vadd.f32 %v1446_v56, %v1278_v55 }
  0xd3   : > { %v1280_v8 = vadd.f32 %v1279_v61, %v1110_v60  ;;  %v4760_v60 = vor.u32 %v5279_v45, %v4759_v44  ;;  %v5283_v44 = vld [vmem:[%s5840_s21 + $0x118] sm:$0xf0] }
  0xd4   : > { %v2113_v7 = vmul.f32 0.05103104, %v1447_v62  ;;  %v2241_v13 = vpack.c.bf16 %v1447_v62, %v1447_v62 }
  0xd6   : > { %v2177_v22 = vpack.c.bf16 %v2113_v7, %v2113_v7  ;;  %v6160_v25 = vunpack.c.l.b16 %v2241_v13 }
  0xd8   : > { %v2321_v31 = vunpack.c.l.b16 %v2177_v22 }
  0xd9   : > { %v1448_v9 = vpop.f32.mrf.mxu2  ;;  %v6154_v15 = vpop.f32.mrf.mxu3 }
  0xda   : > { %v1449_v14 = vadd.f32 %v1448_v9, %v1280_v8  ;;  %8627 = vst [vmem:[#allocation9_spill] sm:$0xff] %v6154_v15  ;;  %v1113_v16 = vpop.f32.mrf.mxu0  ;;  %v1282_v19 = vpop.f32.mrf.mxu1 }
  0xdb   : > { %v1283_v28 = vadd.f32 %v1282_v19, %v1113_v16 }
  0xdc   : > { %v2114_v23 = vmul.f32 0.05103104, %v1449_v14  ;;  %v2242_v24 = vpack.c.bf16 %v1449_v14, %v1449_v14  ;;  %1152 = vmatmul.bf16.gmra.mxu0 %v4748_v10 }
  0xdd   : > { %1321 = vmatmul.bf16.gmra.mxu1 %v6156_v17  ;;  %v5296_v17 = vld [vmem:[%s5840_s21 + $0x184] sm:$0xf] }
  0xde   : > { %v6162_v26 = vunpack.c.l.b16 %v2242_v24  ;;  %1490 = vmatmul.bf16.gmra.mxu2 %v6158_v18  ;;  %v2178_v27 = vpack.c.bf16 %v2114_v23, %v2114_v23  ;;  %1659 = vmatmul.bf16.gmra.mxu3 %v4748_v10 }
  0xe0   : > { %v2322_v32 = vunpack.c.l.b16 %v2178_v27 }
  0xe1   : > { %v1451_v34 = vpop.f32.mrf.mxu2  ;;  %v6168_v35 = vpop.f32.mrf.mxu3 }
  0xe2   : > { %8630 = vst [vmem:[#allocation12_spill] sm:$0xff] %v6168_v35  ;;  %v1115_v36 = vpop.f32.mrf.mxu0  ;;  %v2337_v37 = vpack.c.b16 %v2322_v32, %v2321_v31  ;;  %v1284_v42 = vpop.f32.mrf.mxu1  ;;  %v1452_v43 = vadd.f32 %v1451_v34, %v1283_v28  ;;  %v4771_v34 = vld [vmem:[%s5840_s21 + $0x108] sm:$0xf]  ;;  %v4833_v35 = vld [vmem:[%s5840_s21 + $0x18c] sm:$0xf0] }
  0xe3   : > { %v1285_v55 = vadd.f32 %v1284_v42, %v1115_v36  ;;  %v5282_v36 = vld [vmem:[%s5840_s21 + $0x110] sm:$0xf0]  ;;  %v4773_v42 = vld [vmem:[%s5840_s21 + $0x114] sm:$0xf0] }
  0xe4   : > { %2345 = vrot.lane.b32.xlu0 %v2337_v37, %s5761_s22  ;;  %v2115_v54 = vmul.f32 0.05103104, %v1452_v43  ;;  %v2243_v61 = vpack.c.bf16 %v1452_v43, %v1452_v43  ;;  %v5281_v37 = vld [vmem:[%s5840_s21 + $0x10c] sm:$0xf]  ;;  %v4779_v43 = vld [vmem:[%s5840_s21 + $0x110] sm:$0xf]  ;;  %v4772_v50 = vor.u32 %v5282_v36, %v4771_v34 }
  0xe6   : > { %v2179_v6 = vpack.c.bf16 %v2115_v54, %v2115_v54  ;;  %v6183_v9 = vunpack.c.l.b16 %v2243_v61  ;;  %v6204_v61 = vor.u32 %v5283_v44, %v4779_v43  ;;  %v5285_v43 = vld [vmem:[%s5840_s21 + $0x128] sm:$0xf0]  ;;  %v5284_v44 = vld [vmem:[%s5840_s21 + $0x124] sm:$0xf] }
  0xe8   : > { %v2323_v16 = vunpack.c.l.b16 %v2179_v6  ;;  %8637 = vst [vmem:[#allocation19_spill] sm:$0xff] %v6204_v61 }
  0xe9   : > { %v1453_v56 = vpop.f32.mrf.mxu2  ;;  %v6177_v63 = vpop.f32.mrf.mxu3 }
  0xea   : > { %v1454_v62 = vadd.f32 %v1453_v56, %v1285_v55  ;;  %8631 = vst [vmem:[#allocation13_spill] sm:$0xff] %v6177_v63  ;;  %v1118_v0 = vpop.f32.mrf.mxu0  ;;  %v1287_v5 = vpop.f32.mrf.mxu1  ;;  %v5297_v63 = vld [vmem:[%s5840_s21 + $0x188] sm:$0xf0] }
  0xeb   : > { %v1288_v14 = vadd.f32 %v1287_v5, %v1118_v0 }
  0xec   : > { %v2116_v7 = vmul.f32 0.05103104, %v1454_v62  ;;  %v2244_v8 = vpack.c.bf16 %v1454_v62, %v1454_v62  ;;  %1157 = vmatmul.bf16.gmra.mxu0 %v4760_v60 }
  0xed   : > { %1326 = vmatmul.bf16.gmra.mxu1 %v6179_v1 }
  0xee   : > { %v6185_v10 = vunpack.c.l.b16 %v2244_v8  ;;  %1495 = vmatmul.bf16.gmra.mxu2 %v6181_v4  ;;  %v2180_v13 = vpack.c.bf16 %v2116_v7, %v2116_v7  ;;  %1664 = vmatmul.bf16.gmra.mxu3 %v4760_v60  ;;  %v6202_v60 = vor.u32 %v5281_v37, %v4773_v42  ;;  %v4783_v42 = vld [vmem:[%s5840_s21 + $0x120] sm:$0xf] }
  0xf0   : > { %v2324_v19 = vunpack.c.l.b16 %v2180_v13  ;;  %8636 = vst [vmem:[#allocation18_spill] sm:$0xff] %v6202_v60 }
  0xf1   : > { %v1456_v23 = vpop.f32.mrf.mxu2  ;;  %v6191_v24 = vpop.f32.mrf.mxu3 }
  0xf2   : > { %8634 = vst [vmem:[#allocation16_spill] sm:$0xff] %v6191_v24  ;;  %v1120_v27 = vpop.f32.mrf.mxu0  ;;  %v2338_v28 = vpack.c.b16 %v2324_v19, %v2323_v16  ;;  %v1289_v31 = vpop.f32.mrf.mxu1  ;;  %v1457_v32 = vadd.f32 %v1456_v23, %v1288_v14 }
  0xf3   : > { %v1290_v46 = vadd.f32 %v1289_v31, %v1120_v27 }
  0xf4   : > { %2347 = vrot.lane.b32.xlu1 %v2338_v28, %s5761_s22  ;;  %v2117_v45 = vmul.f32 0.05103104, %v1457_v32  ;;  %v2245_v51 = vpack.c.bf16 %v1457_v32, %v1457_v32 }
  0xf6   : > { %v2181_v0 = vpack.c.bf16 %v2117_v45, %v2117_v45  ;;  %v6206_v8 = vunpack.c.l.b16 %v2245_v51  ;;  %v4785_v45 = vld [vmem:[%s5840_s21 + $0x12c] sm:$0xf0] }
  0xf8   : > { %v2325_v16 = vunpack.c.l.b16 %v2181_v0 }
  0xf9   : > { %v1458_v47 = vpop.f32.mrf.mxu2  ;;  %v6200_v55 = vpop.f32.mrf.mxu3 }
  0xfa   : > { %v1459_v54 = vadd.f32 %v1458_v47, %v1290_v46  ;;  %8635 = vst [vmem:[#allocation17_spill] sm:$0xff] %v6200_v55  ;;  %v1123_v56 = vpop.f32.mrf.mxu0  ;;  %v1292_v62 = vpop.f32.mrf.mxu1  ;;  %v4791_v46 = vld [vmem:[%s5840_s21 + $0x128] sm:$0xf]  ;;  %v5286_v47 = vld [vmem:[%s5840_s21 + $0x130] sm:$0xf0] }
  0xfb   : > { %v1293_v7 = vadd.f32 %v1292_v62, %v1123_v56  ;;  %v5295_v55 = vld [vmem:[%s5840_s21 + $0x178] sm:$0xf0] }
  0xfc   : > { %v2118_v5 = vmul.f32 0.05103104, %v1459_v54  ;;  %v2246_v6 = vpack.c.bf16 %v1459_v54, %v1459_v54  ;;  %1162 = vmatmul.bf16.gmra.mxu0 %v4772_v50  ;;  %v4784_v54 = vor.u32 %v5285_v43, %v4783_v42 }
  0xfd   : > { %1331 = vmatmul.bf16.gmra.mxu1 %v6202_v60  ;;  %v5294_v60 = vld [vmem:[%s5840_s21 + $0x170] sm:$0xf0] }
  0xfe   : > { %v6208_v13 = vunpack.c.l.b16 %v2246_v6  ;;  %1500 = vmatmul.bf16.gmra.mxu2 %v6204_v61  ;;  %v2182_v14 = vpack.c.bf16 %v2118_v5, %v2118_v5  ;;  %1669 = vmatmul.bf16.gmra.mxu3 %v4772_v50  ;;  %v6225_v6 = vor.u32 %v5284_v44, %v4785_v45  ;;  %v4819_v61 = vld [vmem:[%s5840_s21 + $0x168] sm:$0xf] }
 0x100   : > { %v2326_v19 = vunpack.c.l.b16 %v2182_v14  ;;  %8640 = vst [vmem:[#allocation22_spill] sm:$0xff] %v6225_v6 }
 0x101   : > { %v1461_v27 = vpop.f32.mrf.mxu2  ;;  %v6214_v31 = vpop.f32.mrf.mxu3 }
 0x102   : > { %v1462_v28 = vadd.f32 %v1461_v27, %v1293_v7  ;;  %8638 = vst [vmem:[#allocation20_spill] sm:$0xff] %v6214_v31  ;;  %v1125_v32 = vpop.f32.mrf.mxu0  ;;  %v2339_v34 = vpack.c.b16 %v2326_v19, %v2325_v16  ;;  %v1294_v36 = vpop.f32.mrf.mxu1  ;;  %v6227_v7 = vor.u32 %v5286_v47, %v4791_v46  ;;  %v5293_v31 = vld [vmem:[%s5840_s21 + $0x16c] sm:$0xf] }
 0x103   : > { %v1295_v37 = vadd.f32 %v1294_v36, %v1125_v32 }
 0x104   : > { %2349 = vrot.lane.b32.xlu2 %v2339_v34, %s5761_s22  ;;  %v2119_v50 = vmul.f32 0.05103104, %v1462_v28  ;;  %v2247_v56 = vpack.c.bf16 %v1462_v28, %v1462_v28  ;;  %8641 = vst [vmem:[#allocation23_spill] sm:$0xff] %v6227_v7 }
 0x106   : > { %v2183_v16 = vpack.c.bf16 %v2119_v50, %v2119_v50  ;;  %v6229_v34 = vunpack.c.l.b16 %v2247_v56 }
 0x109   : > { %v1463_v51 = vpop.f32.mrf.mxu2  ;;  %v6223_v0 = vpop.f32.mrf.mxu3 }
 0x10a   : > { %v1464_v62 = vadd.f32 %v1463_v51, %v1295_v37  ;;  %8639 = vst [vmem:[#allocation21_spill] sm:$0xff] %v6223_v0  ;;  %v1128_v5 = vpop.f32.mrf.mxu0  ;;  %v1297_v14 = vpop.f32.mrf.mxu1  ;;  %v6235_v37 = vunpack.c.l.b16 %v2183_v16  ;;  %v4803_v16 = vld [vmem:[%s5840_s21 + $0x140] sm:$0xf] }
 0x10b   : > { %v1298_v32 = vadd.f32 %v1297_v14, %v1128_v5  ;;  %v5287_v5 = vld [vmem:[%s5840_s21 + $0x13c] sm:$0xf]  ;;  %v4797_v14 = vld [vmem:[%s5840_s21 + $0x144] sm:$0xf0] }
 0x10c   : > { %v2120_v19 = vmul.f32 0.05103104, %v1464_v62  ;;  %v2248_v27 = vpack.c.bf16 %v1464_v62, %v1464_v62  ;;  %1167 = vmatmul.bf16.gmra.mxu0 %v4784_v54  ;;  %v4795_v62 = vld [vmem:[%s5840_s21 + $0x138] sm:$0xf]  ;;  %v6255_v43 = vor.u32 %v5287_v5, %v4797_v14 }
 0x10d   : > { %1336 = vmatmul.bf16.gmra.mxu1 %v6225_v6 }
 0x10e   : > { %v2184_v36 = vpack.c.bf16 %v2120_v19, %v2120_v19  ;;  %v6231_v28 = vunpack.c.l.b16 %v2248_v27  ;;  %1505 = vmatmul.bf16.gmra.mxu2 %v6227_v7  ;;  %1674 = vmatmul.bf16.gmra.mxu3 %v4784_v54  ;;  %v5288_v54 = vld [vmem:[%s5840_s21 + $0x140] sm:$0xf0]  ;;  %v5289_v19 = vld [vmem:[%s5840_s21 + $0x148] sm:$0xf0]  ;;  %8644 = vst [vmem:[#allocation26_spill] sm:$0xff] %v6255_v43 }
 0x10f   : > { %v4796_v33 = vor.u32 %v5288_v54, %v4795_v62  ;;  %v6257_v50 = vor.u32 %v5289_v19, %v4803_v16  ;;  %v4807_v16 = vld [vmem:[%s5840_s21 + $0x150] sm:$0xf]  ;;  %v5290_v19 = vld [vmem:[%s5840_s21 + $0x154] sm:$0xf] }
 0x110   : > { %v6237_v42 = vunpack.c.l.b16 %v2184_v36 }
 0x111   : > { %v1466_v44 = vpop.f32.mrf.mxu2  ;;  %v6241_v46 = vpop.f32.mrf.mxu3  ;;  %8645 = vst [vmem:[#allocation27_spill] sm:$0xff] %v6257_v50 }
 0x112   : > { %v1467_v45 = vadd.f32 %v1466_v44, %v1298_v32  ;;  %8642 = vst [vmem:[#allocation24_spill] sm:$0xff] %v6241_v46  ;;  %v1130_v47 = vpop.f32.mrf.mxu0  ;;  %v1299_v51 = vpop.f32.mrf.mxu1 }
 0x113   : > { %v1300_v56 = vadd.f32 %v1299_v51, %v1130_v47 }
 0x114   : > { %v2121_v27 = vmul.f32 0.05103104, %v1467_v45  ;;  %v2249_v22 = vpack.c.bf16 %v1467_v45, %v1467_v45 }
 0x116   : > { %v2185_v51 = vpack.c.bf16 %v2121_v27, %v2121_v27  ;;  %v6261_v46 = vunpack.c.l.b16 %v2249_v22  ;;  %v4809_v27 = vld [vmem:[%s5840_s21 + $0x15c] sm:$0xf0] }
 0x117   : > { %v6293_v5 = vor.u32 %v5290_v19, %v4809_v27  ;;  %v4821_v19 = vld [vmem:[%s5840_s21 + $0x174] sm:$0xf0]  ;;  %v4827_v27 = vld [vmem:[%s5840_s21 + $0x170] sm:$0xf] }
 0x118   : > { %v6267_v62 = vunpack.c.l.b16 %v2185_v51  ;;  %v5292_v51 = vld [vmem:[%s5840_s21 + $0x160] sm:$0xf0] }
 0x119   : > { %v1468_v36 = vpop.f32.mrf.mxu2  ;;  %v6251_v32 = vpop.f32.mrf.mxu3  ;;  %8648 = vst [vmem:[#allocation30_spill] sm:$0xff] %v6293_v5 }
 0x11a   : > { %v1469_v23 = vadd.f32 %v1468_v36, %v1300_v56  ;;  %8643 = vst [vmem:[#allocation25_spill] sm:$0xff] %v6251_v32  ;;  %v6253_v44 = vpop.f32.mrf.mxu0  ;;  %v6259_v47 = vpop.f32.mrf.mxu1  ;;  %v4815_v36 = vld [vmem:[%s5840_s21 + $0x158] sm:$0xf] }
 0x11c   : > { %v2122_v7 = vmul.f32 0.05103104, %v1469_v23  ;;  %v2250_v6 = vpack.c.bf16 %v1469_v23, %v1469_v23  ;;  %1172 = vmatmul.bf16.gmra.mxu0 %v4796_v33 }
 0x11d   : > { %1341 = vmatmul.bf16.gmra.mxu1 %v6255_v43 }
 0x11e   : > { %v2186_v45 = vpack.c.bf16 %v2122_v7, %v2122_v7  ;;  %v6263_v56 = vunpack.c.l.b16 %v2250_v6  ;;  %1510 = vmatmul.bf16.gmra.mxu2 %v6257_v50  ;;  %1679 = vmatmul.bf16.gmra.mxu3 %v4796_v33  ;;  %v5291_v33 = vld [vmem:[%s5840_s21 + $0x158] sm:$0xf0]  ;;  %v6295_v50 = vor.u32 %v5292_v51, %v4815_v36  ;;  %v4820_v51 = vor.u32 %v5294_v60, %v4819_v61 }
 0x11f   : > { %v4808_v22 = vor.u32 %v5291_v33, %v4807_v16 }
 0x120   : > { %v6269_v23 = vunpack.c.l.b16 %v2186_v45  ;;  %8649 = vst [vmem:[#allocation31_spill] sm:$0xff] %v6295_v50 }
 0x121   : > { %v6273_v54 = vpop.f32.mrf.mxu2  ;;  %v6275_v7 = vpop.f32.mrf.mxu3 }
 0x122   : > { %8646 = vst [vmem:[#allocation28_spill] sm:$0xff] %v6275_v7  ;;  %v6277_v6 = vpop.f32.mrf.mxu0  ;;  %v6281_v14 = vpop.f32.mrf.mxu1 }
 0x129   : > { %v6289_v45 = vpop.f32.mrf.mxu2  ;;  %v6291_v32 = vpop.f32.mrf.mxu3 }
 0x12a   : > { %8647 = vst [vmem:[#allocation29_spill] sm:$0xff] %v6291_v32  ;;  %v1138_v7 = vpop.f32.mrf.mxu0  ;;  %v1307_v43 = vpop.f32.mrf.mxu1 }
 0x12b   : > { %v1308_v18 = vadd.f32 %v1307_v43, %v1138_v7 }
 0x12c   : > { %1177 = vmatmul.bf16.gmra.mxu0 %v4808_v22 }
 0x12d   : > { %1346 = vmatmul.bf16.gmra.mxu1 %v6293_v5 }
 0x12e   : > { %1515 = vmatmul.bf16.gmra.mxu2 %v6295_v50  ;;  %1684 = vmatmul.bf16.gmra.mxu3 %v4808_v22  ;;  %v6309_v22 = vor.u32 %v5293_v31, %v4821_v19  ;;  %v4831_v19 = vld [vmem:[%s5840_s21 + $0x180] sm:$0xf] }
 0x130   : > { %8652 = vst [vmem:[#allocation34_spill] sm:$0xff] %v6309_v22 }
 0x131   : > { %v1476_v0 = vpop.f32.mrf.mxu2  ;;  %v6299_v16 = vpop.f32.mrf.mxu3 }
 0x132   : > { %8650 = vst [vmem:[#allocation32_spill] sm:$0xff] %v6299_v16  ;;  %v1140_v33 = vpop.f32.mrf.mxu0  ;;  %v1309_v32 = vpop.f32.mrf.mxu1  ;;  %v6311_v16 = vor.u32 %v5295_v55, %v4827_v27  ;;  %v4839_v55 = vld [vmem:[%s5840_s21 + $0x188] sm:$0xf]  ;;  %v5298_v27 = vld [vmem:[%s5840_s21 + $0x190] sm:$0xf0]  ;;  %v6331_v41 = vadd.f32 %v1476_v0, %v1308_v18 }
 0x133   : > { %v1310_v15 = vadd.f32 %v1309_v32, %v1140_v33 }
 0x134   : > { %8653 = vst [vmem:[#allocation35_spill] sm:$0xff] %v6311_v16 }
 0x139   : > { %v1478_v36 = vpop.f32.mrf.mxu2  ;;  %v6307_v4 = vpop.f32.mrf.mxu3 }
 0x13a   : > { %8651 = vst [vmem:[#allocation33_spill] sm:$0xff] %v6307_v4  ;;  %v1143_v5 = vpop.f32.mrf.mxu0  ;;  %v1312_v50 = vpop.f32.mrf.mxu1 }
 0x13b   : > { %v1313_v60 = vadd.f32 %v1312_v50, %v1143_v5  ;;  %v6325_v50 = vadd.f32 %v1478_v36, %v1310_v15 }
 0x13c   : > { %1182 = vmatmul.bf16.gmra.mxu0 %v4820_v51 }
 0x13d   : > { %1351 = vmatmul.bf16.gmra.mxu1 %v6309_v22 }
 0x13e   : > { %1520 = vmatmul.bf16.gmra.mxu2 %v6311_v16  ;;  %1689 = vmatmul.bf16.gmra.mxu3 %v4820_v51  ;;  %v4832_v16 = vor.u32 %v5297_v63, %v4831_v19  ;;  %v6323_v51 = vor.u32 %v5298_v27, %v4839_v55  ;;  %v2254_v63 = vpack.c.bf16 %v6325_v50, %v6325_v50 }
 0x140   : > { %8655 = vst [vmem:[#allocation37_spill] sm:$0xff] %v6323_v51 }
 0x141   : > { %v1481_v61 = vpop.f32.mrf.mxu2  ;;  %v6315_v4 = vpop.f32.mrf.mxu3 }
 0x142   : > { %8654 = vst [vmem:[#allocation36_spill] sm:$0xff] %v6315_v4  ;;  %v1145_v1 = vpop.f32.mrf.mxu0  ;;  %v1314_v24 = vpop.f32.mrf.mxu1  ;;  %v1482_v31 = vadd.f32 %v1481_v61, %v1313_v60  ;;  %v6329_v61 = vor.u32 %v5296_v17, %v4833_v35  ;;  %v1305_v17 = vadd.f32 %v6281_v14, %v6277_v6 }
 0x143   : > { %v1315_v22 = vadd.f32 %v1314_v24, %v1145_v1 }
 0x144   : > { %v2127_v53 = vmul.f32 0.05103104, %v1482_v31  ;;  %v2255_v5 = vpack.c.bf16 %v1482_v31, %v1482_v31  ;;  %8656 = vst [vmem:[#allocation38_spill] sm:$0xff] %v6329_v61  ;;  %v6348_v36 = vadd.f32 %v6289_v45, %v1305_v17 }
 0x146   : > { %v2191_v7 = vpack.c.bf16 %v2127_v53, %v2127_v53  ;;  %v2391_v1 = vunpack.c.l.b16 %v2255_v5  ;;  %v2253_v53 = vpack.c.bf16 %v6331_v41, %v6331_v41  ;;  %v2252_v27 = vpack.c.bf16 %v6348_v36, %v6348_v36  ;;  %v4843_v5 = vld [vmem:[%s5840_s21 + $0x198] sm:$0xf] }
 0x148   : > { %v6343_v18 = vunpack.c.l.b16 %v2191_v7  ;;  %v2389_v19 = vunpack.c.l.b16 %v2253_v53  ;;  %v4851_v7 = vld [vmem:[%s5840_s21 + $0x1a0] sm:$0xf]  ;;  %v2388_v17 = vunpack.c.l.b16 %v2252_v27 }
 0x149   : > { %v1483_v52 = vpop.f32.mrf.mxu2  ;;  %v6327_v59 = vpop.f32.mrf.mxu3 }
 0x14a   : > { %v1484_v4 = vadd.f32 %v1483_v52, %v1315_v22  ;;  %v1148_v60 = vpop.f32.mrf.mxu0  ;;  %v1317_v43 = vpop.f32.mrf.mxu1  ;;  %v1303_v52 = vadd.f32 %v6259_v47, %v6253_v44  ;;  %v2390_v44 = vunpack.c.l.b16 %v2254_v63  ;;  %v4845_v63 = vld [vmem:[%s5840_s21 + $0x1a4] sm:$0xf0] }
 0x14c   : > { %v2128_v32 = vmul.f32 0.05103104, %v1484_v4  ;;  %v2256_v33 = vpack.c.bf16 %v1484_v4, %v1484_v4  ;;  %1187 = vmatmul.bf16.gmra.mxu0 %v4832_v16  ;;  %v1318_v4 = vadd.f32 %v1317_v43, %v1148_v60  ;;  %v6356_v45 = vadd.f32 %v6273_v54, %v1303_v52  ;;  %v5300_v43 = vld [vmem:[%s5840_s21 + $0x1a0] sm:$0xf0] }
 0x14d   : > { %1356 = vmatmul.bf16.gmra.mxu1 %v6329_v61  ;;  %v2399_v60 = vpack.c.b16 %v2390_v44, %v2389_v19  ;;  %v4844_v52 = vor.u32 %v5300_v43, %v4843_v5 }
 0x14e   : > { %v2192_v15 = vpack.c.bf16 %v2128_v32, %v2128_v32  ;;  %v2392_v24 = vunpack.c.l.b16 %v2256_v33  ;;  %1525 = vmatmul.bf16.gmra.mxu2 %v6323_v51  ;;  %1694 = vmatmul.bf16.gmra.mxu3 %v4832_v16  ;;  %v5301_v32 = vld [vmem:[%s5840_s21 + $0x1a8] sm:$0xf0]  ;;  %v5299_v33 = vld [vmem:[%s5840_s21 + $0x19c] sm:$0xf] }
 0x14f   : > { %v6368_v53 = vor.u32 %v5301_v32, %v4851_v7  ;;  %v6373_v19 = vor.u32 %v5299_v33, %v4845_v63 }
 0x150   : > { %v6345_v35 = vunpack.c.l.b16 %v2192_v15  ;;  %v2400_v0 = vpack.c.b16 %v2392_v24, %v2391_v1  ;;  %v2251_v1 = vpack.c.bf16 %v6356_v45, %v6356_v45 }
 0x151   : > { %v1486_v22 = vpop.f32.mrf.mxu2  ;;  %v6350_v47 = vpop.f32.mrf.mxu3  ;;  %8658 = vst [vmem:[#allocation40_spill] sm:$0xff] %v6368_v53 }
 0x152   : > { %8657 = vst [vmem:[#allocation39_spill] sm:$0xff] %v6350_v47  ;;  %v1150_v6 = vpop.f32.mrf.mxu0  ;;  %v2448_v14 = vsel %vm2401_vm0, %v2400_v0, 0  ;;  %v1319_v31 = vpop.f32.mrf.mxu1  ;;  %v1487_v55 = vadd.f32 %v1486_v22, %v1318_v4  ;;  %v2387_v51 = vunpack.c.l.b16 %v2251_v1 }
 0x153   : > { %2450 = vmatpush.bf16.xpose.msrb.mxu2 %v2448_v14  ;;  %v1320_v24 = vadd.f32 %v1319_v31, %v1150_v6  ;;  %v2445_v14 = vsel %vm2401_vm0, %v2399_v60, 0  ;;  %8659 = vst [vmem:[#allocation41_spill] sm:$0xff] %v6373_v19 }
 0x154   : > { %v2129_v15 = vmul.f32 0.05103104, %v1487_v55  ;;  %v2257_v4 = vpack.c.bf16 %v1487_v55, %v1487_v55  ;;  %v2398_v55 = vpack.c.b16 %v2388_v17, %v2387_v51  ;;  %v4855_v17 = vld [vmem:[%s5840_s21 + $0x1b0] sm:$0xf] }
 0x156   : > { %v2193_v61 = vpack.c.bf16 %v2129_v15, %v2129_v15  ;;  %v6375_v31 = vunpack.c.l.b16 %v2257_v4  ;;  %v2442_v1 = vsel %vm2401_vm0, %v2398_v55, 0  ;;  %v5304_v4 = vld [vmem:[%s5840_s21 + $0x1c0] sm:$0xf0] }
 0x158   : > { %v2515_v60 = vunpack.c.l.b16 %v2193_v61 }
 0x159   : > { %v1488_v54 = vpop.f32.mrf.mxu2  ;;  %v6370_v22 = vpop.f32.mrf.mxu3 }
 0x15a   : > { %v1489_v0 = vadd.f32 %v1488_v54, %v1320_v24  ;;  %v1153_v44 = vpop.f32.mrf.mxu0  ;;  %v1322_v16 = vpop.f32.mrf.mxu1  ;;  %v2126_v24 = vmul.f32 0.05103104, %v6325_v50  ;;  %v5303_v54 = vld [vmem:[%s5840_s21 + $0x1b8] sm:$0xf0] }
 0x15b   : > { %2451 = vmatpush.bf16.xpose.msrb.mxu2 %v2445_v14  ;;  %v1323_v7 = vadd.f32 %v1322_v16, %v1153_v44  ;;  %v2125_v16 = vmul.f32 0.05103104, %v6331_v41  ;;  %v4857_v44 = vld [vmem:[%s5840_s21 + $0x1bc] sm:$0xf0] }
 0x15c   : > { %v2130_v47 = vmul.f32 0.05103104, %v1489_v0  ;;  %v2258_v6 = vpack.c.bf16 %v1489_v0, %v1489_v0  ;;  %1192 = vmatmul.bf16.gmra.mxu0 %v4844_v52  ;;  %v5302_v0 = vld [vmem:[%s5840_s21 + $0x1b4] sm:$0xf] }
 0x15d   : > { %1361 = vmatmul.bf16.gmra.mxu1 %v6373_v19  ;;  %v6403_v32 = vor.u32 %v5302_v0, %v4857_v44 }
 0x15e   : > { %v2194_v27 = vpack.c.bf16 %v2130_v47, %v2130_v47  ;;  %v6377_v5 = vunpack.c.l.b16 %v2258_v6  ;;  %1530 = vmatmul.bf16.gmra.mxu2 %v6368_v53  ;;  %1699 = vmatmul.bf16.gmra.mxu3 %v4844_v52  ;;  %v4863_v52 = vld [vmem:[%s5840_s21 + $0x1b8] sm:$0xf]  ;;  %v2189_v53 = vpack.c.bf16 %v2125_v16, %v2125_v16 }
 0x160   : > { %v2516_v43 = vunpack.c.l.b16 %v2194_v27  ;;  %v2190_v27 = vpack.c.bf16 %v2126_v24, %v2126_v24  ;;  %v2333_v16 = vunpack.c.l.b16 %v2189_v53  ;;  %v8662_v53 = vpack.c.b16 %v6231_v28, %v6229_v34 }
 0x161   : > { %v1491_v47 = vpop.f32.mrf.mxu2  ;;  %v6383_v33 = vpop.f32.mrf.mxu3  ;;  %v8663_v28 = vpack.c.b16 %v6208_v13, %v6206_v8 }
 0x162   : > { %v1155_v63 = vpop.f32.mrf.mxu0  ;;  %v2531_v51 = vpack.c.b16 %v2516_v43, %v2515_v60  ;;  %v1324_v15 = vpop.f32.mrf.mxu1  ;;  %v1492_v61 = vadd.f32 %v1491_v47, %v1323_v7  ;;  %v8660_v60 = vpack.c.b16 %v6263_v56, %v6261_v46  ;;  %v4856_v7 = vor.u32 %v5303_v54, %v4855_v17 }
 0x163   : > { %2452 = vmatpush.bf16.xpose.msrb.mxu2 %v2442_v1  ;;  %v1325_v6 = vadd.f32 %v1324_v15, %v1155_v63  ;;  %v8661_v46 = vpack.c.b16 %v6237_v42, %v6235_v37  ;;  %v2334_v56 = vunpack.c.l.b16 %v2190_v27 }
 0x164   : > { %2539 = vrot.lane.b32.xlu0 %v2531_v51, %s5761_s22  ;;  %v2131_v14 = vmul.f32 0.05103104, %v1492_v61  ;;  %v2439_v43 = vsel %vm2401_vm0, %v8660_v60, 0  ;;  %v2259_v47 = vpack.c.bf16 %v1492_v61, %v1492_v61  ;;  %v6401_v51 = vor.u32 %v5304_v4, %v4863_v52 }
 0x166   : > { %v2195_v63 = vpack.c.bf16 %v2131_v14, %v2131_v14  ;;  %v6409_v61 = vunpack.c.l.b16 %v2259_v47  ;;  %v4875_v47 = vld [vmem:[%s5840_s21 + $0x1d0] sm:$0xf] }
 0x168   : > { %v2517_v52 = vunpack.c.l.b16 %v2195_v63  ;;  %v4869_v63 = vld [vmem:[%s5840_s21 + $0x1d4] sm:$0xf0] }
 0x169   : > { %v1493_v55 = vpop.f32.mrf.mxu2  ;;  %v6399_v1 = vpop.f32.mrf.mxu3 }
 0x16a   : > { %v1494_v41 = vadd.f32 %v1493_v55, %v1325_v6  ;;  %v1158_v50 = vpop.f32.mrf.mxu0  ;;  %v1327_v19 = vpop.f32.mrf.mxu1  ;;  %v2436_v6 = vsel %vm2401_vm0, %v8662_v53, 0  ;;  %v2343_v55 = vpack.c.b16 %v2334_v56, %v2333_v16 }
 0x16b   : > { %2453 = vmatpush.bf16.xpose.msrb.mxu2 %v2439_v43  ;;  %v1328_v37 = vadd.f32 %v1327_v19, %v1158_v50  ;;  %v4867_v43 = vld [vmem:[%s5840_s21 + $0x1c8] sm:$0xf]  ;;  %v5305_v50 = vld [vmem:[%s5840_s21 + $0x1cc] sm:$0xf] }
 0x16c   : > { %v2132_v15 = vmul.f32 0.05103104, %v1494_v41  ;;  %v2260_v24 = vpack.c.bf16 %v1494_v41, %v1494_v41  ;;  %2351 = vrot.lane.b32.xlu0 %v8661_v46, %s5761_s22  ;;  %1197 = vmatmul.bf16.gmra.mxu0 %v4856_v7  ;;  %v5307_v41 = vld [vmem:[%s5840_s21 + $0x1d8] sm:$0xf0]  ;;  %v2433_v46 = vsel %vm2401_vm0, %v8663_v28, 0 }
 0x16d   : > { %1366 = vmatmul.bf16.gmra.mxu1 %v6403_v32 }
 0x16e   : > { %v2196_v17 = vpack.c.bf16 %v2132_v15, %v2132_v15  ;;  %v6411_v54 = vunpack.c.l.b16 %v2260_v24  ;;  %1535 = vmatmul.bf16.gmra.mxu2 %v6401_v51  ;;  %1704 = vmatmul.bf16.gmra.mxu3 %v4856_v7  ;;  %v5306_v7 = vld [vmem:[%s5840_s21 + $0x1d0] sm:$0xf0] }
 0x16f   : > { %v4868_v56 = vor.u32 %v5306_v7, %v4867_v43 }
 0x170   : > { %v2518_v4 = vunpack.c.l.b16 %v2196_v17 }
 0x171   : > { %v1496_v0 = vpop.f32.mrf.mxu2  ;;  %v6417_v44 = vpop.f32.mrf.mxu3 }
 0x172   : > { %v1160_v14 = vpop.f32.mrf.mxu0  ;;  %v2532_v27 = vpack.c.b16 %v2518_v4, %v2517_v52  ;;  %v1329_v60 = vpop.f32.mrf.mxu1  ;;  %v1497_v19 = vadd.f32 %v1496_v0, %v1328_v37  ;;  %v6437_v37 = vor.u32 %v5307_v41, %v4875_v47  ;;  %v6439_v0 = vor.u32 %v5305_v50, %v4869_v63 }
 0x173   : > { %2454 = vmatpush.bf16.xpose.msrb.mxu2 %v2436_v6  ;;  %v1330_v24 = vadd.f32 %v1329_v60, %v1160_v14  ;;  %v8664_v63 = vpack.c.b16 %v6185_v10, %v6183_v9  ;;  %v8665_v9 = vpack.c.b16 %v6162_v26, %v6160_v25  ;;  %v8669_v25 = vpack.c.b16 %v6269_v23, %v6267_v62 }
 0x174   : > { %2541 = vrot.lane.b32.xlu1 %v2532_v27, %s5761_s22  ;;  %2357 = vrot.lane.b32.xlu0 %v2343_v55, %s5761_s22  ;;  %v2133_v15 = vmul.f32 0.05103104, %v1497_v19  ;;  %v2261_v17 = vpack.c.bf16 %v1497_v19, %v1497_v19  ;;  %v2124_v26 = vmul.f32 0.05103104, %v6348_v36 }
 0x175   : > { %v2427_v10 = vsel %vm2401_vm0, %v8665_v9, 0 }
 0x176   : > { %v2197_v6 = vpack.c.bf16 %v2133_v15, %v2133_v15  ;;  %v6441_v55 = vunpack.c.l.b16 %v2261_v17  ;;  %v2430_v15 = vsel %vm2401_vm0, %v8664_v63, 0  ;;  %v4887_v17 = vld [vmem:[%s5840_s21 + $0x1e8] sm:$0xf] }
 0x178   : > { %v2519_v60 = vunpack.c.l.b16 %v2197_v6 }
 0x179   : > { %v1498_v34 = vpop.f32.mrf.mxu2  ;;  %v6435_v52 = vpop.f32.mrf.mxu3 }
 0x17a   : > { %v1499_v16 = vadd.f32 %v1498_v34, %v1330_v24  ;;  %v1163_v4 = vpop.f32.mrf.mxu0  ;;  %v1332_v53 = vpop.f32.mrf.mxu1 }
 0x17b   : > { %2455 = vmatpush.bf16.xpose.msrb.mxu2 %v2433_v46  ;;  %v1333_v43 = vadd.f32 %v1332_v53, %v1163_v4  ;;  %v4879_v46 = vld [vmem:[%s5840_s21 + $0x1e0] sm:$0xf]  ;;  %v5308_v4 = vld [vmem:[%s5840_s21 + $0x1e4] sm:$0xf]  ;;  %v4881_v53 = vld [vmem:[%s5840_s21 + $0x1ec] sm:$0xf0] }
 0x17c   : > { %v2134_v14 = vmul.f32 0.05103104, %v1499_v16  ;;  %v2262_v27 = vpack.c.bf16 %v1499_v16, %v1499_v16  ;;  %1202 = vmatmul.bf16.gmra.mxu0 %v4868_v56  ;;  %v5310_v16 = vld [vmem:[%s5840_s21 + $0x1f0] sm:$0xf0] }
 0x17d   : > { %1371 = vmatmul.bf16.gmra.mxu1 %v6439_v0  ;;  %v6468_v63 = vor.u32 %v5310_v16, %v4887_v17  ;;  %v2123_v17 = vmul.f32 0.05103104, %v6356_v45 }
 0x17e   : > { %v2198_v8 = vpack.c.bf16 %v2134_v14, %v2134_v14  ;;  %v6443_v13 = vunpack.c.l.b16 %v2262_v27  ;;  %1540 = vmatmul.bf16.gmra.mxu2 %v6437_v37  ;;  %1709 = vmatmul.bf16.gmra.mxu3 %v4868_v56  ;;  %v5309_v56 = vld [vmem:[%s5840_s21 + $0x1e8] sm:$0xf0] }
 0x17f   : > { %8667 = vst [vmem:[#allocation43_spill] sm:$0xff] %v6468_v63  ;;  %v2187_v45 = vpack.c.bf16 %v2123_v17, %v2123_v17 }
 0x180   : > { %v2520_v19 = vunpack.c.l.b16 %v2198_v8  ;;  %v4880_v8 = vor.u32 %v5309_v56, %v4879_v46 }
 0x181   : > { %v1501_v47 = vpop.f32.mrf.mxu2  ;;  %v6449_v41 = vpop.f32.mrf.mxu3 }
 0x182   : > { %v1165_v50 = vpop.f32.mrf.mxu0  ;;  %v2533_v24 = vpack.c.b16 %v2520_v19, %v2519_v60  ;;  %v1334_v34 = vpop.f32.mrf.mxu1  ;;  %v1502_v28 = vadd.f32 %v1501_v47, %v1333_v43 }
 0x183   : > { %2456 = vmatpush.bf16.xpose.msrb.mxu2 %v2430_v15  ;;  %v1335_v14 = vadd.f32 %v1334_v34, %v1165_v50  ;;  %v6470_v15 = vor.u32 %v5308_v4, %v4881_v53  ;;  %v2188_v4 = vpack.c.bf16 %v2124_v26, %v2124_v26 }
 0x184   : > { %2543 = vrot.lane.b32.xlu2 %v2533_v24, %s5761_s22  ;;  %v2135_v6 = vmul.f32 0.05103104, %v1502_v28  ;;  %v2263_v60 = vpack.c.bf16 %v1502_v28, %v1502_v28 }
 0x185   : > { %8668 = vst [vmem:[#allocation44_spill] sm:$0xff] %v6470_v15 }
 0x186   : > { %v2199_v42 = vpack.c.bf16 %v2135_v6, %v2135_v6  ;;  %v6477_v28 = vunpack.c.l.b16 %v2263_v60  ;;  %v4891_v60 = vld [vmem:[%s5840_s21 + $0x1f8] sm:$0xf] }
 0x188   : > { %v2521_v16 = vunpack.c.l.b16 %v2199_v42  ;;  %v8671_v42 = vpack.c.b16 %v6345_v35, %v6343_v18 }
 0x189   : > { %v1503_v27 = vpop.f32.mrf.mxu2  ;;  %v6466_v43 = vpop.f32.mrf.mxu3 }
 0x18a   : > { %v1504_v19 = vadd.f32 %v1503_v27, %v1335_v14  ;;  %8666 = vst [vmem:[#allocation42_spill] sm:$0xff] %v6466_v43  ;;  %v1168_v47 = vpop.f32.mrf.mxu0  ;;  %v1337_v24 = vpop.f32.mrf.mxu1 }
 0x18b   : > { %2457 = vmatpush.bf16.xpose.msrb.mxu2 %v2427_v10  ;;  %v1338_v23 = vadd.f32 %v1337_v24, %v1168_v47  ;;  %v4899_v47 = vld [vmem:[%s5840_s21 + $0x200] sm:$0xf]  ;;  %v2331_v24 = vunpack.c.l.b16 %v2187_v45 }
 0x18c   : > { %v2136_v50 = vmul.f32 0.05103104, %v1504_v19  ;;  %v2264_v34 = vpack.c.bf16 %v1504_v19, %v1504_v19  ;;  %2353 = vrot.lane.b32.xlu2 %v8669_v25, %s5761_s22  ;;  %1207 = vmatmul.bf16.gmra.mxu0 %v4880_v8  ;;  %v5312_v19 = vld [vmem:[%s5840_s21 + $0x200] sm:$0xf0]  ;;  %v4893_v25 = vld [vmem:[%s5840_s21 + $0x204] sm:$0xf0] }
 0x18d   : > { %1376 = vmatmul.bf16.gmra.mxu1 %v6470_v15 }
 0x18e   : > { %v2200_v46 = vpack.c.bf16 %v2136_v50, %v2136_v50  ;;  %v6479_v56 = vunpack.c.l.b16 %v2264_v34  ;;  %1545 = vmatmul.bf16.gmra.mxu2 %v6468_v63  ;;  %1714 = vmatmul.bf16.gmra.mxu3 %v4880_v8  ;;  %v2332_v8 = vunpack.c.l.b16 %v2188_v4  ;;  %v5313_v50 = vld [vmem:[%s5840_s21 + $0x208] sm:$0xf0]  ;;  %v5311_v34 = vld [vmem:[%s5840_s21 + $0x1fc] sm:$0xf] }
 0x18f   : > { %v6501_v35 = vor.u32 %v5313_v50, %v4899_v47  ;;  %v6503_v4 = vor.u32 %v5311_v34, %v4893_v25 }
 0x190   : > { %v2522_v62 = vunpack.c.l.b16 %v2200_v46 }
 0x191   : > { %v1506_v53 = vpop.f32.mrf.mxu2  ;;  %v6486_v6 = vpop.f32.mrf.mxu3  ;;  %8673 = vst [vmem:[#allocation47_spill] sm:$0xff] %v6501_v35 }
 0x192   : > { %8670 = vst [vmem:[#allocation45_spill] sm:$0xff] %v6486_v6  ;;  %v1170_v14 = vpop.f32.mrf.mxu0  ;;  %v2534_v27 = vpack.c.b16 %v2522_v62, %v2521_v16  ;;  %v1339_v9 = vpop.f32.mrf.mxu1  ;;  %v1507_v10 = vadd.f32 %v1506_v53, %v1338_v23  ;;  %v2342_v16 = vpack.c.b16 %v2332_v8, %v2331_v24  ;;  %v4892_v62 = vor.u32 %v5312_v19, %v4891_v60 }
 0x193   : > { %v1340_v46 = vadd.f32 %v1339_v9, %v1170_v14  ;;  %8674 = vst [vmem:[#allocation48_spill] sm:$0xff] %v6503_v4 }
 0x194   : > { %2359 = vrot.lane.b32.xlu2 %v8671_v42, %s5761_s22  ;;  %2545 = vrot.lane.b32.xlu1 %v2534_v27, %s5761_s22  ;;  %v2137_v26 = vmul.f32 0.05103104, %v1507_v10  ;;  %v2265_v23 = vpack.c.bf16 %v1507_v10, %v1507_v10 }
 0x196   : > { %v2201_v42 = vpack.c.bf16 %v2137_v26, %v2137_v26  ;;  %v6506_v14 = vunpack.c.l.b16 %v2265_v23  ;;  %v5314_v23 = vld [vmem:[%s5840_s21 + $0x214] sm:$0xf] }
 0x198   : > { %v2523_v8 = vunpack.c.l.b16 %v2201_v42 }
 0x199   : > { %v1508_v17 = vpop.f32.mrf.mxu2  ;;  %v6499_v7 = vpop.f32.mrf.mxu3 }
 0x19a   : > { %v1509_v53 = vadd.f32 %v1508_v17, %v1340_v46  ;;  %8672 = vst [vmem:[#allocation46_spill] sm:$0xff] %v6499_v7  ;;  %v1173_v18 = vpop.f32.mrf.mxu0  ;;  %v1342_v27 = vpop.f32.mrf.mxu1  ;;  %v4903_v46 = vld [vmem:[%s5840_s21 + $0x210] sm:$0xf]  ;;  %v5315_v17 = vld [vmem:[%s5840_s21 + $0x218] sm:$0xf0] }
 0x19b   : > { %v1343_v19 = vadd.f32 %v1342_v27, %v1173_v18 }
 0x19c   : > { %v2138_v45 = vmul.f32 0.05103104, %v1509_v53  ;;  %v2266_v36 = vpack.c.bf16 %v1509_v53, %v1509_v53  ;;  %2355 = vrot.lane.b32.xlu1 %v2342_v16, %s5761_s22  ;;  %1212 = vmatmul.bf16.gmra.mxu0 %v4892_v62  ;;  %v4911_v16 = vld [vmem:[%s5840_s21 + $0x218] sm:$0xf]  ;;  %v4905_v53 = vld [vmem:[%s5840_s21 + $0x21c] sm:$0xf0] }
 0x19d   : > { %1381 = vmatmul.bf16.gmra.mxu1 %v6503_v4 }
 0x19e   : > { %v2202_v9 = vpack.c.bf16 %v2138_v45, %v2138_v45  ;;  %v6508_v10 = vunpack.c.l.b16 %v2266_v36  ;;  %1550 = vmatmul.bf16.gmra.mxu2 %v6501_v35  ;;  %1719 = vmatmul.bf16.gmra.mxu3 %v4892_v62  ;;  %v5316_v62 = vld [vmem:[%s5840_s21 + $0x220] sm:$0xf0]  ;;  %v4904_v45 = vor.u32 %v5315_v17, %v4903_v46 }
 0x1a0   : > { %v2524_v60 = vunpack.c.l.b16 %v2202_v9 }
 0x1a1   : > { %v1511_v24 = vpop.f32.mrf.mxu2  ;;  %v6514_v50 = vpop.f32.mrf.mxu3 }
 0x1a2   : > { %8675 = vst [vmem:[#allocation49_spill] sm:$0xff] %v6514_v50  ;;  %v1175_v36 = vpop.f32.mrf.mxu0  ;;  %v2535_v34 = vpack.c.b16 %v2524_v60, %v2523_v8  ;;  %v1344_v25 = vpop.f32.mrf.mxu1  ;;  %v6516_v26 = vadd.f32 %v1511_v24, %v1343_v19  ;;  %v6530_v60 = vor.u32 %v5316_v62, %v4911_v16  ;;  %v6532_v19 = vor.u32 %v5314_v23, %v4905_v53 }
 0x1a3   : > { %v1345_v27 = vadd.f32 %v1344_v25, %v1175_v36 }
 0x1a4   : > { %2547 = vrot.lane.b32.xlu0 %v2535_v34, %s5761_s22  ;;  %v2139_v18 = vmul.f32 0.05103104, %v6516_v26  ;;  %8677 = vst [vmem:[#allocation51_spill] sm:$0xff] %v6530_v60 }
 0x1a5   : > { %8678 = vst [vmem:[#allocation52_spill] sm:$0xff] %v6532_v19 }
 0x1a6   : > { %v2203_v34 = vpack.c.bf16 %v2139_v18, %v2139_v18 }
 0x1a8   : > { %v2525_v36 = vunpack.c.l.b16 %v2203_v34 }
 0x1a9   : > { %v1513_v42 = vpop.f32.mrf.mxu2  ;;  %v6528_v47 = vpop.f32.mrf.mxu3 }
 0x1aa   : > { %v6526_v9 = vadd.f32 %v1513_v42, %v1345_v27  ;;  %8676 = vst [vmem:[#allocation50_spill] sm:$0xff] %v6528_v47  ;;  %v1178_v8 = vpop.f32.mrf.mxu0  ;;  %v1347_v24 = vpop.f32.mrf.mxu1  ;;  %v5318_v27 = vld [vmem:[%s5840_s21 + $0x230] sm:$0xf0]  ;;  %v4923_v42 = vld [vmem:[%s5840_s21 + $0x230] sm:$0xf] }
 0x1ab   : > { %v1348_v46 = vadd.f32 %v1347_v24, %v1178_v8  ;;  %v5319_v47 = vld [vmem:[%s5840_s21 + $0x238] sm:$0xf0] }
 0x1ac   : > { %v2140_v7 = vmul.f32 0.05103104, %v6526_v9  ;;  %1217 = vmatmul.bf16.gmra.mxu0 %v4904_v45 }
 0x1ad   : > { %1386 = vmatmul.bf16.gmra.mxu1 %v6532_v19 }
 0x1ae   : > { %v2204_v50 = vpack.c.bf16 %v2140_v7, %v2140_v7  ;;  %1555 = vmatmul.bf16.gmra.mxu2 %v6530_v60  ;;  %1724 = vmatmul.bf16.gmra.mxu3 %v4904_v45  ;;  %v4915_v7 = vld [vmem:[%s5840_s21 + $0x228] sm:$0xf]  ;;  %v5317_v60 = vld [vmem:[%s5840_s21 + $0x22c] sm:$0xf]  ;;  %v4917_v45 = vld [vmem:[%s5840_s21 + $0x234] sm:$0xf0] }
 0x1af   : > { %v4916_v24 = vor.u32 %v5318_v27, %v4915_v7 }
 0x1b0   : > { %v2526_v25 = vunpack.c.l.b16 %v2204_v50 }
 0x1b1   : > { %v1516_v17 = vpop.f32.mrf.mxu2  ;;  %v6537_v16 = vpop.f32.mrf.mxu3 }
 0x1b2   : > { %8679 = vst [vmem:[#allocation53_spill] sm:$0xff] %v6537_v16  ;;  %v1180_v62 = vpop.f32.mrf.mxu0  ;;  %v2536_v23 = vpack.c.b16 %v2526_v25, %v2525_v36  ;;  %v1349_v53 = vpop.f32.mrf.mxu1  ;;  %v6539_v18 = vadd.f32 %v1516_v17, %v1348_v46  ;;  %v6553_v25 = vor.u32 %v5319_v47, %v4923_v42  ;;  %v6555_v46 = vor.u32 %v5317_v60, %v4917_v45  ;;  %v5374_v47 = vld [vmem:[%s8486_s1 + $0xf4] sm:$0xf]  ;;  %v5145_v60 = vld [vmem:[%s8486_s1 + $0xf8] sm:$0xf0] }
 0x1b3   : > { %v1350_v50 = vadd.f32 %v1349_v53, %v1180_v62  ;;  %v5209_v42 = vld [vmem:[%s8486_s1 + $0x178] sm:$0xf0] }
 0x1b4   : > { %2549 = vrot.lane.b32.xlu2 %v2536_v23, %s5761_s22  ;;  %v2141_v34 = vmul.f32 0.05103104, %v6539_v18  ;;  %8681 = vst [vmem:[#allocation55_spill] sm:$0xff] %v6553_v25 }
 0x1b5   : > { %8682 = vst [vmem:[#allocation56_spill] sm:$0xff] %v6555_v46 }
 0x1b6   : > { %v2205_v23 = vpack.c.bf16 %v2141_v34, %v2141_v34 }
 0x1b8   : > { %v2527_v62 = vunpack.c.l.b16 %v2205_v23  ;;  %v5321_v23 = vld [vmem:[%s5840_s21 + $0x248] sm:$0xf0] }
 0x1b9   : > { %v1518_v8 = vpop.f32.mrf.mxu2  ;;  %v6551_v16 = vpop.f32.mrf.mxu3 }
 0x1ba   : > { %v6549_v19 = vadd.f32 %v1518_v8, %v1350_v50  ;;  %8680 = vst [vmem:[#allocation54_spill] sm:$0xff] %v6551_v16  ;;  %v1183_v36 = vpop.f32.mrf.mxu0  ;;  %v1352_v17 = vpop.f32.mrf.mxu1  ;;  %v4935_v16 = vld [vmem:[%s5840_s21 + $0x248] sm:$0xf] }
 0x1bb   : > { %v1353_v7 = vadd.f32 %v1352_v17, %v1183_v36  ;;  %v4927_v17 = vld [vmem:[%s5840_s21 + $0x240] sm:$0xf] }
 0x1bc   : > { %v2142_v35 = vmul.f32 0.05103104, %v6549_v19  ;;  %1222 = vmatmul.bf16.gmra.mxu0 %v4916_v24  ;;  %v4928_v6 = vor.u32 %v5321_v23, %v4927_v17 }
 0x1bd   : > { %1391 = vmatmul.bf16.gmra.mxu1 %v6555_v46 }
 0x1be   : > { %v2206_v4 = vpack.c.bf16 %v2142_v35, %v2142_v35  ;;  %1560 = vmatmul.bf16.gmra.mxu2 %v6553_v25  ;;  %1729 = vmatmul.bf16.gmra.mxu3 %v4916_v24  ;;  %v5390_v35 = vld [vmem:[%s8486_s1 + $0x174] sm:$0xf]  ;;  %v4929_v25 = vld [vmem:[%s5840_s21 + $0x24c] sm:$0xf0] }
 0x1bf   : > { %v5212_v8 = vor.u32 %v5390_v35, %v5209_v42 }
 0x1c0   : > { %v2528_v53 = vunpack.c.l.b16 %v2206_v4  ;;  %v5148_v4 = vor.u32 %v5374_v47, %v5145_v60  ;;  %v5322_v47 = vld [vmem:[%s5840_s21 + $0x250] sm:$0xf0]  ;;  %v5320_v60 = vld [vmem:[%s5840_s21 + $0x244] sm:$0xf] }
 0x1c1   : > { %v1521_v27 = vpop.f32.mrf.mxu2  ;;  %v6572_v45 = vpop.f32.mrf.mxu3  ;;  %1944 = vmatpush.bf16.msrb.mxu1 %v5212_v8  ;;  %v6583_v35 = vor.u32 %v5322_v47, %v4935_v16  ;;  %v2270_v8 = vpack.c.bf16 %v6549_v19, %v6549_v19 }
 0x1c2   : > { %8683 = vst [vmem:[#allocation57_spill] sm:$0xff] %v6572_v45  ;;  %v1185_v34 = vpop.f32.mrf.mxu0  ;;  %v2537_v50 = vpack.c.b16 %v2528_v53, %v2527_v62  ;;  %v1354_v24 = vpop.f32.mrf.mxu1  ;;  %1775 = vmatpush.bf16.msrb.mxu0 %v5148_v4  ;;  %v1522_v36 = vadd.f32 %v1521_v27, %v1353_v7  ;;  %v6585_v7 = vor.u32 %v5320_v60, %v4929_v25 }
 0x1c3   : > { %v1355_v63 = vadd.f32 %v1354_v24, %v1185_v34  ;;  %8685 = vst [vmem:[#allocation59_spill] sm:$0xff] %v6583_v35  ;;  %v2584_v19 = vunpack.c.l.b16 %v2270_v8  ;;  %v5325_v8 = vld [vmem:[%s5840_s21 + $0x268] sm:$0xf0] }
 0x1c4   : > { %2551 = vrot.lane.b32.xlu1 %v2537_v50, %s5761_s22  ;;  %v2143_v46 = vmul.f32 0.05103104, %v1522_v36  ;;  %v2271_v45 = vpack.c.bf16 %v1522_v36, %v1522_v36  ;;  %8686 = vst [vmem:[#allocation60_spill] sm:$0xff] %v6585_v7 }
 0x1c6   : > { %v2207_v4 = vpack.c.bf16 %v2143_v46, %v2143_v46  ;;  %v2585_v34 = vunpack.c.l.b16 %v2271_v45 }
 0x1c9   : > { %v1523_v15 = vpop.f32.mrf.mxu2  ;;  %v6581_v62 = vpop.f32.mrf.mxu3 }
 0x1ca   : > { %v1524_v43 = vadd.f32 %v1523_v15, %v1355_v63  ;;  %8684 = vst [vmem:[#allocation58_spill] sm:$0xff] %v6581_v62  ;;  %v1188_v53 = vpop.f32.mrf.mxu0  ;;  %v1357_v27 = vpop.f32.mrf.mxu1  ;;  %v2269_v63 = vpack.c.bf16 %v6539_v18, %v6539_v18  ;;  %v2529_v15 = vunpack.c.l.b16 %v2207_v4 }
 0x1cb   : > { %v1358_v25 = vadd.f32 %v1357_v27, %v1188_v53  ;;  %v2268_v53 = vpack.c.bf16 %v6526_v9, %v6526_v9  ;;  %v4939_v27 = vld [vmem:[%s5840_s21 + $0x258] sm:$0xf] }
 0x1cc   : > { %v2144_v42 = vmul.f32 0.05103104, %v1524_v43  ;;  %v2272_v50 = vpack.c.bf16 %v1524_v43, %v1524_v43  ;;  %1227 = vmatmul.bf16.gmra.mxu0 %v4928_v6  ;;  %v2583_v18 = vunpack.c.l.b16 %v2269_v63 }
 0x1cd   : > { %1396 = vmatmul.bf16.gmra.mxu1 %v6585_v7 }
 0x1ce   : > { %v2208_v24 = vpack.c.bf16 %v2144_v42, %v2144_v42  ;;  %v2586_v17 = vunpack.c.l.b16 %v2272_v50  ;;  %1565 = vmatmul.bf16.gmra.mxu2 %v6583_v35  ;;  %1734 = vmatmul.bf16.gmra.mxu3 %v4928_v6  ;;  %v2593_v4 = vpack.c.b16 %v2584_v19, %v2583_v18  ;;  %v5324_v42 = vld [vmem:[%s5840_s21 + $0x260] sm:$0xf0]  ;;  %v4947_v50 = vld [vmem:[%s5840_s21 + $0x260] sm:$0xf] }
 0x1d0   : > { %v2530_v16 = vunpack.c.l.b16 %v2208_v24  ;;  %v2594_v43 = vpack.c.b16 %v2586_v17, %v2585_v34  ;;  %v5323_v34 = vld [vmem:[%s5840_s21 + $0x25c] sm:$0xf]  ;;  %v4941_v24 = vld [vmem:[%s5840_s21 + $0x264] sm:$0xf0]  ;;  %v2267_v17 = vpack.c.bf16 %v6516_v26, %v6516_v26  ;;  %v2638_v18 = vsel %vm2401_vm0, %v2593_v4, 0 }
 0x1d1   : > { %v1526_v46 = vpop.f32.mrf.mxu2  ;;  %v6593_v45 = vpop.f32.mrf.mxu3  ;;  %v6612_v35 = vor.u32 %v5323_v34, %v4941_v24 }
 0x1d2   : > { %8687 = vst [vmem:[#allocation61_spill] sm:$0xff] %v6593_v45  ;;  %v1190_v36 = vpop.f32.mrf.mxu0  ;;  %v2641_v23 = vsel %vm2401_vm0, %v2594_v43, 0  ;;  %v2538_v47 = vpack.c.b16 %v2530_v16, %v2529_v15  ;;  %v1359_v6 = vpop.f32.mrf.mxu1  ;;  %v1527_v60 = vadd.f32 %v1526_v46, %v1358_v25  ;;  %v2582_v43 = vunpack.c.l.b16 %v2268_v53 }
 0x1d3   : > { %2643 = vmatpush.bf16.xpose.msrb.mxu3 %v2641_v23  ;;  %v1360_v16 = vadd.f32 %v1359_v6, %v1190_v36  ;;  %v4940_v25 = vor.u32 %v5324_v42, %v4939_v27  ;;  %v6607_v46 = vor.u32 %v5325_v8, %v4947_v50  ;;  %8690 = vst [vmem:[#allocation64_spill] sm:$0xff] %v6612_v35  ;;  %v2581_v45 = vunpack.c.l.b16 %v2267_v17 }
 0x1d4   : > { %2553 = vrot.lane.b32.xlu0 %v2538_v47, %s5761_s22  ;;  %v2145_v15 = vmul.f32 0.05103104, %v1527_v60  ;;  %v2273_v23 = vpack.c.bf16 %v1527_v60, %v1527_v60 }
 0x1d5   : > { %8688 = vst [vmem:[#allocation62_spill] sm:$0xff] %v6607_v46  ;;  %v2592_v60 = vpack.c.b16 %v2582_v43, %v2581_v45  ;;  %v4951_v43 = vld [vmem:[%s5840_s21 + $0x270] sm:$0xf] }
 0x1d6   : > { %v2209_v26 = vpack.c.bf16 %v2145_v15, %v2145_v15  ;;  %v6614_v6 = vunpack.c.l.b16 %v2273_v23  ;;  %v5326_v23 = vld [vmem:[%s5840_s21 + $0x274] sm:$0xf] }
 0x1d7   : > { %v2635_v17 = vsel %vm2401_vm0, %v2592_v60, 0 }
 0x1d8   : > { %v2708_v4 = vunpack.c.l.b16 %v2209_v26 }
 0x1d9   : > { %v1528_v63 = vpop.f32.mrf.mxu2  ;;  %v6609_v9 = vpop.f32.mrf.mxu3 }
 0x1da   : > { %v1529_v47 = vadd.f32 %v1528_v63, %v1360_v16  ;;  %8689 = vst [vmem:[#allocation63_spill] sm:$0xff] %v6609_v9  ;;  %v1193_v19 = vpop.f32.mrf.mxu0  ;;  %v1362_v7 = vpop.f32.mrf.mxu1  ;;  %v5327_v63 = vld [vmem:[%s5840_s21 + $0x278] sm:$0xf0] }
 0x1db   : > { %2644 = vmatpush.bf16.xpose.msrb.mxu3 %v2638_v18  ;;  %v1363_v50 = vadd.f32 %v1362_v7, %v1193_v19  ;;  %v5328_v7 = vld [vmem:[%s5840_s21 + $0x280] sm:$0xf0]  ;;  %v4952_v60 = vor.u32 %v5327_v63, %v4951_v43 }
 0x1dc   : > { %v2146_v62 = vmul.f32 0.05103104, %v1529_v47  ;;  %v2274_v36 = vpack.c.bf16 %v1529_v47, %v1529_v47  ;;  %1232 = vmatmul.bf16.gmra.mxu0 %v4940_v25  ;;  %v4953_v47 = vld [vmem:[%s5840_s21 + $0x27c] sm:$0xf0] }
 0x1dd   : > { %1401 = vmatmul.bf16.gmra.mxu1 %v6612_v35 }
 0x1de   : > { %v2210_v53 = vpack.c.bf16 %v2146_v62, %v2146_v62  ;;  %v6616_v27 = vunpack.c.l.b16 %v2274_v36  ;;  %1570 = vmatmul.bf16.gmra.mxu2 %v6607_v46  ;;  %1739 = vmatmul.bf16.gmra.mxu3 %v4940_v25  ;;  %v4959_v25 = vld [vmem:[%s5840_s21 + $0x278] sm:$0xf]  ;;  %v8692_v36 = vpack.c.b16 %v6508_v10, %v6506_v14 }
 0x1e0   : > { %v2709_v42 = vunpack.c.l.b16 %v2210_v53  ;;  %v2632_v53 = vsel %vm2401_vm0, %v8692_v36, 0 }
 0x1e1   : > { %v1531_v8 = vpop.f32.mrf.mxu2  ;;  %v6622_v34 = vpop.f32.mrf.mxu3 }
 0x1e2   : > { %8691 = vst [vmem:[#allocation65_spill] sm:$0xff] %v6622_v34  ;;  %v1195_v24 = vpop.f32.mrf.mxu0  ;;  %v2724_v15 = vpack.c.b16 %v2709_v42, %v2708_v4  ;;  %v1364_v45 = vpop.f32.mrf.mxu1  ;;  %v1532_v16 = vadd.f32 %v1531_v8, %v1363_v50  ;;  %v8784_v34 = vld [vmem:[#allocation27_spill] sm:$0xff] }
 0x1e3   : > { %2645 = vmatpush.bf16.xpose.msrb.mxu3 %v2635_v17  ;;  %v1365_v18 = vadd.f32 %v1364_v45, %v1195_v24  ;;  %v6638_v17 = vor.u32 %v5328_v7, %v4959_v25 }
 0x1e4   : > { %2732 = vrot.lane.b32.xlu1 %v2724_v15, %s5761_s22  ;;  %v2147_v19 = vmul.f32 0.05103104, %v1532_v16  ;;  %v2275_v4 = vpack.c.bf16 %v1532_v16, %v1532_v16  ;;  %v6640_v15 = vor.u32 %v5326_v23, %v4953_v47 }
 0x1e5   : > { %8694 = vst [vmem:[#allocation67_spill] sm:$0xff] %v6638_v17 }
 0x1e6   : > { %8695 = vst [vmem:[#allocation68_spill] sm:$0xff] %v6640_v15  ;;  %v2211_v46 = vpack.c.bf16 %v2147_v19, %v2147_v19  ;;  %v6642_v35 = vunpack.c.l.b16 %v2275_v4  ;;  %v8697_v19 = vpack.c.b16 %v6479_v56, %v6477_v28  ;;  %v5331_v4 = vld [vmem:[%s5840_s21 + $0x298] sm:$0xf0]  ;;  %v8698_v28 = vpack.c.b16 %v6443_v13, %v6441_v55 }
 0x1e8   : > { %v2710_v16 = vunpack.c.l.b16 %v2211_v46  ;;  %v2626_v56 = vsel %vm2401_vm0, %v8698_v28, 0  ;;  %v8703_v28 = vpack.c.b16 %v6411_v54, %v6409_v61  ;;  %v8704_v54 = vpack.c.b16 %v6377_v5, %v6375_v31 }
 0x1e9   : > { %v1533_v26 = vpop.f32.mrf.mxu2  ;;  %v6636_v50 = vpop.f32.mrf.mxu3 }
 0x1ea   : > { %v1534_v42 = vadd.f32 %v1533_v26, %v1365_v18  ;;  %8693 = vst [vmem:[#allocation66_spill] sm:$0xff] %v6636_v50  ;;  %v1198_v8 = vpop.f32.mrf.mxu0  ;;  %v1367_v62 = vpop.f32.mrf.mxu1  ;;  %v2629_v18 = vsel %vm2401_vm0, %v8697_v19, 0 }
 0x1eb   : > { %2646 = vmatpush.bf16.xpose.msrb.mxu3 %v2632_v53  ;;  %v1368_v63 = vadd.f32 %v1367_v62, %v1198_v8  ;;  %v4963_v62 = vld [vmem:[%s5840_s21 + $0x288] sm:$0xf]  ;;  %v5330_v53 = vld [vmem:[%s5840_s21 + $0x290] sm:$0xf0]  ;;  %v4965_v8 = vld [vmem:[%s5840_s21 + $0x294] sm:$0xf0] }
 0x1ec   : > { %v2148_v24 = vmul.f32 0.05103104, %v1534_v42  ;;  %v2276_v45 = vpack.c.bf16 %v1534_v42, %v1534_v42  ;;  %1237 = vmatmul.bf16.gmra.mxu0 %v4952_v60  ;;  %v5329_v42 = vld [vmem:[%s5840_s21 + $0x28c] sm:$0xf] }
 0x1ed   : > { %1406 = vmatmul.bf16.gmra.mxu1 %v6640_v15 }
 0x1ee   : > { %v2212_v14 = vpack.c.bf16 %v2148_v24, %v2148_v24  ;;  %v6644_v10 = vunpack.c.l.b16 %v2276_v45  ;;  %1575 = vmatmul.bf16.gmra.mxu2 %v6638_v17  ;;  %1744 = vmatmul.bf16.gmra.mxu3 %v4952_v60  ;;  %v4971_v60 = vld [vmem:[%s5840_s21 + $0x290] sm:$0xf] }
 0x1f0   : > { %v2711_v43 = vunpack.c.l.b16 %v2212_v14 }
 0x1f1   : > { %v1536_v7 = vpop.f32.mrf.mxu2  ;;  %v6650_v23 = vpop.f32.mrf.mxu3 }
 0x1f2   : > { %8696 = vst [vmem:[#allocation69_spill] sm:$0xff] %v6650_v23  ;;  %v1200_v47 = vpop.f32.mrf.mxu0  ;;  %v2725_v26 = vpack.c.b16 %v2711_v43, %v2710_v16  ;;  %v1369_v46 = vpop.f32.mrf.mxu1  ;;  %v1537_v36 = vadd.f32 %v1536_v7, %v1368_v63  ;;  %v4964_v16 = vor.u32 %v5330_v53, %v4963_v62 }
 0x1f3   : > { %2647 = vmatpush.bf16.xpose.msrb.mxu3 %v2629_v18  ;;  %v1370_v45 = vadd.f32 %v1369_v46, %v1200_v47  ;;  %v6669_v18 = vor.u32 %v5331_v4, %v4971_v60  ;;  %v5372_v60 = vld [vmem:[%s8486_s1 + $0xe4] sm:$0xf]  ;;  %v5137_v4 = vld [vmem:[%s8486_s1 + $0xe8] sm:$0xf0] }
 0x1f4   : > { %2734 = vrot.lane.b32.xlu0 %v2725_v26, %s5761_s22  ;;  %v2149_v24 = vmul.f32 0.05103104, %v1537_v36  ;;  %v2277_v43 = vpack.c.bf16 %v1537_v36, %v1537_v36  ;;  %v6671_v26 = vor.u32 %v5329_v42, %v4965_v8  ;;  %v5388_v42 = vld [vmem:[%s8486_s1 + $0x164] sm:$0xf]  ;;  %v4977_v8 = vld [vmem:[%s5840_s21 + $0x2ac] sm:$0xf0] }
 0x1f5   : > { %8700 = vst [vmem:[#allocation71_spill] sm:$0xff] %v6669_v18 }
 0x1f6   : > { %8701 = vst [vmem:[#allocation72_spill] sm:$0xff] %v6671_v26  ;;  %v2213_v17 = vpack.c.bf16 %v2149_v24, %v2149_v24  ;;  %v6673_v15 = vunpack.c.l.b16 %v2277_v43  ;;  %v5201_v24 = vld [vmem:[%s8486_s1 + $0x168] sm:$0xf0] }
 0x1f8   : > { %v2712_v36 = vunpack.c.l.b16 %v2213_v17 }
 0x1f9   : > { %v1538_v14 = vpop.f32.mrf.mxu2  ;;  %v6667_v63 = vpop.f32.mrf.mxu3 }
 0x1fa   : > { %v1539_v19 = vadd.f32 %v1538_v14, %v1370_v45  ;;  %8699 = vst [vmem:[#allocation70_spill] sm:$0xff] %v6667_v63  ;;  %v1203_v7 = vpop.f32.mrf.mxu0  ;;  %v1372_v25 = vpop.f32.mrf.mxu1 }
 0x1fb   : > { %2648 = vmatpush.bf16.xpose.msrb.mxu3 %v2626_v56  ;;  %v1373_v53 = vadd.f32 %v1372_v25, %v1203_v7  ;;  %v5140_v25 = vor.u32 %v5372_v60, %v5137_v4  ;;  %v2623_v56 = vsel %vm2401_vm0, %v8703_v28, 0  ;;  %v5334_v60 = vld [vmem:[%s5840_s21 + $0x2b0] sm:$0xf0]  ;;  %v5332_v4 = vld [vmem:[%s5840_s21 + $0x2a4] sm:$0xf] }
 0x1fc   : > { %v2150_v47 = vmul.f32 0.05103104, %v1539_v19  ;;  %v2278_v46 = vpack.c.bf16 %v1539_v19, %v1539_v19  ;;  %1242 = vmatmul.bf16.gmra.mxu0 %v4964_v16  ;;  %v6714_v28 = vor.u32 %v5332_v4, %v4977_v8 }
 0x1fd   : > { %1411 = vmatmul.bf16.gmra.mxu1 %v6671_v26  ;;  %1776 = vmatpush.bf16.msrb.mxu0 %v5140_v25 }
 0x1fe   : > { %v2214_v55 = vpack.c.bf16 %v2150_v47, %v2150_v47  ;;  %v6675_v13 = vunpack.c.l.b16 %v2278_v46  ;;  %1580 = vmatmul.bf16.gmra.mxu2 %v6669_v18  ;;  %1749 = vmatmul.bf16.gmra.mxu3 %v4964_v16  ;;  %v5204_v16 = vor.u32 %v5388_v42, %v5201_v24  ;;  %v4975_v47 = vld [vmem:[%s5840_s21 + $0x2a0] sm:$0xf]  ;;  %v5333_v46 = vld [vmem:[%s5840_s21 + $0x2a8] sm:$0xf0]  ;;  %8707 = vst [vmem:[#allocation76_spill] sm:$0xff] %v6714_v28 }
 0x200   : > { %v2713_v62 = vunpack.c.l.b16 %v2214_v55  ;;  %1945 = vmatpush.bf16.msrb.mxu1 %v5204_v16  ;;  %v4983_v55 = vld [vmem:[%s5840_s21 + $0x2a8] sm:$0xf] }
 0x201   : > { %v1541_v17 = vpop.f32.mrf.mxu2  ;;  %v6693_v45 = vpop.f32.mrf.mxu3  ;;  %v6712_v24 = vor.u32 %v5334_v60, %v4983_v55 }
 0x202   : > { %8702 = vst [vmem:[#allocation73_spill] sm:$0xff] %v6693_v45  ;;  %v1205_v14 = vpop.f32.mrf.mxu0  ;;  %v2726_v43 = vpack.c.b16 %v2713_v62, %v2712_v36  ;;  %v1374_v19 = vpop.f32.mrf.mxu1  ;;  %v1542_v7 = vadd.f32 %v1541_v17, %v1373_v53  ;;  %v2620_v36 = vsel %vm2401_vm0, %v8704_v54, 0  ;;  %v4976_v62 = vor.u32 %v5333_v46, %v4975_v47  ;;  %v4987_v54 = vld [vmem:[%s5840_s21 + $0x2b8] sm:$0xf] }
 0x203   : > { %2649 = vmatpush.bf16.xpose.msrb.mxu3 %v2623_v56  ;;  %v1375_v26 = vadd.f32 %v1374_v19, %v1205_v14  ;;  %8706 = vst [vmem:[#allocation75_spill] sm:$0xff] %v6712_v24 }
 0x204   : > { %2736 = vrot.lane.b32.xlu2 %v2726_v43, %s5761_s22  ;;  %v2151_v18 = vmul.f32 0.05103104, %v1542_v7  ;;  %v2279_v42 = vpack.c.bf16 %v1542_v7, %v1542_v7 }
 0x206   : > { %v2215_v16 = vpack.c.bf16 %v2151_v18, %v2151_v18  ;;  %v6716_v19 = vunpack.c.l.b16 %v2279_v42  ;;  %v5370_v42 = vld [vmem:[%s8486_s1 + $0xd4] sm:$0xf] }
 0x208   : > { %v2714_v8 = vunpack.c.l.b16 %v2215_v16  ;;  %v4989_v16 = vld [vmem:[%s5840_s21 + $0x2c4] sm:$0xf0] }
 0x209   : > { %v1543_v61 = vpop.f32.mrf.mxu2  ;;  %v6710_v17 = vpop.f32.mrf.mxu3 }
 0x20a   : > { %v1544_v53 = vadd.f32 %v1543_v61, %v1375_v26  ;;  %8705 = vst [vmem:[#allocation74_spill] sm:$0xff] %v6710_v17  ;;  %v1208_v25 = vpop.f32.mrf.mxu0  ;;  %v1377_v56 = vpop.f32.mrf.mxu1 }
 0x20b   : > { %2650 = vmatpush.bf16.xpose.msrb.mxu3 %v2620_v36  ;;  %v1378_v26 = vadd.f32 %v1377_v56, %v1208_v25  ;;  %v5336_v36 = vld [vmem:[%s5840_s21 + $0x2c0] sm:$0xf0]  ;;  %v5337_v25 = vld [vmem:[%s5840_s21 + $0x2c8] sm:$0xf0]  ;;  %v5335_v56 = vld [vmem:[%s5840_s21 + $0x2bc] sm:$0xf] }
 0x20c   : > { %v2152_v14 = vmul.f32 0.05103104, %v1544_v53  ;;  %v2280_v43 = vpack.c.bf16 %v1544_v53, %v1544_v53  ;;  %1247 = vmatmul.bf16.gmra.mxu0 %v4976_v62  ;;  %v5129_v53 = vld [vmem:[%s8486_s1 + $0xd8] sm:$0xf0] }
 0x20d   : > { %1416 = vmatmul.bf16.gmra.mxu1 %v6714_v28 }
 0x20e   : > { %v2216_v31 = vpack.c.bf16 %v2152_v14, %v2152_v14  ;;  %v6718_v5 = vunpack.c.l.b16 %v2280_v43  ;;  %1585 = vmatmul.bf16.gmra.mxu2 %v6712_v24  ;;  %1754 = vmatmul.bf16.gmra.mxu3 %v4976_v62  ;;  %v4995_v62 = vld [vmem:[%s5840_s21 + $0x2c0] sm:$0xf]  ;;  %v5132_v14 = vor.u32 %v5370_v42, %v5129_v53  ;;  %v5368_v42 = vld [vmem:[%s8486_s1 + $0xc4] sm:$0xf]  ;;  %v5121_v53 = vld [vmem:[%s8486_s1 + $0xc8] sm:$0xf0] }
 0x20f   : > { %v6745_v7 = vor.u32 %v5337_v25, %v4995_v62  ;;  %v5384_v62 = vld [vmem:[%s8486_s1 + $0x144] sm:$0xf]  ;;  %v5185_v25 = vld [vmem:[%s8486_s1 + $0x148] sm:$0xf0] }
 0x210   : > { %v2715_v18 = vunpack.c.l.b16 %v2216_v31  ;;  %v5386_v31 = vld [vmem:[%s8486_s1 + $0x154] sm:$0xf]  ;;  %1777 = vmatpush.bf16.msrb.mxu0 %v5132_v14 }
 0x211   : > { %v1546_v47 = vpop.f32.mrf.mxu2  ;;  %v6724_v46 = vpop.f32.mrf.mxu3  ;;  %8709 = vst [vmem:[#allocation78_spill] sm:$0xff] %v6745_v7 }
 0x212   : > { %8708 = vst [vmem:[#allocation77_spill] sm:$0xff] %v6724_v46  ;;  %v1210_v55 = vpop.f32.mrf.mxu0  ;;  %v2727_v60 = vpack.c.b16 %v2715_v18, %v2714_v8  ;;  %v1547_v4 = vadd.f32 %v1546_v47, %v1378_v26  ;;  %v1379_v61 = vpop.f32.mrf.mxu1  ;;  %v5193_v26 = vld [vmem:[%s8486_s1 + $0x158] sm:$0xf0] }
 0x213   : > { %v1380_v8 = vadd.f32 %v1379_v61, %v1210_v55  ;;  %v5196_v18 = vor.u32 %v5386_v31, %v5193_v26  ;;  %v6755_v55 = vor.u32 %v5335_v56, %v4989_v16  ;;  %v5124_v61 = vor.u32 %v5368_v42, %v5121_v53  ;;  %v5366_v56 = vld [vmem:[%s8486_s1 + $0xb4] sm:$0xf] }
 0x214   : > { %2738 = vrot.lane.b32.xlu1 %v2727_v60, %s5761_s22  ;;  %v2153_v43 = vmul.f32 0.05103104, %v1547_v4  ;;  %v4988_v60 = vor.u32 %v5336_v36, %v4987_v54  ;;  %v2281_v24 = vpack.c.bf16 %v1547_v4, %v1547_v4  ;;  %v5188_v31 = vor.u32 %v5384_v62, %v5185_v25 }
 0x215   : > { %8711 = vst [vmem:[#allocation80_spill] sm:$0xff] %v6755_v55  ;;  %1946 = vmatpush.bf16.msrb.mxu1 %v5196_v18  ;;  %1778 = vmatpush.bf16.msrb.mxu0 %v5124_v61 }
 0x216   : > { %v2217_v54 = vpack.c.bf16 %v2153_v43, %v2153_v43  ;;  %v6766_v16 = vunpack.c.l.b16 %v2281_v24  ;;  %v5382_v24 = vld [vmem:[%s8486_s1 + $0x134] sm:$0xf] }
 0x219   : > { %v1548_v47 = vpop.f32.mrf.mxu2  ;;  %v6753_v46 = vpop.f32.mrf.mxu3  ;;  %1947 = vmatpush.bf16.msrb.mxu1 %v5188_v31 }
 0x21a   : > { %v1549_v28 = vadd.f32 %v1548_v47, %v1380_v8  ;;  %8710 = vst [vmem:[#allocation79_spill] sm:$0xff] %v6753_v46  ;;  %v1213_v17 = vpop.f32.mrf.mxu0  ;;  %v1382_v36 = vpop.f32.mrf.mxu1  ;;  %v2716_v8 = vunpack.c.l.b16 %v2217_v54  ;;  %v5177_v47 = vld [vmem:[%s8486_s1 + $0x138] sm:$0xf0]  ;;  %v5105_v54 = vld [vmem:[%s8486_s1 + $0xa8] sm:$0xf0] }
 0x21b   : > { %v1383_v53 = vadd.f32 %v1382_v36, %v1213_v17  ;;  %v5180_v61 = vor.u32 %v5382_v24, %v5177_v47  ;;  %v5339_v47 = vld [vmem:[%s5840_s21 + $0x2d8] sm:$0xf0] }
 0x21c   : > { %v2154_v14 = vmul.f32 0.05103104, %v1549_v28  ;;  %v2282_v4 = vpack.c.bf16 %v1549_v28, %v1549_v28  ;;  %1252 = vmatmul.bf16.gmra.mxu0 %v4988_v60  ;;  %v5113_v28 = vld [vmem:[%s8486_s1 + $0xb8] sm:$0xf0] }
 0x21d   : > { %1421 = vmatmul.bf16.gmra.mxu1 %v6755_v55  ;;  %v5116_v18 = vor.u32 %v5366_v56, %v5113_v28  ;;  %v5380_v56 = vld [vmem:[%s8486_s1 + $0x124] sm:$0xf] }
 0x21e   : > { %v2218_v43 = vpack.c.bf16 %v2154_v14, %v2154_v14  ;;  %v6768_v26 = vunpack.c.l.b16 %v2282_v4  ;;  %1590 = vmatmul.bf16.gmra.mxu2 %v6745_v7  ;;  %1759 = vmatmul.bf16.gmra.mxu3 %v4988_v60  ;;  %v5364_v60 = vld [vmem:[%s8486_s1 + $0xa4] sm:$0xf] }
 0x21f   : > { %1779 = vmatpush.bf16.msrb.mxu0 %v5116_v18  ;;  %v5108_v36 = vor.u32 %v5364_v60, %v5105_v54  ;;  %1948 = vmatpush.bf16.msrb.mxu1 %v5180_v61  ;;  %v4999_v18 = vld [vmem:[%s5840_s21 + $0x2d0] sm:$0xf]  ;;  %v5007_v61 = vld [vmem:[%s5840_s21 + $0x2d8] sm:$0xf]  ;;  %v5340_v60 = vld [vmem:[%s5840_s21 + $0x2e0] sm:$0xf0] }
 0x220   : > { %v2717_v42 = vunpack.c.l.b16 %v2218_v43  ;;  %v5169_v43 = vld [vmem:[%s8486_s1 + $0x128] sm:$0xf0]  ;;  %v5338_v54 = vld [vmem:[%s5840_s21 + $0x2d4] sm:$0xf]  ;;  %v5000_v46 = vor.u32 %v5339_v47, %v4999_v18  ;;  %v6829_v45 = vor.u32 %v5340_v60, %v5007_v61  ;;  %v5376_v18 = vld [vmem:[%s8486_s1 + $0x104] sm:$0xf] }
 0x221   : > { %v1551_v25 = vpop.f32.mrf.mxu2  ;;  %v6789_v14 = vpop.f32.mrf.mxu3  ;;  %v5172_v24 = vor.u32 %v5380_v56, %v5169_v43  ;;  %v5153_v47 = vld [vmem:[%s8486_s1 + $0x108] sm:$0xf0] }
 0x222   : > { %8712 = vst [vmem:[#allocation81_spill] sm:$0xff] %v6789_v14  ;;  %v1215_v17 = vpop.f32.mrf.mxu0  ;;  %v2728_v4 = vpack.c.b16 %v2717_v42, %v2716_v8  ;;  %v1384_v31 = vpop.f32.mrf.mxu1  ;;  %v6797_v28 = vadd.f32 %v1551_v25, %v1383_v53  ;;  %v5362_v8 = vld [vmem:[%s8486_s1 + $0x94] sm:$0xf]  ;;  %v5097_v42 = vld [vmem:[%s8486_s1 + $0x98] sm:$0xf0] }
 0x223   : > { %1780 = vmatpush.bf16.msrb.mxu0 %v5108_v36  ;;  %v5100_v62 = vor.u32 %v5362_v8, %v5097_v42  ;;  %v5001_v53 = vld [vmem:[%s5840_s21 + $0x2dc] sm:$0xf0]  ;;  %1949 = vmatpush.bf16.msrb.mxu1 %v5172_v24  ;;  %v5378_v25 = vld [vmem:[%s8486_s1 + $0x114] sm:$0xf]  ;;  %v5161_v36 = vld [vmem:[%s8486_s1 + $0x118] sm:$0xf0]  ;;  %v1385_v56 = vadd.f32 %v1384_v31, %v1215_v17 }
 0x224   : > { %2740 = vrot.lane.b32.xlu0 %v2728_v4, %s5761_s22  ;;  %v2155_v4 = vmul.f32 0.05103104, %v6797_v28  ;;  %v5164_v43 = vor.u32 %v5378_v25, %v5161_v36  ;;  %v5360_v8 = vld [vmem:[%s8486_s1 + $0x84] sm:$0xf]  ;;  %v5089_v24 = vld [vmem:[%s8486_s1 + $0x88] sm:$0xf0]  ;;  %v6831_v17 = vor.u32 %v5338_v54, %v5001_v53  ;;  %v5156_v36 = vor.u32 %v5376_v18, %v5153_v47 }
 0x225   : > { %8714 = vst [vmem:[#allocation83_spill] sm:$0xff] %v6829_v45  ;;  %v5011_v47 = vld [vmem:[%s5840_s21 + $0x2e8] sm:$0xf] }
 0x226   : > { %8715 = vst [vmem:[#allocation84_spill] sm:$0xff] %v6831_v17 }
 0x227   : > { %1781 = vmatpush.bf16.msrb.mxu0 %v5100_v62  ;;  %1950 = vmatpush.bf16.msrb.mxu1 %v5164_v43  ;;  %v5092_v62 = vor.u32 %v5360_v8, %v5089_v24 }
 0x229   : > { %v1553_v14 = vpop.f32.mrf.mxu2  ;;  %v6827_v7 = vpop.f32.mrf.mxu3 }
 0x22a   : > { %v6825_v42 = vadd.f32 %v1553_v14, %v1385_v56  ;;  %8713 = vst [vmem:[#allocation82_spill] sm:$0xff] %v6827_v7  ;;  %v1218_v55 = vpop.f32.mrf.mxu0  ;;  %v1387_v31 = vpop.f32.mrf.mxu1  ;;  %v2219_v14 = vpack.c.bf16 %v2155_v4, %v2155_v4  ;;  %v5341_v7 = vld [vmem:[%s5840_s21 + $0x2ec] sm:$0xf] }
 0x22b   : > { %1782 = vmatpush.bf16.msrb.mxu0 %v5092_v62  ;;  %v1388_v53 = vadd.f32 %v1387_v31, %v1218_v55  ;;  %1951 = vmatpush.bf16.msrb.mxu1 %v5156_v36  ;;  %v5343_v62 = vld [vmem:[%s5840_s21 + $0x2f8] sm:$0xf0] }
 0x22c   : > { %v2156_v25 = vmul.f32 0.05103104, %v6825_v42  ;;  %1257 = vmatmul.bf16.gmra.mxu0 %v5000_v46  ;;  %v2718_v60 = vunpack.c.l.b16 %v2219_v14  ;;  %v5013_v14 = vld [vmem:[%s5840_s21 + $0x2f4] sm:$0xf0] }
 0x22d   : > { %1426 = vmatmul.bf16.gmra.mxu1 %v6831_v17 }
 0x22e   : > { %v2220_v61 = vpack.c.bf16 %v2156_v25, %v2156_v25  ;;  %1595 = vmatmul.bf16.gmra.mxu2 %v6829_v45  ;;  %1764 = vmatmul.bf16.gmra.mxu3 %v5000_v46  ;;  %v5342_v46 = vld [vmem:[%s5840_s21 + $0x2f0] sm:$0xf0]  ;;  %v5019_v25 = vld [vmem:[%s5840_s21 + $0x2f0] sm:$0xf]  ;;  %s4634_s21 = sshll.u32 %s4626_s13, 2 }
 0x22f   : > { %v5012_v36 = vor.u32 %v5342_v46, %v5011_v47  ;;  %p165_p6 = scmp.lt.s32.totalorder %s4634_s21, 7 }
 0x230   : > { %v2719_v54 = vunpack.c.l.b16 %v2220_v61 }
 0x231   : > { %v1556_v4 = vpop.f32.mrf.mxu2  ;;  %v6842_v56 = vpop.f32.mrf.mxu3  ;;  %s9024_s21 = smov (!%p165_p6, %s4634_s21), 7 }
 0x232   : > { %8716 = vst [vmem:[#allocation85_spill] sm:$0xff] %v6842_v56  ;;  %v1220_v43 = vpop.f32.mrf.mxu0  ;;  %v2729_v8 = vpack.c.b16 %v2719_v54, %v2718_v60  ;;  %v1389_v24 = vpop.f32.mrf.mxu1  ;;  %v6844_v18 = vadd.f32 %v1556_v4, %v1388_v53  ;;  %v6856_v54 = vor.u32 %v5343_v62, %v5019_v25  ;;  %v6858_v53 = vor.u32 %v5341_v7, %v5013_v14  ;;  %s5247_s12 = sshll.u32 %s9024_s21, 7 }
 0x233   : > { %v1390_v55 = vadd.f32 %v1389_v24, %v1220_v43  ;;  %s8193_s29 = scalar_lea.vmem %s8487_s2, %s5247_s12 }
 0x234   : > { %2742 = vrot.lane.b32.xlu1 %v2729_v8, %s5761_s22  ;;  %v2157_v61 = vmul.f32 0.05103104, %v6844_v18  ;;  %8718 = vst [vmem:[#allocation87_spill] sm:$0xff] %v6856_v54 }
 0x235   : > { %8719 = vst [vmem:[#allocation88_spill] sm:$0xff] %v6858_v53 }
 0x236   : > { %v2221_v8 = vpack.c.bf16 %v2157_v61, %v2157_v61  ;;  %v2346_v61 = vpop.permute.xlu0 %2345 }
 0x238   : > { %v2720_v43 = vunpack.c.l.b16 %v2221_v8 }
 0x239   : > { %v1558_v31 = vpop.f32.mrf.mxu2  ;;  %v6854_v56 = vpop.f32.mrf.mxu3 }
 0x23a   : > { %v1559_v45 = vadd.f32 %v1558_v31, %v1390_v55  ;;  %8717 = vst [vmem:[#allocation86_spill] sm:$0xff] %v6854_v56  ;;  %v1223_v60 = vpop.f32.mrf.mxu0  ;;  %v1392_v4 = vpop.f32.mrf.mxu1 }
 0x23b   : > { %v1393_v47 = vadd.f32 %v1392_v4, %v1223_v60 }
 0x23c   : > { %v2158_v17 = vmul.f32 0.05103104, %v1559_v45  ;;  %1262 = vmatmul.bf16.gmra.mxu0 %v5012_v36 }
 0x23d   : > { %1431 = vmatmul.bf16.gmra.mxu1 %v6858_v53 }
 0x23e   : > { %v2222_v63 = vpack.c.bf16 %v2158_v17, %v2158_v17  ;;  %1600 = vmatmul.bf16.gmra.mxu2 %v6856_v54  ;;  %1769 = vmatmul.bf16.gmra.mxu3 %v5012_v36 }
 0x240   : > { %v2721_v24 = vunpack.c.l.b16 %v2222_v63 }
 0x241   : > { %v1561_v46 = vpop.f32.mrf.mxu2  ;;  %v6862_v55 = vpop.f32.mrf.mxu3 }
 0x242   : > { %8720 = vst [vmem:[#allocation89_spill] sm:$0xff] %v6862_v55  ;;  %v1225_v25 = vpop.f32.mrf.mxu0  ;;  %v2730_v62 = vpack.c.b16 %v2721_v24, %v2720_v43  ;;  %v1394_v7 = vpop.f32.mrf.mxu1  ;;  %v1562_v14 = vadd.f32 %v1561_v46, %v1393_v47  ;;  %v2286_v24 = vpack.c.bf16 %v1559_v45, %v1559_v45  ;;  %v8781_v55 = vld [vmem:[#allocation26_spill] sm:$0xff] }
 0x243   : > { %v1395_v17 = vadd.f32 %v1394_v7, %v1225_v25  ;;  %v2540_v43 = vpop.permute.xlu0 %2539 }
 0x244   : > { %2744 = vrot.lane.b32.xlu1 %v2730_v62, %s5761_s22  ;;  %v2159_v31 = vmul.f32 0.05103104, %v1562_v14  ;;  %v2287_v54 = vpack.c.bf16 %v1562_v14, %v1562_v14 }
 0x246   : > { %v2223_v60 = vpack.c.bf16 %v2159_v31, %v2159_v31  ;;  %v2778_v47 = vunpack.c.l.b16 %v2287_v54 }
 0x248   : > { %v2722_v25 = vunpack.c.l.b16 %v2223_v60  ;;  %v2284_v60 = vpack.c.bf16 %v6825_v42, %v6825_v42 }
 0x249   : > { %v1563_v56 = vpop.f32.mrf.mxu2  ;;  %v6865_v53 = vpop.f32.mrf.mxu3 }
 0x24a   : > { %v1564_v23 = vadd.f32 %v1563_v56, %v1395_v17  ;;  %8721 = vst [vmem:[#allocation90_spill] sm:$0xff] %v6865_v53  ;;  %v1228_v36 = vpop.f32.mrf.mxu0  ;;  %v1397_v63 = vpop.f32.mrf.mxu1  ;;  %v2285_v56 = vpack.c.bf16 %v6844_v18, %v6844_v18 }
 0x24b   : > { %v1398_v14 = vadd.f32 %v1397_v63, %v1228_v36  ;;  %v2348_v18 = vpop.permute.xlu1 %2347  ;;  %v2283_v63 = vpack.c.bf16 %v6797_v28, %v6797_v28 }
 0x24c   : > { %v2160_v4 = vmul.f32 0.05103104, %v1564_v23  ;;  %v2288_v8 = vpack.c.bf16 %v1564_v23, %v1564_v23  ;;  %1783 = vmatmul.bf16.vlgmr.msrb.gmra.mxu0 %v6044_v39  ;;  %v2777_v39 = vunpack.c.l.b16 %v2286_v24 }
 0x24d   : > { %1952 = vmatmul.bf16.vlgmr.msrb.gmra.mxu1 %v6046_v40  ;;  %v2776_v40 = vunpack.c.l.b16 %v2285_v56 }
 0x24e   : > { %v2224_v46 = vpack.c.bf16 %v2160_v4, %v2160_v4  ;;  %v2779_v62 = vunpack.c.l.b16 %v2288_v8  ;;  %5213 = vmatmul.msk.bf16.vlgmr.msrb.gmra.mxu2 %vm2401_vm0, %v2346_v61  ;;  %5221 = vmatmul.msk.bf16.vlgmr.msrb.gmra.mxu3 %vm2401_vm0, %v2540_v43 }
 0x24f   : > { %v2786_v36 = vpack.c.b16 %v2777_v39, %v2776_v40 }
 0x250   : > { %v2723_v7 = vunpack.c.l.b16 %v2224_v46  ;;  %v2787_v23 = vpack.c.b16 %v2779_v62, %v2778_v47  ;;  %v2775_v46 = vunpack.c.l.b16 %v2284_v60 }
 0x251   : > { %v1566_v31 = vpop.f32.mrf.mxu2  ;;  %v6873_v17 = vpop.f32.mrf.mxu3 }
 0x252   : > { %8722 = vst [vmem:[#allocation91_spill] sm:$0xff] %v6873_v17  ;;  %v1230_v45 = vpop.f32.mrf.mxu0  ;;  %v2834_v54 = vsel %vm2401_vm0, %v2787_v23, 0  ;;  %v2731_v4 = vpack.c.b16 %v2723_v7, %v2722_v25  ;;  %v1399_v61 = vpop.f32.mrf.mxu1  ;;  %v1567_v8 = vadd.f32 %v1566_v31, %v1398_v14  ;;  %v2831_v14 = vsel %vm2401_vm0, %v2786_v36, 0 }
 0x253   : > { %2836 = vmatpush.bf16.xpose.msra.mxu2 %v2834_v54  ;;  %v1400_v24 = vadd.f32 %v1399_v61, %v1230_v45  ;;  %v2774_v31 = vunpack.c.l.b16 %v2283_v63  ;;  %v2542_v28 = vpop.permute.xlu1 %2541 }
 0x254   : > { %2746 = vrot.lane.b32.xlu2 %v2731_v4, %s5761_s22  ;;  %v2161_v43 = vmul.f32 0.05103104, %v1567_v8  ;;  %v2289_v62 = vpack.c.bf16 %v1567_v8, %v1567_v8 }
 0x255   : > { %v2785_v40 = vpack.c.b16 %v2775_v46, %v2774_v31 }
 0x256   : > { %v2225_v54 = vpack.c.bf16 %v2161_v43, %v2161_v43  ;;  %v6885_v4 = vunpack.c.l.b16 %v2289_v62 }
 0x257   : > { %v2828_v62 = vsel %vm2401_vm0, %v2785_v40, 0 }
 0x258   : > { %v2901_v8 = vunpack.c.l.b16 %v2225_v54 }
 0x259   : > { %v1568_v47 = vpop.f32.mrf.mxu2  ;;  %v6881_v7 = vpop.f32.mrf.mxu3 }
 0x25a   : > { %v1569_v25 = vadd.f32 %v1568_v47, %v1400_v24  ;;  %8723 = vst [vmem:[#allocation92_spill] sm:$0xff] %v6881_v7  ;;  %v1233_v56 = vpop.f32.mrf.mxu0  ;;  %v1402_v23 = vpop.f32.mrf.mxu1 }
 0x25b   : > { %2837 = vmatpush.bf16.xpose.msra.mxu2 %v2831_v14  ;;  %v1403_v36 = vadd.f32 %v1402_v23, %v1233_v56 }
 0x25c   : > { %v2162_v42 = vmul.f32 0.05103104, %v1569_v25  ;;  %v2290_v39 = vpack.c.bf16 %v1569_v25, %v1569_v25  ;;  %1788 = vmatmul.bf16.gmra.mxu0 %v6056_v48 }
 0x25d   : > { %1957 = vmatmul.bf16.gmra.mxu1 %v6058_v49  ;;  %v2350_v49 = vpop.permute.xlu2 %2349 }
 0x25e   : > { %v2226_v45 = vpack.c.bf16 %v2162_v42, %v2162_v42  ;;  %v6887_v61 = vunpack.c.l.b16 %v2290_v39  ;;  %5214 = vmatmul.msk.bf16.gmra.mxu2 %vm2401_vm0, %v2348_v18  ;;  %5222 = vmatmul.msk.bf16.gmra.mxu3 %vm2401_vm0, %v2542_v28  ;;  %v8726_v39 = vpack.c.b16 %v6768_v26, %v6766_v16 }
 0x260   : > { %v2902_v60 = vunpack.c.l.b16 %v2226_v45  ;;  %v2825_v28 = vsel %vm2401_vm0, %v8726_v39, 0 }
 0x261   : > { %v1571_v48 = vpop.f32.mrf.mxu2  ;;  %v6894_v43 = vpop.f32.mrf.mxu3 }
 0x262   : > { %8724 = vst [vmem:[#allocation93_spill] sm:$0xff] %v6894_v43  ;;  %v1235_v24 = vpop.f32.mrf.mxu0  ;;  %v2917_v47 = vpack.c.b16 %v2902_v60, %v2901_v8  ;;  %v1404_v25 = vpop.f32.mrf.mxu1  ;;  %v1572_v18 = vadd.f32 %v1571_v48, %v1403_v36  ;;  %v8772_v43 = vld [vmem:[#allocation22_spill] sm:$0xff] }
 0x263   : > { %2838 = vmatpush.bf16.xpose.msra.mxu2 %v2828_v62  ;;  %v1405_v14 = vadd.f32 %v1404_v25, %v1235_v24 }
 0x264   : > { %2925 = vrot.lane.b32.xlu2 %v2917_v47, %s5761_s22  ;;  %v2163_v46 = vmul.f32 0.05103104, %v1572_v18  ;;  %v2291_v56 = vpack.c.bf16 %v1572_v18, %v1572_v18 }
 0x265   : > { %v2544_v36 = vpop.permute.xlu2 %2543 }
 0x266   : > { %v2227_v40 = vpack.c.bf16 %v2163_v46, %v2163_v46  ;;  %v6905_v48 = vunpack.c.l.b16 %v2291_v56 }
 0x268   : > { %v2903_v16 = vunpack.c.l.b16 %v2227_v40 }
 0x269   : > { %v1573_v31 = vpop.f32.mrf.mxu2  ;;  %v6898_v54 = vpop.f32.mrf.mxu3 }
 0x26a   : > { %v1574_v23 = vadd.f32 %v1573_v31, %v1405_v14  ;;  %8725 = vst [vmem:[#allocation94_spill] sm:$0xff] %v6898_v54  ;;  %v1238_v42 = vpop.f32.mrf.mxu0  ;;  %v1407_v45 = vpop.f32.mrf.mxu1  ;;  %v8728_v14 = vpack.c.b16 %v6718_v5, %v6716_v19 }
 0x26b   : > { %2839 = vmatpush.bf16.xpose.msra.mxu2 %v2825_v28  ;;  %v1408_v62 = vadd.f32 %v1407_v45, %v1238_v42 }
 0x26c   : > { %v2164_v8 = vmul.f32 0.05103104, %v1574_v23  ;;  %v2292_v60 = vpack.c.bf16 %v1574_v23, %v1574_v23  ;;  %1793 = vmatmul.bf16.gmra.mxu0 %v6068_v57  ;;  %v2822_v31 = vsel %vm2401_vm0, %v8728_v14, 0 }
 0x26d   : > { %1962 = vmatmul.bf16.gmra.mxu1 %v6070_v58 }
 0x26e   : > { %v2228_v24 = vpack.c.bf16 %v2164_v8, %v2164_v8  ;;  %v6907_v47 = vunpack.c.l.b16 %v2292_v60  ;;  %5215 = vmatmul.msk.bf16.gmra.mxu2 %vm2401_vm0, %v2350_v49  ;;  %5223 = vmatmul.msk.bf16.gmra.mxu3 %vm2401_vm0, %v2544_v36  ;;  %v8730_v60 = vpack.c.b16 %v6675_v13, %v6673_v15  ;;  %v2352_v36 = vpop.permute.xlu0 %2351 }
 0x270   : > { %v2904_v26 = vunpack.c.l.b16 %v2228_v24  ;;  %v2819_v19 = vsel %vm2401_vm0, %v8730_v60, 0 }
 0x271   : > { %v1576_v18 = vpop.f32.mrf.mxu2  ;;  %v6914_v57 = vpop.f32.mrf.mxu3 }
 0x272   : > { %8727 = vst [vmem:[#allocation95_spill] sm:$0xff] %v6914_v57  ;;  %v1240_v46 = vpop.f32.mrf.mxu0  ;;  %v2918_v49 = vpack.c.b16 %v2904_v26, %v2903_v16  ;;  %v1409_v56 = vpop.f32.mrf.mxu1  ;;  %v1577_v58 = vadd.f32 %v1576_v18, %v1408_v62 }
 0x273   : > { %2840 = vmatpush.bf16.xpose.msra.mxu2 %v2822_v31  ;;  %v1410_v42 = vadd.f32 %v1409_v56, %v1240_v46  ;;  %v2546_v62 = vpop.permute.xlu1 %2545 }
 0x274   : > { %2927 = vrot.lane.b32.xlu1 %v2918_v49, %s5761_s22  ;;  %v2165_v23 = vmul.f32 0.05103104, %v1577_v58  ;;  %v2293_v28 = vpack.c.bf16 %v1577_v58, %v1577_v58 }
 0x276   : > { %v2229_v24 = vpack.c.bf16 %v2165_v23, %v2165_v23  ;;  %v6928_v18 = vunpack.c.l.b16 %v2293_v28 }
 0x278   : > { %v2905_v15 = vunpack.c.l.b16 %v2229_v24 }
 0x279   : > { %v1578_v39 = vpop.f32.mrf.mxu2  ;;  %v6921_v40 = vpop.f32.mrf.mxu3 }
 0x27a   : > { %v1579_v45 = vadd.f32 %v1578_v39, %v1410_v42  ;;  %8729 = vst [vmem:[#allocation96_spill] sm:$0xff] %v6921_v40  ;;  %v1243_v8 = vpop.f32.mrf.mxu0  ;;  %v1412_v5 = vpop.f32.mrf.mxu1  ;;  %v8732_v42 = vpack.c.b16 %v6644_v10, %v6642_v35  ;;  %v8734_v35 = vpack.c.b16 %v6616_v27, %v6614_v6 }
 0x27b   : > { %2841 = vmatpush.bf16.xpose.msra.mxu2 %v2819_v19  ;;  %v1413_v31 = vadd.f32 %v1412_v5, %v1243_v8 }
 0x27c   : > { %v2166_v16 = vmul.f32 0.05103104, %v1579_v45  ;;  %v2294_v26 = vpack.c.bf16 %v1579_v45, %v1579_v45  ;;  %1798 = vmatmul.bf16.gmra.mxu0 %v6080_v2  ;;  %v2816_v39 = vsel %vm2401_vm0, %v8732_v42, 0  ;;  %v6944_v45 = vpop.permute.xlu0 %2357  ;;  %v2813_v10 = vsel %vm2401_vm0, %v8734_v35, 0 }
 0x27d   : > { %1967 = vmatmul.bf16.gmra.mxu1 %v6082_v3 }
 0x27e   : > { %v2230_v46 = vpack.c.bf16 %v2166_v16, %v2166_v16  ;;  %v6930_v14 = vunpack.c.l.b16 %v2294_v26  ;;  %5216 = vmatmul.msk.bf16.gmra.mxu2 %vm2401_vm0, %v2352_v36  ;;  %5224 = vmatmul.msk.bf16.gmra.mxu3 %vm2401_vm0, %v2546_v62  ;;  %v2354_v62 = vpop.permute.xlu2 %2353 }
 0x280   : > { %v2906_v13 = vunpack.c.l.b16 %v2230_v46 }
 0x281   : > { %v1581_v56 = vpop.f32.mrf.mxu2  ;;  %v6937_v2 = vpop.f32.mrf.mxu3 }
 0x282   : > { %8731 = vst [vmem:[#allocation97_spill] sm:$0xff] %v6937_v2  ;;  %v1245_v58 = vpop.f32.mrf.mxu0  ;;  %v2919_v23 = vpack.c.b16 %v2906_v13, %v2905_v15  ;;  %v1414_v28 = vpop.f32.mrf.mxu1  ;;  %v1582_v3 = vadd.f32 %v1581_v56, %v1413_v31 }
 0x283   : > { %2842 = vmatpush.bf16.xpose.msra.mxu2 %v2816_v39  ;;  %v1415_v60 = vadd.f32 %v1414_v28, %v1245_v58 }
 0x284   : > { %2929 = vrot.lane.b32.xlu0 %v2919_v23, %s5761_s22  ;;  %v2167_v8 = vmul.f32 0.05103104, %v1582_v3  ;;  %v2295_v5 = vpack.c.bf16 %v1582_v3, %v1582_v3  ;;  %v2548_v31 = vpop.permute.xlu0 %2547 }
 0x286   : > { %v2231_v46 = vpack.c.bf16 %v2167_v8, %v2167_v8  ;;  %v6953_v56 = vunpack.c.l.b16 %v2295_v5  ;;  %v6965_v5 = vpop.permute.xlu2 %2359 }
 0x288   : > { %v2907_v6 = vunpack.c.l.b16 %v2231_v46 }
 0x289   : > { %v1583_v19 = vpop.f32.mrf.mxu2  ;;  %v6946_v24 = vpop.f32.mrf.mxu3 }
 0x28a   : > { %v1584_v36 = vadd.f32 %v1583_v19, %v1415_v60  ;;  %8733 = vst [vmem:[#allocation98_spill] sm:$0xff] %v6946_v24  ;;  %v1248_v16 = vpop.f32.mrf.mxu0  ;;  %v1417_v26 = vpop.f32.mrf.mxu1 }
 0x28b   : > { %2843 = vmatpush.bf16.xpose.msra.mxu2 %v2813_v10  ;;  %v1418_v42 = vadd.f32 %v1417_v26, %v1248_v16 }
 0x28c   : > { %v2168_v15 = vmul.f32 0.05103104, %v1584_v36  ;;  %v2296_v13 = vpack.c.bf16 %v1584_v36, %v1584_v36  ;;  %1803 = vmatmul.bf16.gmra.mxu0 %v6092_v11 }
 0x28d   : > { %1972 = vmatmul.bf16.gmra.mxu1 %v6094_v12 }
 0x28e   : > { %v2232_v58 = vpack.c.bf16 %v2168_v15, %v2168_v15  ;;  %v6955_v23 = vunpack.c.l.b16 %v2296_v13  ;;  %5217 = vmatmul.msk.bf16.gmra.mxu2 %vm2401_vm0, %v2354_v62  ;;  %5225 = vmatmul.msk.bf16.gmra.mxu3 %vm2401_vm0, %v2548_v31 }
 0x290   : > { %v2908_v27 = vunpack.c.l.b16 %v2232_v58  ;;  %v2356_v58 = vpop.permute.xlu1 %2355 }
 0x291   : > { %v1586_v28 = vpop.f32.mrf.mxu2  ;;  %v6962_v11 = vpop.f32.mrf.mxu3 }
 0x292   : > { %8735 = vst [vmem:[#allocation99_spill] sm:$0xff] %v6962_v11  ;;  %v1250_v3 = vpop.f32.mrf.mxu0  ;;  %v2920_v8 = vpack.c.b16 %v2908_v27, %v2907_v6  ;;  %v1419_v60 = vpop.f32.mrf.mxu1  ;;  %v1587_v19 = vadd.f32 %v1586_v28, %v1418_v42  ;;  %v8762_v11 = vld [vmem:[#allocation18_spill] sm:$0xff] }
 0x293   : > { %v1420_v36 = vadd.f32 %v1419_v60, %v1250_v3  ;;  %v2550_v6 = vpop.permute.xlu2 %2549 }
 0x294   : > { %2931 = vrot.lane.b32.xlu2 %v2920_v8, %s5761_s22  ;;  %v2169_v12 = vmul.f32 0.05103104, %v1587_v19  ;;  %v2297_v10 = vpack.c.bf16 %v1587_v19, %v1587_v19 }
 0x296   : > { %v2233_v15 = vpack.c.bf16 %v2169_v12, %v2169_v12  ;;  %v6970_v27 = vunpack.c.l.b16 %v2297_v10 }
 0x298   : > { %v2909_v3 = vunpack.c.l.b16 %v2233_v15 }
 0x299   : > { %v1588_v35 = vpop.f32.mrf.mxu2  ;;  %v6967_v16 = vpop.f32.mrf.mxu3 }
 0x29a   : > { %v1589_v62 = vadd.f32 %v1588_v35, %v1420_v36  ;;  %8736 = vst [vmem:[#allocation100_spill] sm:$0xff] %v6967_v16  ;;  %v1253_v26 = vpop.f32.mrf.mxu0  ;;  %v1422_v46 = vpop.f32.mrf.mxu1 }
 0x29b   : > { %v1423_v60 = vadd.f32 %v1422_v46, %v1253_v26 }
 0x29c   : > { %v2170_v13 = vmul.f32 0.05103104, %v1589_v62  ;;  %v2298_v31 = vpack.c.bf16 %v1589_v62, %v1589_v62  ;;  %1808 = vmatmul.bf16.gmra.mxu0 %v6104_v20 }
 0x29d   : > { %1977 = vmatmul.bf16.gmra.mxu1 %v6106_v21 }
 0x29e   : > { %v2234_v42 = vpack.c.bf16 %v2170_v13, %v2170_v13  ;;  %v6972_v28 = vunpack.c.l.b16 %v2298_v31  ;;  %5218 = vmatmul.msk.bf16.gmra.mxu2 %vm2401_vm0, %v2356_v58  ;;  %5226 = vmatmul.msk.bf16.gmra.mxu3 %vm2401_vm0, %v2550_v6 }
 0x2a0   : > { %v2910_v8 = vunpack.c.l.b16 %v2234_v42 }
 0x2a1   : > { %v1591_v12 = vpop.f32.mrf.mxu2  ;;  %v6979_v20 = vpop.f32.mrf.mxu3 }
 0x2a2   : > { %8737 = vst [vmem:[#allocation101_spill] sm:$0xff] %v6979_v20  ;;  %v1255_v36 = vpop.f32.mrf.mxu0  ;;  %v2921_v35 = vpack.c.b16 %v2910_v8, %v2909_v3  ;;  %v1424_v10 = vpop.f32.mrf.mxu1  ;;  %v6981_v62 = vadd.f32 %v1591_v12, %v1423_v60 }
 0x2a3   : > { %v1425_v13 = vadd.f32 %v1424_v10, %v1255_v36  ;;  %v2552_v3 = vpop.permute.xlu1 %2551 }
 0x2a4   : > { %2933 = vrot.lane.b32.xlu1 %v2921_v35, %s5761_s22  ;;  %v2171_v21 = vmul.f32 0.05103104, %v6981_v62 }
 0x2a6   : > { %v2235_v6 = vpack.c.bf16 %v2171_v21, %v2171_v21 }
 0x2a8   : > { %v2911_v60 = vunpack.c.l.b16 %v2235_v6 }
 0x2a9   : > { %v1593_v31 = vpop.f32.mrf.mxu2  ;;  %v6987_v26 = vpop.f32.mrf.mxu3 }
 0x2aa   : > { %v6985_v15 = vadd.f32 %v1593_v31, %v1425_v13  ;;  %8738 = vst [vmem:[#allocation102_spill] sm:$0xff] %v6987_v26  ;;  %v1258_v46 = vpop.f32.mrf.mxu0  ;;  %v1427_v58 = vpop.f32.mrf.mxu1 }
 0x2ab   : > { %v1428_v36 = vadd.f32 %v1427_v58, %v1258_v46  ;;  %v2554_v46 = vpop.permute.xlu0 %2553 }
 0x2ac   : > { %v2172_v42 = vmul.f32 0.05103104, %v6985_v15  ;;  %1813 = vmatmul.bf16.gmra.mxu0 %v6116_v29 }
 0x2ad   : > { %1982 = vmatmul.bf16.gmra.mxu1 %v6118_v30 }
 0x2ae   : > { %v2236_v8 = vpack.c.bf16 %v2172_v42, %v2172_v42  ;;  %5219 = vmatmul.msk.bf16.gmra.mxu2 %vm2401_vm0, %v6944_v45  ;;  %5227 = vmatmul.msk.bf16.gmra.mxu3 %vm2401_vm0, %v2552_v3 }
 0x2b0   : > { %v2912_v12 = vunpack.c.l.b16 %v2236_v8 }
 0x2b1   : > { %v1596_v35 = vpop.f32.mrf.mxu2  ;;  %v6995_v10 = vpop.f32.mrf.mxu3 }
 0x2b2   : > { %8739 = vst [vmem:[#allocation103_spill] sm:$0xff] %v6995_v10  ;;  %v1260_v21 = vpop.f32.mrf.mxu0  ;;  %v2922_v13 = vpack.c.b16 %v2912_v12, %v2911_v60  ;;  %v1429_v31 = vpop.f32.mrf.mxu1  ;;  %v1597_v63 = vadd.f32 %v1596_v35, %v1428_v36  ;;  %v8741_v60 = vld [vmem:[#allocation5_spill] sm:$0xff] }
 0x2b3   : > { %v1430_v42 = vadd.f32 %v1429_v31, %v1260_v21 }
 0x2b4   : > { %2935 = vrot.lane.b32.xlu2 %v2922_v13, %s5761_s22  ;;  %v2173_v29 = vmul.f32 0.05103104, %v1597_v63 }
 0x2b6   : > { %v2237_v6 = vpack.c.bf16 %v2173_v29, %v2173_v29 }
 0x2b8   : > { %v2913_v12 = vunpack.c.l.b16 %v2237_v6  ;;  %v8744_v6 = vld [vmem:[#allocation8_spill] sm:$0xff] }
 0x2b9   : > { %v1598_v25 = vpop.f32.mrf.mxu2  ;;  %v6998_v49 = vpop.f32.mrf.mxu3 }
 0x2ba   : > { %v1599_v45 = vadd.f32 %v1598_v25, %v1430_v42  ;;  %8740 = vst [vmem:[#allocation104_spill] sm:$0xff] %v6998_v49  ;;  %v1263_v30 = vpop.f32.mrf.mxu0  ;;  %v1432_v3 = vpop.f32.mrf.mxu1 }
 0x2bb   : > { %v1433_v25 = vadd.f32 %v1432_v3, %v1263_v30 }
 0x2bc   : > { %v2174_v8 = vmul.f32 0.05103104, %v1599_v45  ;;  %1818 = vmatmul.bf16.gmra.mxu0 %v6128_v38 }
 0x2bd   : > { %1987 = vmatmul.bf16.gmra.mxu1 %v8741_v60 }
 0x2be   : > { %v2238_v58 = vpack.c.bf16 %v2174_v8, %v2174_v8  ;;  %5220 = vmatmul.msk.bf16.gmra.mxu2 %vm2401_vm0, %v6965_v5  ;;  %5228 = vmatmul.msk.bf16.gmra.mxu3 %vm2401_vm0, %v2554_v46 }
 0x2c0   : > { %v2914_v36 = vunpack.c.l.b16 %v2238_v58 }
 0x2c1   : > { %v1601_v35 = vpop.f32.mrf.mxu2  ;;  %v7005_v21 = vpop.f32.mrf.mxu3 }
 0x2c2   : > { %8742 = vst [vmem:[#allocation5_spill] sm:$0xff] %v7005_v21  ;;  %v1265_v13 = vpop.f32.mrf.mxu0  ;;  %v2923_v31 = vpack.c.b16 %v2914_v36, %v2913_v12  ;;  %v1434_v29 = vpop.f32.mrf.mxu1  ;;  %v1602_v42 = vadd.f32 %v1601_v35, %v1433_v25  ;;  %v8745_v12 = vld [vmem:[#allocation6_spill] sm:$0xff]  ;;  %v2302_v25 = vpack.c.bf16 %v1599_v45, %v1599_v45 }
 0x2c3   : > { %v1435_v8 = vadd.f32 %v1434_v29, %v1265_v13  ;;  %v2733_v36 = vpop.permute.xlu1 %2732  ;;  %v8746_v29 = vld [vmem:[#allocation7_spill] sm:$0xff] }
 0x2c4   : > { %2937 = vrot.lane.b32.xlu0 %v2923_v31, %s5761_s22  ;;  %v2175_v38 = vmul.f32 0.05103104, %v1602_v42  ;;  %v2303_v5 = vpack.c.bf16 %v1602_v42, %v1602_v42 }
 0x2c6   : > { %v2239_v3 = vpack.c.bf16 %v2175_v38, %v2175_v38  ;;  %v2971_v35 = vunpack.c.l.b16 %v2303_v5  ;;  %v3078_v38 = vlaneseq  ;;  %v8747_v5 = vld [vmem:[#allocation9_spill] sm:$0xff] }
 0x2c8   : > { %v2915_v42 = vunpack.c.l.b16 %v2239_v3 }
 0x2c9   : > { %v1603_v39 = vpop.f32.mrf.mxu2  ;;  %v7008_v60 = vpop.f32.mrf.mxu3 }
 0x2ca   : > { %v1604_v19 = vadd.f32 %v1603_v39, %v1435_v8  ;;  %8743 = vst [vmem:[#allocation105_spill] sm:$0xff] %v7008_v60  ;;  %v1784_v46 = vpop.f32.mrf.mxu0  ;;  %v1953_v30 = vpop.f32.mrf.mxu1  ;;  %v2301_v39 = vpack.c.bf16 %v1597_v63, %v1597_v63  ;;  %v8755_v60 = vld [vmem:[#allocation14_spill] sm:$0xff] }
 0x2cb   : > { %v1785_v58 = vadd.f32 %v1784_v46, %v8744_v6 }
 0x2cc   : > { %v2176_v16 = vmul.f32 0.05103104, %v1604_v19  ;;  %v2304_v20 = vpack.c.bf16 %v1604_v19, %v1604_v19  ;;  %1823 = vmatmul.bf16.gmra.mxu0 %v8745_v12  ;;  %v2970_v19 = vunpack.c.l.b16 %v2302_v25  ;;  %v2300_v25 = vpack.c.bf16 %v6985_v15, %v6985_v15  ;;  %v8748_v15 = vld [vmem:[#allocation12_spill] sm:$0xff] }
 0x2cd   : > { %v1954_v26 = vadd.f32 %v1953_v30, %v1785_v58  ;;  %1992 = vmatmul.bf16.gmra.mxu1 %v8746_v29  ;;  %v2969_v29 = vunpack.c.l.b16 %v2301_v39 }
 0x2ce   : > { %v2240_v31 = vpack.c.bf16 %v2176_v16, %v2176_v16  ;;  %v2972_v13 = vunpack.c.l.b16 %v2304_v20  ;;  %5229 = vmatmul.msk.bf16.vlgmr.msra.gmra.mxu2 %vm2401_vm0, %v2733_v36  ;;  %v7019_v36 = vshrl.u32 %v3078_v38, 7 }
 0x2cf   : > { %v3849_v63 = vpack.c.bf16 %v1954_v26, %v1954_v26  ;;  %v2968_v26 = vunpack.c.l.b16 %v2300_v25  ;;  %v8750_v25 = vld [vmem:[#allocation11_spill] sm:$0xff] }
 0x2d0   : > { %v2916_v8 = vunpack.c.l.b16 %v2240_v31  ;;  %v2980_v46 = vpack.c.b16 %v2972_v13, %v2971_v35  ;;  %v7021_v35 = vand.u32 127, %v3078_v38  ;;  %v2979_v31 = vpack.c.b16 %v2970_v19, %v2969_v29  ;;  %v8749_v29 = vld [vmem:[#allocation10_spill] sm:$0xff] }
 0x2d1   : > { %v7014_v6 = vpop.f32.mrf.mxu2  ;;  %v2652_v58 = vpop.f32.mrf.mxu3 }
 0x2d2   : > { %v1786_v30 = vpop.f32.mrf.mxu0  ;;  %v2924_v12 = vpack.c.b16 %v2916_v8, %v2915_v42  ;;  %v3027_v45 = vsel %vm2401_vm0, %v2980_v46, 0  ;;  %v1955_v20 = vpop.f32.mrf.mxu1  ;;  %v2299_v42 = vpack.c.bf16 %v6981_v62, %v6981_v62  ;;  %v7027_v8 = vunpack.c.l.b16 %v3849_v63 }
 0x2d3   : > { %v1787_v16 = vadd.f32 %v1786_v30, %v8747_v5  ;;  %3029 = vmatpush.bf16.xpose.msra.mxu3 %v3027_v45  ;;  %vm3097_vm1 = vcmp.le.s32.totalorder %v7021_v35, %v7019_v36  ;;  %v7047_v63 = vadd.s32 8, %v7019_v36 }
 0x2d4   : > { %2939 = vrot.lane.b32.xlu1 %v2924_v12, %s5761_s22  ;;  %v3024_v12 = vsel %vm2401_vm0, %v2979_v31, 0  ;;  %v2967_v5 = vunpack.c.l.b16 %v2299_v42 }
 0x2d5   : > { %v1956_v3 = vadd.f32 %v1955_v20, %v1787_v16  ;;  %v7042_v16 = vsel %vm3097_vm1, %v2652_v58, -inf  ;;  %vm3098_vm2 = vcmp.le.s32.totalorder %v7021_v35, %v7047_v63 }
 0x2d6   : > { %v2978_v31 = vpack.c.b16 %v2968_v26, %v2967_v5  ;;  %v7062_v26 = vadd.s32 16, %v7019_v36 }
 0x2d7   : > { %v3850_v13 = vpack.c.bf16 %v1956_v3, %v1956_v3  ;;  %v2735_v3 = vpop.permute.xlu0 %2734 }
 0x2d8   : > { %8752 = vst [vmem:[#allocation8_spill] sm:$0xff] %v7062_v26  ;;  %vm3099_vm3 = vcmp.le.s32.totalorder %v7021_v35, %v7062_v26 }
 0x2d9   : > { %v7029_v46 = vunpack.c.l.b16 %v3850_v13  ;;  %v7031_v39 = vpop.f32.mrf.mxu2  ;;  %v2654_v38 = vpop.f32.mrf.mxu3 }
 0x2da   : > { %v1789_v30 = vpop.f32.mrf.mxu0  ;;  %v1958_v45 = vpop.f32.mrf.mxu1 }
 0x2db   : > { %v1790_v19 = vadd.f32 %v1789_v30, %v8748_v15  ;;  %3030 = vmatpush.bf16.xpose.msra.mxu3 %v3024_v12  ;;  %v3021_v30 = vsel %vm2401_vm0, %v2978_v31, 0  ;;  %v8751_v12 = vld [vmem:[#allocation13_spill] sm:$0xff] }
 0x2dc   : > { %1828 = vmatmul.bf16.gmra.mxu0 %v8749_v29 }
 0x2dd   : > { %v1959_v20 = vadd.f32 %v1958_v45, %v1790_v19  ;;  %3241 = vmax.xlane.f32.xlu2 %v7042_v16  ;;  %1997 = vmatmul.bf16.gmra.mxu1 %v8750_v25  ;;  %v7058_v45 = vsel %vm3098_vm2, %v2654_v38, -inf  ;;  %v8753_v38 = vpack.c.b16 %v6972_v28, %v6970_v27  ;;  %v7088_v27 = vsel %vm3097_vm1, %v7014_v6, -inf }
 0x2de   : > { %5230 = vmatmul.msk.bf16.gmra.mxu2 %vm2401_vm0, %v2735_v3  ;;  %v7091_v28 = vadd.s32 24, %v7019_v36  ;;  %v8757_v6 = vpack.c.b16 %v6955_v23, %v6953_v56  ;;  %v7116_v56 = vadd.s32 32, %v7019_v36 }
 0x2df   : > { %v3851_v29 = vpack.c.bf16 %v1959_v20, %v1959_v20  ;;  %v3018_v20 = vsel %vm2401_vm0, %v8753_v38, 0 }
 0x2e0   : > { %vm3100_vm4 = vcmp.le.s32.totalorder %v7021_v35, %v7091_v28  ;;  %8759 = vst [vmem:[#allocation6_spill] sm:$0xff] %v7116_v56  ;;  %vm3101_vm5 = vcmp.le.s32.totalorder %v7021_v35, %v7116_v56 }
 0x2e1   : > { %v2464_v13 = vpop.f32.mrf.mxu2  ;;  %v2657_v58 = vpop.f32.mrf.mxu3  ;;  %v7064_v25 = vunpack.c.l.b16 %v3851_v29 }
 0x2e2   : > { %v1791_v42 = vpop.f32.mrf.mxu0  ;;  %v1960_v19 = vpop.f32.mrf.mxu1  ;;  %v7112_v49 = vsel %vm3099_vm3, %v2657_v58, -inf  ;;  %v8760_v58 = vpack.c.b16 %v6930_v14, %v6928_v18  ;;  %v7142_v18 = vsel %vm3098_vm2, %v7031_v39, -inf }
 0x2e3   : > { %v1792_v15 = vadd.f32 %v1791_v42, %v8751_v12  ;;  %3031 = vmatpush.bf16.xpose.msra.mxu3 %v3021_v30 }
 0x2e5   : > { %v1961_v3 = vadd.f32 %v1960_v19, %v1792_v15  ;;  %3243 = vmax.xlane.f32.xlu2 %v7058_v45  ;;  %v8754_v15 = vld [vmem:[#allocation16_spill] sm:$0xff] }
 0x2e7   : > { %v3852_v5 = vpack.c.bf16 %v1961_v3, %v1961_v3  ;;  %v7080_v3 = vsel %vm3099_vm3, %v2464_v13, -inf  ;;  %v2737_v13 = vpop.permute.xlu2 %2736 }
 0x2e9   : > { %v7066_v31 = vunpack.c.l.b16 %v3852_v5  ;;  %v2466_v42 = vpop.f32.mrf.mxu2  ;;  %v2659_v30 = vpop.f32.mrf.mxu3 }
 0x2ea   : > { %v1794_v12 = vpop.f32.mrf.mxu0  ;;  %v1963_v62 = vpop.f32.mrf.mxu1 }
 0x2eb   : > { %v1795_v19 = vadd.f32 %v1794_v12, %v8754_v15  ;;  %3032 = vmatpush.bf16.xpose.msra.mxu3 %v3018_v20  ;;  %v8756_v12 = vld [vmem:[#allocation15_spill] sm:$0xff]  ;;  %v3015_v20 = vsel %vm2401_vm0, %v8757_v6, 0  ;;  %v8758_v15 = vld [vmem:[#allocation17_spill] sm:$0xff] }
 0x2ec   : > { %1833 = vmatmul.bf16.gmra.mxu0 %v8755_v60 }
 0x2ed   : > { %v1964_v5 = vadd.f32 %v1963_v62, %v1795_v19  ;;  %3213 = vmax.xlane.f32.xlu2 %v7080_v3  ;;  %2002 = vmatmul.bf16.gmra.mxu1 %v8756_v12  ;;  %v7106_v12 = vsel %vm3100_vm4, %v2466_v42, -inf }
 0x2ee   : > { %3209 = vmax.xlane.f32.xlu0 %v7088_v27  ;;  %5231 = vmatmul.msk.bf16.gmra.mxu2 %vm2401_vm0, %v2737_v13 }
 0x2ef   : > { %v3853_v13 = vpack.c.bf16 %v1964_v5, %v1964_v5 }
 0x2f1   : > { %v2469_v62 = vpop.f32.mrf.mxu2  ;;  %v2662_v60 = vpop.f32.mrf.mxu3 }
 0x2f2   : > { %v1796_v38 = vpop.f32.mrf.mxu0  ;;  %v1965_v29 = vpop.f32.mrf.mxu1  ;;  %v7147_v14 = vsel %vm3101_vm5, %v2662_v60, -inf  ;;  %v8765_v60 = vpack.c.b16 %v6907_v47, %v6905_v48  ;;  %v7175_v48 = vsel %vm3101_vm5, %v2469_v62, -inf }
 0x2f3   : > { %v1797_v19 = vadd.f32 %v1796_v38, %v8758_v15  ;;  %3033 = vmatpush.bf16.xpose.msra.mxu3 %v3015_v20  ;;  %v7118_v38 = vunpack.c.l.b16 %v3853_v13  ;;  %v3012_v20 = vsel %vm2401_vm0, %v8760_v58, 0  ;;  %v8761_v15 = vld [vmem:[#allocation20_spill] sm:$0xff]  ;;  %v7134_v13 = vsel %vm3100_vm4, %v2659_v30, -inf  ;;  %v7193_v62 = vpop.permute.xlu2 %2746 }
 0x2f5   : > { %v1966_v10 = vadd.f32 %v1965_v29, %v1797_v19  ;;  %3215 = vmax.xlane.f32.xlu2 %v7106_v12 }
 0x2f6   : > { %3245 = vmax.xlane.f32.xlu0 %v7112_v49 }
 0x2f7   : > { %v3854_v23 = vpack.c.bf16 %v1966_v10, %v1966_v10 }
 0x2f9   : > { %v7120_v6 = vunpack.c.l.b16 %v3854_v23  ;;  %v2471_v42 = vpop.f32.mrf.mxu2  ;;  %v2664_v5 = vpop.f32.mrf.mxu3 }
 0x2fa   : > { %v1799_v29 = vpop.f32.mrf.mxu0  ;;  %v1968_v21 = vpop.f32.mrf.mxu1 }
 0x2fb   : > { %v1800_v19 = vadd.f32 %v1799_v29, %v8761_v15  ;;  %3034 = vmatpush.bf16.xpose.msra.mxu3 %v3012_v20  ;;  %v7150_v29 = vadd.s32 40, %v7019_v36  ;;  %v3009_v20 = vsel %vm2401_vm0, %v8765_v60, 0  ;;  %v8766_v15 = vld [vmem:[#allocation21_spill] sm:$0xff] }
 0x2fc   : > { %1838 = vmatmul.bf16.gmra.mxu0 %v8762_v11  ;;  %v8764_v11 = vld [vmem:[#allocation19_spill] sm:$0xff] }
 0x2fd   : > { %v1969_v23 = vadd.f32 %v1968_v21, %v1800_v19  ;;  %3247 = vmax.xlane.f32.xlu2 %v7134_v13  ;;  %8763 = vst [vmem:[#allocation7_spill] sm:$0xff] %v7150_v29  ;;  %v2739_v21 = vpop.permute.xlu1 %2738  ;;  %2007 = vmatmul.bf16.gmra.mxu1 %v8764_v11  ;;  %vm3102_vm6 = vcmp.le.s32.totalorder %v7021_v35, %v7150_v29 }
 0x2fe   : > { %3211 = vmax.xlane.f32.xlu1 %v7142_v18  ;;  %3249 = vmax.xlane.f32.xlu0 %v7147_v14  ;;  %v7166_v11 = vsel %vm3102_vm6, %v2471_v42, -inf  ;;  %v7180_v47 = vsel %vm3102_vm6, %v2664_v5, -inf  ;;  %v7185_v42 = vadd.s32 56, %v7019_v36 }
 0x2ff   : > { %5232 = vmatmul.msk.bf16.gmra.mxu2 %vm2401_vm0, %v2739_v21  ;;  %8767 = vst [vmem:[#allocation9_spill] sm:$0xff] %v7166_v11  ;;  %v7169_v21 = vadd.s32 48, %v7019_v36  ;;  %v3855_v24 = vpack.c.bf16 %v1969_v23, %v1969_v23 }
 0x300   : > { %8769 = vst [vmem:[#allocation10_spill] sm:$0xff] %v7185_v42  ;;  %vm3104_vm8 = vcmp.le.s32.totalorder %v7021_v35, %v7185_v42 }
 0x301   : > { %v2474_v30 = vpop.f32.mrf.mxu2  ;;  %v2667_v39 = vpop.f32.mrf.mxu3  ;;  %8768 = vst [vmem:[#allocation12_spill] sm:$0xff] %v7169_v21  ;;  %v7187_v23 = vunpack.c.l.b16 %v3855_v24  ;;  %vm3103_vm7 = vcmp.le.s32.totalorder %v7021_v35, %v7169_v21  ;;  %v8771_v24 = vld [vmem:[#allocation24_spill] sm:$0xff] }
 0x302   : > { %v1801_v58 = vpop.f32.mrf.mxu0  ;;  %v1970_v10 = vpop.f32.mrf.mxu1  ;;  %v7207_v57 = vsel %vm3103_vm7, %v2474_v30, -inf  ;;  %v7226_v30 = vadd.s32 64, %v7019_v36 }
 0x303   : > { %v1802_v19 = vadd.f32 %v1801_v58, %v8766_v15  ;;  %3035 = vmatpush.bf16.xpose.msra.mxu3 %v3009_v20  ;;  %v8770_v15 = vpack.c.b16 %v6887_v61, %v6885_v4  ;;  %v7216_v4 = vsel %vm3103_vm7, %v2667_v39, -inf }
 0x304   : > { %8773 = vst [vmem:[#allocation11_spill] sm:$0xff] %v7216_v4  ;;  %vm3105_vm9 = vcmp.le.s32.totalorder %v7021_v35, %v7226_v30 }
 0x305   : > { %v1971_v2 = vadd.f32 %v1970_v10, %v1802_v19  ;;  %3219 = vmax.xlane.f32.xlu2 %v7166_v11  ;;  %8775 = vst [vmem:[#allocation16_spill] sm:$0xff] %v7226_v30 }
 0x306   : > { %3217 = vmax.xlane.f32.xlu1 %v7175_v48  ;;  %3251 = vmax.xlane.f32.xlu0 %v7180_v47 }
 0x307   : > { %v3856_v10 = vpack.c.bf16 %v1971_v2, %v1971_v2  ;;  %v3006_v2 = vsel %vm2401_vm0, %v8770_v15, 0  ;;  %v8776_v15 = vld [vmem:[#allocation23_spill] sm:$0xff] }
 0x309   : > { %v7189_v58 = vunpack.c.l.b16 %v3856_v10  ;;  %v2476_v60 = vpop.f32.mrf.mxu2  ;;  %v2669_v5 = vpop.f32.mrf.mxu3 }
 0x30a   : > { %v1804_v20 = vpop.f32.mrf.mxu0  ;;  %v1973_v10 = vpop.f32.mrf.mxu1  ;;  %v7221_v61 = vsel %vm3104_vm8, %v2476_v60, -inf }
 0x30b   : > { %v1805_v19 = vadd.f32 %v1804_v20, %v8771_v24  ;;  %3036 = vmatpush.bf16.xpose.msra.mxu3 %v3006_v2  ;;  %8774 = vst [vmem:[#allocation13_spill] sm:$0xff] %v7221_v61  ;;  %v2741_v20 = vpop.permute.xlu0 %2740  ;;  %v2926_v2 = vpop.permute.xlu2 %2925 }
 0x30c   : > { %1843 = vmatmul.bf16.gmra.mxu0 %v8772_v43  ;;  %v2743_v43 = vpop.permute.xlu1 %2742 }
 0x30d   : > { %v7209_v54 = vadd.f32 %v1973_v10, %v1805_v19  ;;  %3221 = vmax.xlane.f32.xlu2 %v7207_v57  ;;  %2012 = vmatmul.bf16.gmra.mxu1 %v8776_v15  ;;  %v7238_v10 = vadd.s32 72, %v7019_v36 }
 0x30e   : > { %3253 = vmax.xlane.f32.xlu1 %v7216_v4  ;;  %3223 = vmax.xlane.f32.xlu0 %v7221_v61  ;;  %v8800_v61 = vld [vmem:[#allocation33_spill] sm:$0xff] }
 0x30f   : > { %5233 = vmatmul.msk.bf16.gmra.mxu2 %vm2401_vm0, %v2741_v20  ;;  %8777 = vst [vmem:[#allocation14_spill] sm:$0xff] %v7238_v10  ;;  %v7243_v20 = vsel %vm3104_vm8, %v2669_v5, -inf  ;;  %vm3106_vm10 = vcmp.le.s32.totalorder %v7021_v35, %v7238_v10  ;;  %v8790_v10 = vld [vmem:[#allocation30_spill] sm:$0xff] }
 0x311   : > { %v2479_v39 = vpop.f32.mrf.mxu2  ;;  %v2672_v24 = vpop.f32.mrf.mxu3 }
 0x312   : > { %v7230_v19 = vpop.f32.mrf.mxu0  ;;  %5237 = vmatmul.msk.bf16.vlgmr.msra.gmra.mxu3 %vm2401_vm0, %v2926_v2  ;;  %v7235_v60 = vpop.f32.mrf.mxu1  ;;  %v7249_v15 = vsel %vm3105_vm9, %v2479_v39, -inf  ;;  %v7274_v50 = vsel %vm3105_vm9, %v2672_v24, -inf  ;;  %v7288_v24 = vadd.s32 88, %v7019_v36 }
 0x313   : > { %8778 = vst [vmem:[#allocation15_spill] sm:$0xff] %v7249_v15 }
 0x314   : > { %v2745_v40 = vpop.permute.xlu1 %2744  ;;  %8782 = vst [vmem:[#allocation18_spill] sm:$0xff] %v7274_v50  ;;  %vm3108_vm12 = vcmp.le.s32.totalorder %v7021_v35, %v7288_v24 }
 0x315   : > { %3255 = vmax.xlane.f32.xlu2 %v7243_v20  ;;  %8785 = vst [vmem:[#allocation21_spill] sm:$0xff] %v7288_v24  ;;  %v2930_v24 = vpop.permute.xlu0 %2929 }
 0x316   : > { %3225 = vmax.xlane.f32.xlu0 %v7249_v15 }
 0x319   : > { %v2481_v2 = vpop.f32.mrf.mxu2  ;;  %v2674_v7 = vpop.f32.mrf.mxu3 }
 0x31a   : > { %v7254_v17 = vpop.f32.mrf.mxu0  ;;  %v7259_v5 = vsel %vm3106_vm10, %v2481_v2, -inf  ;;  %v7262_v53 = vpop.f32.mrf.mxu1  ;;  %v7267_v39 = vsel %vm3106_vm10, %v2674_v7, -inf  ;;  %v7278_v2 = vadd.s32 80, %v7019_v36 }
 0x31b   : > { %8779 = vst [vmem:[#allocation17_spill] sm:$0xff] %v7259_v5  ;;  %3227 = vmax.xlane.f32.xlu1 %v7259_v5  ;;  %v8801_v5 = vld [vmem:[#allocation35_spill] sm:$0xff] }
 0x31c   : > { %8780 = vst [vmem:[#allocation20_spill] sm:$0xff] %v7267_v39  ;;  %1848 = vmatmul.bf16.gmra.mxu0 %v8781_v55  ;;  %v2928_v9 = vpop.permute.xlu1 %2927  ;;  %vm3107_vm11 = vcmp.le.s32.totalorder %v7021_v35, %v7278_v2 }
 0x31d   : > { %3259 = vmax.xlane.f32.xlu2 %v7267_v39  ;;  %8783 = vst [vmem:[#allocation19_spill] sm:$0xff] %v7278_v2  ;;  %2017 = vmatmul.bf16.gmra.mxu1 %v8784_v34  ;;  %v7331_v2 = vadd.s32 104, %v7019_v36 }
 0x31e   : > { %3257 = vmax.xlane.f32.xlu0 %v7274_v50 }
 0x31f   : > { %5234 = vmatmul.msk.bf16.gmra.mxu2 %vm2401_vm0, %v2743_v43  ;;  %vm3110_vm14 = vcmp.le.s32.totalorder %v7021_v35, %v7331_v2 }
 0x321   : > { %v2484_v7 = vpop.f32.mrf.mxu2  ;;  %v2677_v42 = vpop.f32.mrf.mxu3 }
 0x322   : > { %v1811_v39 = vpop.f32.mrf.mxu0  ;;  %5238 = vmatmul.msk.bf16.gmra.mxu3 %vm2401_vm0, %v2928_v9  ;;  %v7285_v55 = vpop.f32.mrf.mxu1  ;;  %v7293_v34 = vsel %vm3107_vm11, %v2484_v7, -inf }
 0x323   : > { %8786 = vst [vmem:[#allocation24_spill] sm:$0xff] %v7293_v34 }
 0x326   : > { %3229 = vmax.xlane.f32.xlu0 %v7293_v34  ;;  %v7311_v34 = vadd.s32 96, %v7019_v36 }
 0x328   : > { %8789 = vst [vmem:[#allocation26_spill] sm:$0xff] %v7311_v34  ;;  %vm3109_vm13 = vcmp.le.s32.totalorder %v7021_v35, %v7311_v34  ;;  %v7349_v34 = vadd.s32 112, %v7019_v36 }
 0x329   : > { %v2486_v43 = vpop.f32.mrf.mxu2  ;;  %v2679_v30 = vpop.f32.mrf.mxu3 }
 0x32a   : > { %v1814_v29 = vpop.f32.mrf.mxu0  ;;  %v7301_v9 = vsel %vm3108_vm12, %v2486_v43, -inf  ;;  %v7307_v7 = vsel %vm3108_vm12, %v2679_v30, -inf  ;;  %v1983_v15 = vpop.f32.mrf.mxu1  ;;  %v7317_v43 = vsel %vm3107_vm11, %v2677_v42, -inf  ;;  %8797 = vst [vmem:[#allocation108_spill] sm:$0xff] %v7349_v34  ;;  %vm8569_vm15 = vcmp.le.s32.totalorder %v7021_v35, %v7349_v34 }
 0x32b   : > { %8787 = vst [vmem:[#allocation22_spill] sm:$0xff] %v7301_v9  ;;  %3231 = vmax.xlane.f32.xlu2 %v7301_v9  ;;  %3263 = vmax.xlane.f32.xlu1 %v7307_v7  ;;  %v8792_v9 = vld [vmem:[#allocation31_spill] sm:$0xff] }
 0x32c   : > { %8788 = vst [vmem:[#allocation23_spill] sm:$0xff] %v7307_v7  ;;  %1853 = vmatmul.bf16.gmra.mxu0 %v8790_v10 }
 0x32d   : > { %8791 = vst [vmem:[#allocation27_spill] sm:$0xff] %v7317_v43  ;;  %2022 = vmatmul.bf16.gmra.mxu1 %v8792_v9 }
 0x32e   : > { %3261 = vmax.xlane.f32.xlu0 %v7317_v43  ;;  %8794 = vst [vmem:[#allocation31_spill] sm:$0xff] %v7331_v2  ;;  %v8803_v2 = vld [vmem:[#allocation29_spill] sm:$0xff] }
 0x32f   : > { %5235 = vmatmul.msk.bf16.gmra.mxu2 %vm2401_vm0, %v2745_v40 }
 0x331   : > { %v2489_v30 = vpop.f32.mrf.mxu2  ;;  %v2682_v7 = vpop.f32.mrf.mxu3 }
 0x332   : > { %v1816_v50 = vpop.f32.mrf.mxu0  ;;  %5239 = vmatmul.msk.bf16.gmra.mxu3 %vm2401_vm0, %v2930_v24  ;;  %v7328_v42 = vsel %vm3109_vm13, %v2682_v7, -inf  ;;  %v1985_v10 = vpop.f32.mrf.mxu1  ;;  %v7337_v40 = vsel %vm3109_vm13, %v2489_v30, -inf  ;;  %v8798_v30 = vld [vmem:[#allocation36_spill] sm:$0xff] }
 0x333   : > { %8793 = vst [vmem:[#allocation30_spill] sm:$0xff] %v7328_v42  ;;  %3265 = vmax.xlane.f32.xlu2 %v7328_v42 }
 0x334   : > { %8795 = vst [vmem:[#allocation106_spill] sm:$0xff] %v7337_v40 }
 0x336   : > { %3233 = vmax.xlane.f32.xlu0 %v7337_v40  ;;  %v8799_v40 = vld [vmem:[#allocation34_spill] sm:$0xff] }
 0x339   : > { %v2491_v24 = vpop.f32.mrf.mxu2  ;;  %v2684_v9 = vpop.f32.mrf.mxu3 }
 0x33a   : > { %v1819_v7 = vpop.f32.mrf.mxu0  ;;  %v7345_v43 = vsel %vm3110_vm14, %v2491_v24, -inf  ;;  %v1988_v42 = vpop.f32.mrf.mxu1  ;;  %v7356_v26 = vsel %vm3110_vm14, %v2684_v9, -inf  ;;  %v1817_v24 = vadd.f32 %v1816_v50, %v8800_v61  ;;  %v1812_v9 = vadd.f32 %v1811_v39, %v8803_v2 }
 0x33b   : > { %8796 = vst [vmem:[#allocation107_spill] sm:$0xff] %v7345_v43  ;;  %3235 = vmax.xlane.f32.xlu1 %v7345_v43  ;;  %v1820_v4 = vadd.f32 %v1819_v7, %v8798_v30  ;;  %v2932_v7 = vpop.permute.xlu2 %2931  ;;  %v8802_v30 = vld [vmem:[#allocation32_spill] sm:$0xff] }
 0x33c   : > { %1858 = vmatmul.bf16.gmra.mxu0 %v8799_v40  ;;  %v1815_v40 = vadd.f32 %v1814_v29, %v8802_v30  ;;  %v1986_v61 = vadd.f32 %v1985_v10, %v1817_v24  ;;  %v1981_v24 = vadd.f32 %v7285_v55, %v1812_v9 }
 0x33d   : > { %2027 = vmatmul.bf16.gmra.mxu1 %v8801_v5  ;;  %v1989_v43 = vadd.f32 %v1988_v42, %v1820_v4  ;;  %v7381_v4 = vadd.s32 120, %v7019_v36  ;;  %v8881_v36 = vld [vmem:[#allocation60_spill] sm:$0xff] }
 0x33e   : > { %3267 = vmax.xlane.f32.xlu0 %v7356_v26  ;;  %v1984_v2 = vadd.f32 %v1983_v15, %v1815_v40  ;;  %v3860_v40 = vpack.c.bf16 %v1981_v24, %v1981_v24 }
 0x33f   : > { %5236 = vmatmul.msk.bf16.gmra.mxu2 %vm2401_vm0, %v7193_v62  ;;  %8806 = vst [vmem:[#allocation33_spill] sm:$0xff] %v7381_v4  ;;  %v3863_v42 = vpack.c.bf16 %v1989_v43, %v1989_v43 }
 0x341   : > { %v2494_v56 = vpop.f32.mrf.mxu2  ;;  %v2687_v11 = vpop.f32.mrf.mxu3 }
 0x342   : > { %v1821_v21 = vpop.f32.mrf.mxu0  ;;  %v7370_v50 = vsel %vm8569_vm15, %v2494_v56, -inf  ;;  %5240 = vmatmul.msk.bf16.gmra.mxu3 %vm2401_vm0, %v2932_v7  ;;  %v7378_v29 = vsel %vm8569_vm15, %v2687_v11, -inf  ;;  %v1990_v62 = vpop.f32.mrf.mxu1  ;;  %v8807_v56 = vld [vmem:[#allocation28_spill] sm:$0xff]  ;;  %v3862_v7 = vpack.c.bf16 %v1986_v61, %v1986_v61  ;;  %vm3112_vm15 = vcmp.le.s32.totalorder %v7021_v35, %v7381_v4 }
 0x343   : > { %8804 = vst [vmem:[#allocation36_spill] sm:$0xff] %v7370_v50  ;;  %v1822_v5 = vadd.f32 %v1821_v21, %v6327_v59  ;;  %3237 = vmax.xlane.f32.xlu2 %v7370_v50  ;;  %3269 = vmax.xlane.f32.xlu1 %v7378_v29  ;;  %v1810_v39 = vadd.f32 %v7254_v17, %v8807_v56  ;;  %v8808_v59 = vld [vmem:[#allocation25_spill] sm:$0xff]  ;;  %v7391_v30 = vpop.permute.xlu2 %2935 }
 0x344   : > { %8805 = vst [vmem:[#allocation34_spill] sm:$0xff] %v7378_v29  ;;  %v1807_v21 = vadd.f32 %v7230_v19, %v8808_v59  ;;  %v3861_v50 = vpack.c.bf16 %v1984_v2, %v1984_v2  ;;  %v3991_v29 = vunpack.c.l.b16 %v3863_v42  ;;  %v3990_v9 = vunpack.c.l.b16 %v3862_v7 }
 0x345   : > { %v1991_v10 = vadd.f32 %v1990_v62, %v1822_v5  ;;  %v1979_v34 = vadd.f32 %v7262_v53, %v1810_v39  ;;  %v8809_v62 = vld [vmem:[#allocation39_spill] sm:$0xff] }
 0x346   : > { %v1976_v43 = vadd.f32 %v7235_v60, %v1807_v21  ;;  %v3989_v2 = vunpack.c.l.b16 %v3861_v50  ;;  %v8811_v21 = vld [vmem:[#allocation37_spill] sm:$0xff] }
 0x347   : > { %v3864_v11 = vpack.c.bf16 %v1991_v10, %v1991_v10  ;;  %v3859_v39 = vpack.c.bf16 %v1979_v34, %v1979_v34  ;;  %v8810_v10 = vld [vmem:[#allocation38_spill] sm:$0xff]  ;;  %v2934_v34 = vpop.permute.xlu1 %2933 }
 0x348   : > { %v3858_v59 = vpack.c.bf16 %v1976_v43, %v1976_v43  ;;  %v3999_v24 = vpack.c.b16 %v3990_v9, %v3989_v2 }
 0x349   : > { %v3992_v17 = vunpack.c.l.b16 %v3864_v11  ;;  %v2496_v15 = vpop.f32.mrf.mxu2  ;;  %v2689_v5 = vpop.f32.mrf.mxu3  ;;  %v3857_v11 = vpack.c.bf16 %v7209_v54, %v7209_v54 }
 0x34a   : > { %v1824_v19 = vpop.f32.mrf.mxu0  ;;  %v7398_v55 = vsel %vm3112_vm15, %v2496_v15, -inf  ;;  %v7405_v53 = vsel %vm3112_vm15, %v2689_v5, -inf  ;;  %v1993_v60 = vpop.f32.mrf.mxu1  ;;  %v3986_v43 = vunpack.c.l.b16 %v3858_v59 }
 0x34b   : > { %v4000_v61 = vpack.c.b16 %v3992_v17, %v3991_v29  ;;  %v1825_v56 = vadd.f32 %v1824_v19, %v8809_v62  ;;  %3239 = vmax.xlane.f32.xlu0 %v7398_v55  ;;  %3271 = vmax.xlane.f32.xlu2 %v7405_v53  ;;  %v3988_v29 = vunpack.c.l.b16 %v3860_v40  ;;  %v3987_v17 = vunpack.c.l.b16 %v3859_v39  ;;  %v2938_v59 = vpop.permute.xlu0 %2937 }
 0x34c   : > { %1863 = vmatmul.bf16.gmra.mxu0 %v8810_v10 }
 0x34d   : > { %v1994_v42 = vadd.f32 %v1993_v60, %v1825_v56  ;;  %4009 = vmatpush.bf16.msrb.mxu2 %v4000_v61  ;;  %2032 = vmatmul.bf16.gmra.mxu1 %v8811_v21  ;;  %v3998_v54 = vpack.c.b16 %v3988_v29, %v3987_v17 }
 0x34f   : > { %v3865_v62 = vpack.c.bf16 %v1994_v42, %v1994_v42 }
 0x350   : > { %v3242_v7 = vpop.xlane.xlu2 %3241 }
 0x351   : > { %v3353_v15 = vsub.f32 %v7042_v16, %v3242_v7  ;;  %4010 = vmatpush.bf16.msrb.mxu2 %v3999_v24  ;;  %v2845_v5 = vpop.f32.mrf.mxu2  ;;  %v3985_v16 = vunpack.c.l.b16 %v3857_v11  ;;  %v7423_v10 = vunpack.c.l.b16 %v3865_v62 }
 0x352   : > { %v1826_v50 = vpop.f32.mrf.mxu0  ;;  %v7416_v19 = vsel %vm3097_vm1, %v2845_v5, -inf  ;;  %5241 = vmatmul.msk.bf16.gmra.mxu3 %vm2401_vm0, %v2934_v34  ;;  %v1995_v61 = vpop.f32.mrf.mxu1  ;;  %v8813_v5 = vpack.c.b16 %v7189_v58, %v7187_v23  ;;  %v8814_v34 = vld [vmem:[#allocation40_spill] sm:$0xff] }
 0x353   : > { %v3433_v40 = vmul.f32 1.442695, %v3353_v15  ;;  %v1827_v9 = vadd.f32 %v1826_v50, %v6370_v22  ;;  %3273 = vmax.xlane.f32.xlu1 %v7416_v19  ;;  %v3997_v39 = vpack.c.b16 %v3986_v43, %v3985_v16  ;;  %v8812_v15 = vld [vmem:[#allocation41_spill] sm:$0xff] }
 0x355   : > { %5437 = vpow2.f32 %v3433_v40  ;;  %v1996_v56 = vadd.f32 %v1995_v61, %v1827_v9  ;;  %4011 = vmatpush.bf16.msrb.mxu2 %v3998_v54 }
 0x357   : > { %v3866_v60 = vpack.c.bf16 %v1996_v56, %v1996_v56  ;;  %v8816_v56 = vpack.c.b16 %v7066_v31, %v7064_v25 }
 0x358   : > { %v7421_v2 = vpop.xlane.xlu2 %3243 }
 0x359   : > { %v7425_v21 = vunpack.c.l.b16 %v3866_v60  ;;  %4012 = vmatpush.bf16.msrb.mxu2 %v3997_v39  ;;  %v2847_v22 = vpop.f32.mrf.mxu2  ;;  %v7452_v60 = vpop.permute.xlu1 %2939 }
 0x35a   : > { %v1829_v24 = vpop.f32.mrf.mxu0  ;;  %v1998_v42 = vpop.f32.mrf.mxu1 }
 0x35b   : > { %v7427_v29 = vpop.eup %5437  ;;  %v1830_v7 = vadd.f32 %v1829_v24, %v6383_v33  ;;  %v8815_v33 = vpack.c.b16 %v7120_v6, %v7118_v38 }
 0x35c   : > { %3561 = vadd.xlane.f32.xlu0 %v7427_v29  ;;  %1868 = vmatmul.bf16.gmra.mxu0 %v8812_v15 }
 0x35d   : > { %v1999_v17 = vadd.f32 %v1998_v42, %v1830_v7  ;;  %4013 = vmatpush.bf16.msrb.mxu2 %v8813_v5  ;;  %2037 = vmatmul.bf16.gmra.mxu1 %v8814_v34 }
 0x35f   : > { %v3867_v16 = vpack.c.bf16 %v1999_v17, %v1999_v17 }
 0x360   : > { %v7438_v50 = vpop.xlane.xlu2 %3213 }
 0x361   : > { %v3210_v43 = vpop.xlane.xlu0 %3209  ;;  %4014 = vmatpush.bf16.msrb.mxu2 %v8815_v33  ;;  %v7443_v40 = vpop.f32.mrf.mxu2 }
 0x362   : > { %v3337_v9 = vsub.f32 %v7088_v27, %v3210_v43  ;;  %v1831_v61 = vpop.f32.mrf.mxu0  ;;  %5242 = vmatmul.msk.bf16.gmra.mxu3 %vm2401_vm0, %v7391_v30  ;;  %v2000_v58 = vpop.f32.mrf.mxu1  ;;  %v7454_v27 = vunpack.c.l.b16 %v3867_v16 }
 0x363   : > { %v1832_v23 = vadd.f32 %v1831_v61, %v6399_v1  ;;  %v8817_v1 = vpack.c.b16 %v7029_v46, %v7027_v8 }
 0x364   : > { %v3401_v54 = vmul.f32 1.442695, %v3337_v9 }
 0x365   : > { %v2001_v62 = vadd.f32 %v2000_v58, %v1832_v23  ;;  %4015 = vmatpush.bf16.msrb.mxu2 %v8816_v56 }
 0x366   : > { %5439 = vpow2.f32 %v3401_v54 }
 0x367   : > { %v3868_v38 = vpack.c.bf16 %v2001_v62, %v2001_v62 }
 0x368   : > { %v3216_v6 = vpop.xlane.xlu2 %3215 }
 0x369   : > { %v7456_v39 = vunpack.c.l.b16 %v3868_v38  ;;  %v7458_v30 = vpop.xlane.xlu0 %3245  ;;  %4016 = vmatpush.bf16.msrb.mxu2 %v8817_v1  ;;  %v2852_v24 = vpop.f32.mrf.mxu2  ;;  %v3340_v8 = vsub.f32 %v7106_v12, %v3216_v6 }
 0x36a   : > { %v1834_v7 = vpop.f32.mrf.mxu0  ;;  %v7466_v25 = vsel %vm3100_vm4, %v2852_v24, -inf  ;;  %v2003_v42 = vpop.f32.mrf.mxu1 }
 0x36b   : > { %v1835_v31 = vadd.f32 %v1834_v7, %v6417_v44  ;;  %3279 = vmax.xlane.f32.xlu1 %v7466_v25  ;;  %v3407_v34 = vmul.f32 1.442695, %v3340_v8 }
 0x36c   : > { %v7472_v15 = vpop.eup %5439  ;;  %1873 = vmatmul.bf16.gmra.mxu0 %v6403_v32  ;;  %v7485_v32 = vsel %vm3098_vm2, %v2847_v22, -inf }
 0x36d   : > { %v2004_v46 = vadd.f32 %v2003_v42, %v1835_v31  ;;  %3529 = vadd.xlane.f32.xlu2 %v7472_v15  ;;  %2042 = vmatmul.bf16.gmra.mxu1 %v6401_v51  ;;  %v3354_v51 = vsub.f32 %v7058_v45, %v7421_v2  ;;  %5441 = vpow2.f32 %v3407_v34  ;;  %v3339_v42 = vsub.f32 %v7080_v3, %v7438_v50 }
 0x36f   : > { %v3435_v56 = vmul.f32 1.442695, %v3354_v51  ;;  %v3405_v3 = vmul.f32 1.442695, %v3339_v42  ;;  %v8824_v42 = vld [vmem:[#allocation45_spill] sm:$0xff] }
 0x370   : > { %v3248_v5 = vpop.xlane.xlu2 %3247 }
 0x371   : > { %v3212_v44 = vpop.xlane.xlu1 %3211  ;;  %v3250_v43 = vpop.xlane.xlu0 %3249 }
 0x372   : > { %v3338_v33 = vsub.f32 %v7142_v18, %v3212_v44  ;;  %v3357_v9 = vsub.f32 %v7147_v14, %v3250_v43  ;;  %v1836_v61 = vpop.f32.mrf.mxu0  ;;  %5243 = vmatmul.msk.bf16.gmra.mxu3 %vm2401_vm0, %v2938_v59  ;;  %v2005_v23 = vpop.f32.mrf.mxu1  ;;  %v3869_v18 = vpack.c.bf16 %v2004_v46, %v2004_v46 }
 0x373   : > { %v1837_v12 = vadd.f32 %v1836_v61, %v6435_v52  ;;  %v7490_v14 = vpop.f32.mrf.mxu2  ;;  %v3356_v52 = vsub.f32 %v7134_v13, %v3248_v5  ;;  %v7501_v1 = vpop.eup %5441 }
 0x374   : > { %v3403_v58 = vmul.f32 1.442695, %v3338_v33  ;;  %v3441_v54 = vmul.f32 1.442695, %v3357_v9  ;;  %v7495_v22 = vunpack.c.l.b16 %v3869_v18  ;;  %8818 = vst [vmem:[#allocation35_spill] sm:$0xff] %v7501_v1 }
 0x375   : > { %v2006_v16 = vadd.f32 %v2005_v23, %v1837_v12  ;;  %3275 = vmax.xlane.f32.xlu2 %v7485_v32  ;;  %v3439_v2 = vmul.f32 1.442695, %v3356_v52  ;;  %v8820_v12 = vld [vmem:[#allocation42_spill] sm:$0xff] }
 0x376   : > { %5443 = vpow2.f32 %v3403_v58 }
 0x377   : > { %5445 = vpow2.f32 %v3441_v54  ;;  %v3870_v59 = vpack.c.bf16 %v2006_v16, %v2006_v16 }
 0x378   : > { %v7493_v62 = vpop.xlane.xlu2 %3219  ;;  %5447 = vpow2.f32 %v3435_v56 }
 0x379   : > { %v7497_v38 = vunpack.c.l.b16 %v3870_v59  ;;  %v7499_v45 = vpop.xlane.xlu0 %3251  ;;  %v3218_v24 = vpop.xlane.xlu1 %3217  ;;  %5449 = vpow2.f32 %v3439_v2 }
 0x37a   : > { %v1839_v6 = vpop.f32.mrf.mxu0  ;;  %v2008_v8 = vpop.f32.mrf.mxu1  ;;  %5451 = vpow2.f32 %v3405_v3 }
 0x37b   : > { %v1840_v7 = vadd.f32 %v1839_v6, %v6449_v41  ;;  %v3341_v41 = vsub.f32 %v7175_v48, %v3218_v24  ;;  %v7518_v34 = vpop.f32.mrf.mxu2 }
 0x37c   : > { %v7506_v31 = vpop.eup %5443  ;;  %1878 = vmatmul.bf16.gmra.mxu0 %v6439_v0 }
 0x37d   : > { %v7510_v46 = vpop.eup %5445  ;;  %v2009_v5 = vadd.f32 %v2008_v8, %v1840_v7  ;;  %3531 = vadd.xlane.f32.xlu0 %v7506_v31  ;;  %3535 = vadd.xlane.f32.xlu2 %v7501_v1  ;;  %v3409_v33 = vmul.f32 1.442695, %v3341_v41  ;;  %v8872_v1 = vld [vmem:[#allocation58_spill] sm:$0xff] }
 0x37e   : > { %8819 = vst [vmem:[#allocation32_spill] sm:$0xff] %v7510_v46  ;;  %3569 = vadd.xlane.f32.xlu1 %v7510_v46  ;;  %2047 = vmatmul.bf16.gmra.mxu1 %v6437_v37  ;;  %v7523_v61 = vpop.eup %5447 }
 0x37f   : > { %v7526_v0 = vpop.eup %5449  ;;  %v3871_v58 = vpack.c.bf16 %v2009_v5, %v2009_v5 }
 0x380   : > { %v3222_v50 = vpop.xlane.xlu2 %3221  ;;  %8821 = vst [vmem:[#allocation29_spill] sm:$0xff] %v7526_v0  ;;  %v7538_v56 = vpop.eup %5451 }
 0x381   : > { %v3343_v44 = vsub.f32 %v7207_v57, %v3222_v50  ;;  %v3224_v43 = vpop.xlane.xlu0 %3223  ;;  %v3355_v57 = vsub.f32 %v7112_v49, %v7458_v30  ;;  %v7532_v51 = vpop.xlane.xlu1 %3253  ;;  %v7534_v18 = vunpack.c.l.b16 %v3871_v58  ;;  %8822 = vst [vmem:[#allocation28_spill] sm:$0xff] %v7538_v56  ;;  %v3358_v50 = vsub.f32 %v7180_v47, %v7499_v45 }
 0x382   : > { %v1841_v9 = vpop.f32.mrf.mxu0  ;;  %5244 = vmatmul.msk.bf16.gmra.mxu3 %vm2401_vm0, %v7452_v60  ;;  %v2010_v37 = vpop.f32.mrf.mxu1 }
 0x383   : > { %v3413_v48 = vmul.f32 1.442695, %v3343_v44  ;;  %v1842_v23 = vadd.f32 %v1841_v9, %v8820_v12  ;;  %v2860_v59 = vpop.f32.mrf.mxu2  ;;  %v3437_v2 = vmul.f32 1.442695, %v3355_v57  ;;  %v8826_v44 = vld [vmem:[#allocation44_spill] sm:$0xff]  ;;  %v8831_v57 = vld [vmem:[#allocation9_spill] sm:$0xff] }
 0x384   : > { %v3342_v47 = vsub.f32 %v8831_v57, %v7493_v62  ;;  %v8835_v62 = vld [vmem:[#allocation13_spill] sm:$0xff]  ;;  %v8840_v57 = vld [vmem:[#allocation48_spill] sm:$0xff] }
 0x385   : > { %5453 = vpow2.f32 %v3413_v48  ;;  %v2011_v54 = vadd.f32 %v2010_v37, %v1842_v23  ;;  %3563 = vadd.xlane.f32.xlu0 %v7523_v61  ;;  %3567 = vadd.xlane.f32.xlu2 %v7526_v0  ;;  %v3443_v48 = vmul.f32 1.442695, %v3358_v50  ;;  %v7564_v37 = vsel %vm3103_vm7, %v2860_v59, -inf  ;;  %v8834_v59 = vld [vmem:[#allocation17_spill] sm:$0xff] }
 0x386   : > { %5455 = vpow2.f32 %v3409_v33  ;;  %v8827_v33 = vld [vmem:[#allocation43_spill] sm:$0xff]  ;;  %8829 = vst [vmem:[#allocation38_spill] sm:$0xff] %v7564_v37 }
 0x387   : > { %v3872_v60 = vpack.c.bf16 %v2011_v54, %v2011_v54  ;;  %5457 = vpow2.f32 %v3437_v2  ;;  %v7577_v2 = vsel %vm3101_vm5, %v7490_v14, -inf }
 0x388   : > { %v3256_v52 = vpop.xlane.xlu2 %3255  ;;  %8833 = vst [vmem:[#allocation41_spill] sm:$0xff] %v7577_v2 }
 0x389   : > { %v7536_v16 = vunpack.c.l.b16 %v3872_v60  ;;  %v7540_v6 = vpop.xlane.xlu0 %3225  ;;  %v3360_v41 = vsub.f32 %v7243_v20, %v3256_v52  ;;  %v8910_v20 = vld [vmem:[#allocation71_spill] sm:$0xff] }
 0x38a   : > { %v1844_v24 = vpop.f32.mrf.mxu0  ;;  %v2013_v5 = vpop.f32.mrf.mxu1 }
 0x38b   : > { %v7542_v7 = vpop.eup %5453  ;;  %v1845_v49 = vadd.f32 %v1844_v24, %v8824_v42  ;;  %v3447_v9 = vmul.f32 1.442695, %v3360_v41  ;;  %v2862_v58 = vpop.f32.mrf.mxu2  ;;  %v3344_v42 = vsub.f32 %v8835_v62, %v3224_v43  ;;  %v7598_v43 = vsel %vm3099_vm3, %v7443_v40, -inf }
 0x38c   : > { %8823 = vst [vmem:[#allocation25_spill] sm:$0xff] %v7542_v7  ;;  %v7547_v8 = vpop.eup %5455  ;;  %3541 = vadd.xlane.f32.xlu1 %v7542_v7  ;;  %1883 = vmatmul.bf16.gmra.mxu0 %v8826_v44  ;;  %v8849_v7 = vld [vmem:[#allocation15_spill] sm:$0xff] }
 0x38d   : > { %8825 = vst [vmem:[#allocation39_spill] sm:$0xff] %v7547_v8  ;;  %v7551_v3 = vadd.f32 %v2013_v5, %v1845_v49  ;;  %3533 = vadd.xlane.f32.xlu0 %v7538_v56  ;;  %3537 = vadd.xlane.f32.xlu2 %v7547_v8  ;;  %v7566_v54 = vpop.eup %5457  ;;  %5459 = vpow2.f32 %v3447_v9  ;;  %v3411_v49 = vmul.f32 1.442695, %v3342_v47  ;;  %v3415_v41 = vmul.f32 1.442695, %v3344_v42 }
 0x38e   : > { %2052 = vmatmul.bf16.gmra.mxu1 %v8827_v33  ;;  %v3228_v12 = vpop.xlane.xlu1 %3227  ;;  %8830 = vst [vmem:[#allocation37_spill] sm:$0xff] %v7566_v54  ;;  %5461 = vpow2.f32 %v3443_v48  ;;  %v3345_v46 = vsub.f32 %v8849_v7, %v7540_v6  ;;  %v8855_v6 = vld [vmem:[#allocation24_spill] sm:$0xff] }
 0x38f   : > { %v3346_v24 = vsub.f32 %v8834_v59, %v3228_v12  ;;  %5463 = vpow2.f32 %v3411_v49  ;;  %8839 = vst [vmem:[#allocation45_spill] sm:$0xff] %v7598_v43  ;;  %v8841_v59 = vld [vmem:[#allocation47_spill] sm:$0xff] }
 0x391   : > { %v3258_v45 = vpop.xlane.xlu0 %3257  ;;  %v3419_v5 = vmul.f32 1.442695, %v3346_v24 }
 0x392   : > { %v7559_v23 = vpop.f32.mrf.mxu0  ;;  %v7571_v60 = vpop.f32.mrf.mxu1 }
 0x393   : > { %v7587_v33 = vpop.eup %5459  ;;  %5465 = vpow2.f32 %v3419_v5  ;;  %v7603_v47 = vpop.f32.mrf.mxu2 }
 0x394   : > { %3285 = vmax.xlane.f32.xlu1 %v7564_v37  ;;  %8836 = vst [vmem:[#allocation40_spill] sm:$0xff] %v7587_v33  ;;  %v7589_v14 = vpop.eup %5461  ;;  %5467 = vpow2.f32 %v3415_v41  ;;  %v8845_v41 = vld [vmem:[#allocation11_spill] sm:$0xff] }
 0x395   : > { %3281 = vmax.xlane.f32.xlu2 %v7577_v2  ;;  %3565 = vadd.xlane.f32.xlu0 %v7566_v54  ;;  %v7585_v44 = vpop.f32.mrf.mxu3  ;;  %8837 = vst [vmem:[#allocation42_spill] sm:$0xff] %v7589_v14  ;;  %v7606_v24 = vpop.eup %5463 }
 0x396   : > { %8842 = vst [vmem:[#allocation44_spill] sm:$0xff] %v7606_v24 }
 0x399   : > { %v3230_v12 = vpop.xlane.xlu0 %3229  ;;  %v7610_v42 = vpop.eup %5465 }
 0x39a   : > { %v7583_v50 = vpop.f32.mrf.mxu0  ;;  %v7592_v9 = vpop.f32.mrf.mxu1  ;;  %8843 = vst [vmem:[#allocation43_spill] sm:$0xff] %v7610_v42  ;;  %v3347_v7 = vsub.f32 %v8855_v6, %v3230_v12 }
 0x39b   : > { %v7612_v40 = vpop.eup %5467  ;;  %v2867_v13 = vpop.f32.mrf.mxu2 }
 0x39c   : > { %3575 = vadd.xlane.f32.xlu1 %v7587_v33  ;;  %1888 = vmatmul.bf16.gmra.mxu0 %v8840_v57  ;;  %8844 = vst [vmem:[#allocation12_spill] sm:$0xff] %v7612_v40  ;;  %v3359_v57 = vsub.f32 %v8845_v41, %v7532_v51  ;;  %v7636_v41 = vsel %vm3102_vm6, %v7518_v34, -inf  ;;  %v8857_v34 = vld [vmem:[#allocation51_spill] sm:$0xff]  ;;  %v3260_v12 = vpop.xlane.xlu2 %3259 }
 0x39d   : > { %3277 = vmax.xlane.f32.xlu0 %v7598_v43  ;;  %3571 = vadd.xlane.f32.xlu2 %v7589_v14  ;;  %v3040_v5 = vpop.f32.mrf.mxu3  ;;  %8851 = vst [vmem:[#allocation6_spill] sm:$0xff] %v7636_v41  ;;  %v3421_v14 = vmul.f32 1.442695, %v3347_v7 }
 0x39e   : > { %2057 = vmatmul.bf16.gmra.mxu1 %v8841_v59  ;;  %v8846_v59 = vld [vmem:[#allocation18_spill] sm:$0xff]  ;;  %v3445_v30 = vmul.f32 1.442695, %v3359_v57  ;;  %v7641_v57 = vsel %vm3104_vm8, %v2862_v58, -inf }
 0x39f   : > { %v3361_v11 = vsub.f32 %v8846_v59, %v3258_v45  ;;  %8853 = vst [vmem:[#allocation17_spill] sm:$0xff] %v7641_v57  ;;  %v8891_v45 = vld [vmem:[#allocation62_spill] sm:$0xff] }
 0x3a0   : > { %5469 = vpow2.f32 %v3445_v30 }
 0x3a1   : > { %v3262_v17 = vpop.xlane.xlu0 %3261  ;;  %v3449_v4 = vmul.f32 1.442695, %v3361_v11  ;;  %v8895_v11 = vld [vmem:[#allocation36_spill] sm:$0xff] }
 0x3a2   : > { %v7608_v62 = vpop.f32.mrf.mxu0  ;;  %v7615_v49 = vpop.f32.mrf.mxu1 }
 0x3a3   : > { %5471 = vpow2.f32 %v3449_v4 }
 0x3a4   : > { %3547 = vadd.xlane.f32.xlu1 %v7610_v42  ;;  %v7625_v42 = vsel %vm3106_vm10, %v2867_v13, -inf  ;;  %v8854_v13 = vld [vmem:[#allocation27_spill] sm:$0xff] }
 0x3a5   : > { %3539 = vadd.xlane.f32.xlu0 %v7606_v24  ;;  %3543 = vadd.xlane.f32.xlu2 %v7612_v40  ;;  %8848 = vst [vmem:[#allocation9_spill] sm:$0xff] %v7625_v42  ;;  %v3363_v59 = vsub.f32 %v8854_v13, %v3262_v17  ;;  %v3043_v40 = vpop.f32.mrf.mxu3  ;;  %v3417_v24 = vmul.f32 1.442695, %v3345_v46  ;;  %v7654_v17 = vsel %vm3098_vm2, %v3040_v5, -inf  ;;  %v8861_v46 = vld [vmem:[#allocation106_spill] sm:$0xff] }
 0x3a6   : > { %v7649_v30 = vpop.eup %5469  ;;  %8859 = vst [vmem:[#allocation8_spill] sm:$0xff] %v7654_v17 }
 0x3a7   : > { %v3453_v8 = vmul.f32 1.442695, %v3363_v59  ;;  %8858 = vst [vmem:[#allocation13_spill] sm:$0xff] %v7649_v30  ;;  %5473 = vpow2.f32 %v3417_v24  ;;  %v3264_v24 = vpop.xlane.xlu1 %3263 }
 0x3a9   : > { %v3234_v58 = vpop.xlane.xlu0 %3233  ;;  %v7656_v4 = vpop.eup %5471  ;;  %5475 = vpow2.f32 %v3453_v8 }
 0x3aa   : > { %v1854_v37 = vpop.f32.mrf.mxu0  ;;  %v7630_v51 = vpop.f32.mrf.mxu1  ;;  %8860 = vst [vmem:[#allocation48_spill] sm:$0xff] %v7656_v4  ;;  %v3349_v13 = vsub.f32 %v8861_v46, %v3234_v58  ;;  %5477 = vpow2.f32 %v3421_v14  ;;  %v8865_v58 = vld [vmem:[#allocation57_spill] sm:$0xff]  ;;  %v8866_v14 = vld [vmem:[#allocation23_spill] sm:$0xff] }
 0x3ac   : > { %3291 = vmax.xlane.f32.xlu1 %v7625_v42  ;;  %v8856_v42 = vld [vmem:[#allocation52_spill] sm:$0xff]  ;;  %v3425_v63 = vmul.f32 1.442695, %v3349_v13  ;;  %v3364_v13 = vsub.f32 %v8866_v14, %v3264_v24  ;;  %v8873_v14 = vld [vmem:[#allocation50_spill] sm:$0xff] }
 0x3ad   : > { %3283 = vmax.xlane.f32.xlu0 %v7636_v41  ;;  %3287 = vmax.xlane.f32.xlu2 %v7641_v57  ;;  %v7662_v59 = vpop.f32.mrf.mxu3  ;;  %v7664_v5 = vpop.eup %5473  ;;  %v8868_v41 = vld [vmem:[#allocation55_spill] sm:$0xff] }
 0x3ae   : > { %1893 = vmatmul.bf16.gmra.mxu0 %v8856_v42  ;;  %2062 = vmatmul.bf16.gmra.mxu1 %v8857_v34  ;;  %8862 = vst [vmem:[#allocation47_spill] sm:$0xff] %v7664_v5  ;;  %v7670_v57 = vpop.xlane.xlu2 %3231  ;;  %5479 = vpow2.f32 %v3425_v63  ;;  %v3455_v54 = vmul.f32 1.442695, %v3364_v13 }
 0x3af   : > { %v7666_v7 = vpop.eup %5475 }
 0x3b0   : > { %8863 = vst [vmem:[#allocation11_spill] sm:$0xff] %v7666_v7  ;;  %v7668_v34 = vpop.eup %5477  ;;  %5481 = vpow2.f32 %v3455_v54 }
 0x3b1   : > { %8864 = vst [vmem:[#allocation18_spill] sm:$0xff] %v7668_v34  ;;  %v3268_v33 = vpop.xlane.xlu0 %3267 }
 0x3b2   : > { %v1856_v2 = vpop.f32.mrf.mxu0  ;;  %v2025_v42 = vpop.f32.mrf.mxu1 }
 0x3b4   : > { %3307 = vmax.xlane.f32.xlu1 %v7654_v17 }
 0x3b5   : > { %3573 = vadd.xlane.f32.xlu0 %v7649_v30  ;;  %3577 = vadd.xlane.f32.xlu2 %v7656_v4  ;;  %v8867_v4 = vld [vmem:[#allocation56_spill] sm:$0xff]  ;;  %v8869_v30 = vld [vmem:[#allocation54_spill] sm:$0xff]  ;;  %v3048_v56 = vpop.f32.mrf.mxu3 }
 0x3b6   : > { %v1857_v17 = vadd.f32 %v1856_v2, %v8869_v30 }
 0x3ba   : > { %v1859_v6 = vpop.f32.mrf.mxu0  ;;  %v2028_v8 = vpop.f32.mrf.mxu1 }
 0x3bb   : > { %v1860_v46 = vadd.f32 %v1859_v6, %v8865_v58  ;;  %v7681_v6 = vpop.eup %5479  ;;  %v8871_v58 = vld [vmem:[#allocation20_spill] sm:$0xff] }
 0x3bc   : > { %3581 = vadd.xlane.f32.xlu1 %v7666_v7  ;;  %v8870_v7 = vld [vmem:[#allocation53_spill] sm:$0xff] }
 0x3bd   : > { %3545 = vadd.xlane.f32.xlu0 %v7664_v5  ;;  %3549 = vadd.xlane.f32.xlu2 %v7668_v34  ;;  %v2029_v43 = vadd.f32 %v2028_v8, %v1860_v46  ;;  %v1855_v0 = vadd.f32 %v1854_v37, %v8870_v7  ;;  %v3362_v5 = vsub.f32 %v8871_v58, %v3260_v12  ;;  %v3236_v34 = vpop.xlane.xlu1 %3235  ;;  %v7692_v37 = vsel %vm3105_vm9, %v7603_v47, -inf  ;;  %v8877_v46 = vld [vmem:[#allocation107_spill] sm:$0xff] }
 0x3be   : > { %1898 = vmatmul.bf16.gmra.mxu0 %v8867_v4  ;;  %2067 = vmatmul.bf16.gmra.mxu1 %v8868_v41  ;;  %v1852_v4 = vadd.f32 %v7608_v62, %v8873_v14  ;;  %v2026_v41 = vadd.f32 %v2025_v42, %v1857_v17  ;;  %8875 = vst [vmem:[#allocation15_spill] sm:$0xff] %v7692_v37  ;;  %v7697_v12 = vsel %vm3099_vm3, %v3043_v40, -inf  ;;  %v8876_v62 = vld [vmem:[#allocation49_spill] sm:$0xff]  ;;  %v7704_v42 = vpop.xlane.xlu2 %3265 }
 0x3bf   : > { %v3879_v7 = vpack.c.bf16 %v2029_v43, %v2029_v43  ;;  %v1850_v17 = vadd.f32 %v7583_v50, %v8876_v62  ;;  %v2024_v47 = vadd.f32 %v7630_v51, %v1855_v0  ;;  %v3350_v48 = vsub.f32 %v8877_v46, %v3236_v34  ;;  %v3240_v62 = vpop.xlane.xlu0 %3239  ;;  %v8879_v51 = vld [vmem:[#allocation61_spill] sm:$0xff] }
 0x3c0   : > { %v3451_v40 = vmul.f32 1.442695, %v3362_v5  ;;  %v3878_v43 = vpack.c.bf16 %v2026_v41, %v2026_v41 }
 0x3c1   : > { %v2019_v50 = vadd.f32 %v7592_v9, %v1850_v17  ;;  %v3877_v54 = vpack.c.bf16 %v2024_v47, %v2024_v47 }
 0x3c2   : > { %v1861_v63 = vpop.f32.mrf.mxu0  ;;  %v2030_v2 = vpop.f32.mrf.mxu1  ;;  %5483 = vpow2.f32 %v3451_v40  ;;  %v4135_v41 = vunpack.c.l.b16 %v3878_v43 }
 0x3c3   : > { %v1862_v24 = vadd.f32 %v1861_v63, %v8872_v1  ;;  %v3366_v1 = vsub.f32 %v7356_v26, %v3268_v33  ;;  %v8878_v63 = vld [vmem:[#allocation46_spill] sm:$0xff]  ;;  %v2021_v33 = vadd.f32 %v7615_v49, %v1852_v4  ;;  %v7718_v49 = vpop.eup %5481  ;;  %v4134_v17 = vunpack.c.l.b16 %v3877_v54 }
 0x3c4   : > { %3553 = vadd.xlane.f32.xlu1 %v7681_v6  ;;  %v1847_v26 = vadd.f32 %v7559_v23, %v8878_v63  ;;  %v7716_v23 = vsel %vm3101_vm5, %v3048_v56, -inf  ;;  %v3352_v56 = vsub.f32 %v7398_v55, %v3240_v62  ;;  %v3873_v63 = vpack.c.bf16 %v7551_v3, %v7551_v3 }
 0x3c5   : > { %v2031_v8 = vadd.f32 %v2030_v2, %v1862_v24  ;;  %3289 = vmax.xlane.f32.xlu0 %v7692_v37  ;;  %3309 = vmax.xlane.f32.xlu2 %v7697_v12  ;;  %v3459_v58 = vmul.f32 1.442695, %v3366_v1  ;;  %v4136_v24 = vunpack.c.l.b16 %v3879_v7  ;;  %v3427_v2 = vmul.f32 1.442695, %v3350_v48  ;;  %v8880_v7 = vld [vmem:[#allocation22_spill] sm:$0xff] }
 0x3c6   : > { %v2016_v34 = vadd.f32 %v7571_v60, %v1847_v26  ;;  %v3876_v4 = vpack.c.bf16 %v2021_v33, %v2021_v33  ;;  %v7726_v1 = vsel %vm3097_vm1, %v7585_v44, -inf  ;;  %v3875_v60 = vpack.c.bf16 %v2019_v50, %v2019_v50  ;;  %v7733_v47 = vpop.xlane.xlu2 %3237  ;;  %v8882_v44 = vld [vmem:[#allocation59_spill] sm:$0xff] }
 0x3c7   : > { %v3880_v13 = vpack.c.bf16 %v2031_v8, %v2031_v8  ;;  %5485 = vpow2.f32 %v3459_v58  ;;  %v3348_v8 = vsub.f32 %v8880_v7, %v7670_v57  ;;  %v4144_v48 = vpack.c.b16 %v4135_v41, %v4134_v17  ;;  %v3270_v58 = vpop.xlane.xlu1 %3269 }
 0x3c8   : > { %5487 = vpow2.f32 %v3427_v2  ;;  %v3874_v46 = vpack.c.bf16 %v2016_v34, %v2016_v34  ;;  %v4133_v55 = vunpack.c.l.b16 %v3876_v4  ;;  %v7737_v40 = vpop.eup %5483  ;;  %v4132_v26 = vunpack.c.l.b16 %v3875_v60 }
 0x3c9   : > { %v4137_v14 = vunpack.c.l.b16 %v3880_v13  ;;  %v3431_v13 = vmul.f32 1.442695, %v3352_v56  ;;  %v3423_v57 = vmul.f32 1.442695, %v3348_v8  ;;  %v4130_v3 = vunpack.c.l.b16 %v3873_v63 }
 0x3ca   : > { %v1864_v37 = vpop.f32.mrf.mxu0  ;;  %v2033_v9 = vpop.f32.mrf.mxu1  ;;  %v4131_v54 = vunpack.c.l.b16 %v3874_v46  ;;  %v4143_v62 = vpack.c.b16 %v4133_v55, %v4132_v26  ;;  %v8888_v26 = vld [vmem:[#allocation30_spill] sm:$0xff] }
 0x3cb   : > { %v4145_v0 = vpack.c.b16 %v4137_v14, %v4136_v24  ;;  %v1865_v5 = vadd.f32 %v1864_v37, %v8879_v51  ;;  %v3050_v37 = vpop.f32.mrf.mxu3  ;;  %v8884_v24 = vld [vmem:[#allocation63_spill] sm:$0xff]  ;;  %5489 = vpow2.f32 %v3431_v13 }
 0x3cc   : > { %3313 = vmax.xlane.f32.xlu1 %v7716_v23  ;;  %5491 = vpow2.f32 %v3423_v57  ;;  %v4142_v56 = vpack.c.b16 %v4131_v54, %v4130_v3  ;;  %v7769_v63 = vsel %vm3102_vm6, %v3050_v37, -inf  ;;  %v3365_v57 = vsub.f32 %v8888_v26, %v7704_v42  ;;  %v8899_v26 = vld [vmem:[#allocation69_spill] sm:$0xff] }
 0x3cd   : > { %v2034_v52 = vadd.f32 %v2033_v9, %v1865_v5  ;;  %3305 = vmax.xlane.f32.xlu0 %v7726_v1  ;;  %3583 = vadd.xlane.f32.xlu2 %v7718_v49  ;;  %v7741_v43 = vpop.eup %5485  ;;  %v8885_v5 = vld [vmem:[#allocation34_spill] sm:$0xff] }
 0x3ce   : > { %1903 = vmatmul.bf16.gmra.mxu0 %v8881_v36  ;;  %4154 = vmatpush.bf16.msrb.mxu3 %v4145_v0  ;;  %8883 = vst [vmem:[#allocation7_spill] sm:$0xff] %v7741_v43  ;;  %v7744_v50 = vpop.eup %5487  ;;  %v3367_v34 = vsub.f32 %v8885_v5, %v3270_v58  ;;  %v7752_v9 = vpop.xlane.xlu2 %3271  ;;  %v8887_v36 = vld [vmem:[#allocation65_spill] sm:$0xff]  ;;  %v8889_v58 = vld [vmem:[#allocation64_spill] sm:$0xff]  ;;  %v7797_v5 = vsel %vm3100_vm4, %v7662_v59, -inf }
 0x3cf   : > { %2072 = vmatmul.bf16.gmra.mxu1 %v8882_v44  ;;  %v3881_v0 = vpack.c.bf16 %v2034_v52, %v2034_v52  ;;  %v3274_v46 = vpop.xlane.xlu1 %3273 }
 0x3d0   : > { %v3461_v52 = vmul.f32 1.442695, %v3367_v34  ;;  %v3351_v34 = vsub.f32 %v8895_v11, %v7733_v47 }
 0x3d1   : > { %v7754_v60 = vunpack.c.l.b16 %v3881_v0  ;;  %v7758_v17 = vpop.eup %5489 }
 0x3d2   : > { %4155 = vmatpush.bf16.msrb.mxu3 %v4144_v48  ;;  %v1866_v33 = vpop.f32.mrf.mxu0  ;;  %v2035_v2 = vpop.f32.mrf.mxu1  ;;  %8886 = vst [vmem:[#allocation10_spill] sm:$0xff] %v7758_v17  ;;  %5493 = vpow2.f32 %v3461_v52 }
 0x3d3   : > { %v1867_v14 = vadd.f32 %v1866_v33, %v8884_v24  ;;  %v7750_v4 = vpop.f32.mrf.mxu3  ;;  %v7763_v48 = vpop.eup %5491  ;;  %v8890_v24 = vpack.c.b16 %v7536_v16, %v7534_v18 }
 0x3d4   : > { %3587 = vadd.xlane.f32.xlu1 %v7741_v43  ;;  %v3562_v52 = vpop.xlane.xlu0 %3561 }
 0x3d5   : > { %v2036_v51 = vadd.f32 %v2035_v2, %v1867_v14  ;;  %3579 = vadd.xlane.f32.xlu0 %v7737_v40  ;;  %3555 = vadd.xlane.f32.xlu2 %v7744_v50  ;;  %v3369_v14 = vsub.f32 %v7416_v19, %v3274_v46  ;;  %v3457_v2 = vmul.f32 1.442695, %v3365_v57 }
 0x3d6   : > { %4156 = vmatpush.bf16.msrb.mxu3 %v4143_v62  ;;  %v8892_v62 = vpack.c.b16 %v7497_v38, %v7495_v22 }
 0x3d7   : > { %v3882_v41 = vpack.c.bf16 %v2036_v51, %v2036_v51  ;;  %v3465_v42 = vmul.f32 1.442695, %v3369_v14  ;;  %v8893_v51 = vld [vmem:[#allocation66_spill] sm:$0xff]  ;;  %5495 = vpow2.f32 %v3457_v2 }
 0x3d8   : > { %v7790_v16 = vpop.eup %5493 }
 0x3d9   : > { %v7756_v7 = vunpack.c.l.b16 %v3882_v41  ;;  %8894 = vst [vmem:[#allocation27_spill] sm:$0xff] %v7790_v16  ;;  %5497 = vpow2.f32 %v3465_v42  ;;  %v8896_v41 = vpack.c.b16 %v7456_v39, %v7454_v27 }
 0x3da   : > { %4157 = vmatpush.bf16.msrb.mxu3 %v4142_v56  ;;  %v1869_v8 = vpop.f32.mrf.mxu0  ;;  %v2038_v13 = vpop.f32.mrf.mxu1 }
 0x3db   : > { %v1870_v44 = vadd.f32 %v1869_v8, %v8887_v36  ;;  %v3055_v54 = vpop.f32.mrf.mxu3  ;;  %v3429_v36 = vmul.f32 1.442695, %v3351_v34 }
 0x3dc   : > { %3559 = vadd.xlane.f32.xlu1 %v7758_v17  ;;  %v7788_v18 = vsel %vm3104_vm8, %v3055_v54, -inf  ;;  %v8951_v17 = vld [vmem:[#allocation86_spill] sm:$0xff] }
 0x3dd   : > { %v2039_v33 = vadd.f32 %v2038_v13, %v1870_v44  ;;  %3551 = vadd.xlane.f32.xlu0 %v7763_v48  ;;  %3315 = vmax.xlane.f32.xlu2 %v7769_v63  ;;  %v8897_v44 = vpack.c.b16 %v7425_v21, %v7423_v10  ;;  %v7815_v47 = vpop.eup %5495  ;;  %v8901_v21 = vld [vmem:[#allocation68_spill] sm:$0xff] }
 0x3de   : > { %1908 = vmatmul.bf16.gmra.mxu0 %v8889_v58  ;;  %4158 = vmatpush.bf16.msrb.mxu3 %v8890_v24  ;;  %8898 = vst [vmem:[#allocation24_spill] sm:$0xff] %v7815_v47  ;;  %v3280_v13 = vpop.xlane.xlu1 %3279  ;;  %v8902_v24 = vld [vmem:[#allocation67_spill] sm:$0xff] }
 0x3df   : > { %2077 = vmatmul.bf16.gmra.mxu1 %v8891_v45  ;;  %v3883_v22 = vpack.c.bf16 %v2039_v33, %v2039_v33  ;;  %v7820_v57 = vpop.eup %5497  ;;  %v3372_v10 = vsub.f32 %v7466_v25, %v3280_v13 }
 0x3e0   : > { %v3530_v37 = vpop.xlane.xlu2 %3529  ;;  %8900 = vst [vmem:[#allocation52_spill] sm:$0xff] %v7820_v57 }
 0x3e1   : > { %v7808_v59 = vunpack.c.l.b16 %v3883_v22  ;;  %5499 = vrcp.f32 %v3530_v37  ;;  %v3471_v2 = vmul.f32 1.442695, %v3372_v10  ;;  %v8903_v37 = vld [vmem:[#allocation70_spill] sm:$0xff] }
 0x3e2   : > { %4159 = vmatpush.bf16.msrb.mxu3 %v8892_v62  ;;  %v1871_v0 = vpop.f32.mrf.mxu0  ;;  %v2040_v19 = vpop.f32.mrf.mxu1  ;;  %5501 = vpow2.f32 %v3429_v36 }
 0x3e3   : > { %v1872_v3 = vadd.f32 %v1871_v0, %v8893_v51  ;;  %v3058_v54 = vpop.f32.mrf.mxu3 }
 0x3e4   : > { %3319 = vmax.xlane.f32.xlu1 %v7788_v18  ;;  %v7833_v25 = vsel %vm3105_vm9, %v3058_v54, -inf }
 0x3e5   : > { %v2041_v38 = vadd.f32 %v2040_v19, %v1872_v3  ;;  %3311 = vmax.xlane.f32.xlu0 %v7797_v5  ;;  %3589 = vadd.xlane.f32.xlu2 %v7790_v16  ;;  %8905 = vst [vmem:[#allocation106_spill] sm:$0xff] %v7833_v25  ;;  %v3368_v19 = vsub.f32 %v7405_v53, %v7752_v9 }
 0x3e6   : > { %4160 = vmatpush.bf16.msrb.mxu3 %v8896_v41 }
 0x3e7   : > { %v3884_v56 = vpack.c.bf16 %v2041_v38, %v2041_v38  ;;  %v5500_v62 = vpop.eup %5499  ;;  %v3463_v36 = vmul.f32 1.442695, %v3368_v19 }
 0x3e8   : > { %v7806_v28 = vpop.xlane.xlu2 %3275  ;;  %v7828_v51 = vpop.eup %5501  ;;  %v3721_v11 = vmul.f32 %v5500_v62, %v7472_v15 }
 0x3e9   : > { %v7810_v8 = vunpack.c.l.b16 %v3884_v56  ;;  %8904 = vst [vmem:[#allocation51_spill] sm:$0xff] %v7828_v51 }
 0x3ea   : > { %4161 = vmatpush.bf16.msrb.mxu3 %v8897_v44  ;;  %v1874_v46 = vpop.f32.mrf.mxu0  ;;  %v2043_v33 = vpop.f32.mrf.mxu1  ;;  %v3785_v9 = vpack.c.bf16 %v3721_v11, %v3721_v11 }
 0x3eb   : > { %v1875_v27 = vadd.f32 %v1874_v46, %v8899_v26 }
 0x3ed   : > { %v2044_v58 = vadd.f32 %v2043_v33, %v1875_v27  ;;  %3585 = vadd.xlane.f32.xlu0 %v7815_v47  ;;  %3593 = vadd.xlane.f32.xlu2 %v7820_v57 }
 0x3ee   : > { %1913 = vmatmul.bf16.gmra.mxu0 %v8901_v21 }
 0x3ef   : > { %2082 = vmatmul.bf16.gmra.mxu1 %v8902_v24  ;;  %v3885_v22 = vpack.c.bf16 %v2044_v58, %v2044_v58  ;;  %v8907_v58 = vld [vmem:[#allocation73_spill] sm:$0xff]  ;;  %v7856_v24 = vsel %vm3103_vm7, %v7750_v4, -inf }
 0x3f0   : > { %v3536_v14 = vpop.xlane.xlu2 %3535  ;;  %v3532_v45 = vpop.xlane.xlu0 %3531  ;;  %8908 = vst [vmem:[#allocation23_spill] sm:$0xff] %v7856_v24 }
 0x3f1   : > { %5503 = vrcp.f32 %v3532_v45  ;;  %v7840_v34 = vpop.xlane.xlu1 %3569  ;;  %v7842_v44 = vunpack.c.l.b16 %v3885_v22  ;;  %v3929_v45 = vunpack.c.l.b16 %v3785_v9  ;;  %v8913_v9 = vld [vmem:[#allocation35_spill] sm:$0xff] }
 0x3f2   : > { %v1876_v42 = vpop.f32.mrf.mxu0  ;;  %5505 = vrcp.f32 %v3562_v52  ;;  %v2045_v3 = vpop.f32.mrf.mxu1 }
 0x3f3   : > { %v1877_v0 = vadd.f32 %v1876_v42, %v8903_v37  ;;  %5507 = vpow2.f32 %v3471_v2  ;;  %v8909_v42 = vld [vmem:[#allocation72_spill] sm:$0xff] }
 0x3f5   : > { %v2046_v38 = vadd.f32 %v2045_v3, %v1877_v0  ;;  %3557 = vadd.xlane.f32.xlu0 %v7828_v51  ;;  %3321 = vmax.xlane.f32.xlu2 %v7833_v25 }
 0x3f7   : > { %v3886_v41 = vpack.c.bf16 %v2046_v38, %v2046_v38  ;;  %v5504_v30 = vpop.eup %5503 }
 0x3f8   : > { %v3568_v56 = vpop.xlane.xlu2 %3567  ;;  %v3564_v52 = vpop.xlane.xlu0 %3563  ;;  %v3722_v13 = vmul.f32 %v5504_v30, %v7506_v31 }
 0x3f9   : > { %v7844_v46 = vunpack.c.l.b16 %v3886_v41  ;;  %v5506_v53 = vpop.eup %5505  ;;  %5509 = vrcp.f32 %v3564_v52  ;;  %v8912_v41 = vld [vmem:[#allocation74_spill] sm:$0xff] }
 0x3fa   : > { %v1879_v26 = vpop.f32.mrf.mxu0  ;;  %v7849_v27 = vpop.eup %5507  ;;  %5511 = vrcp.f32 %v3536_v14  ;;  %v3786_v33 = vpack.c.bf16 %v3722_v13, %v3722_v13  ;;  %v3737_v31 = vmul.f32 %v5506_v53, %v7427_v29  ;;  %v3370_v14 = vsub.f32 %v7485_v32, %v7806_v28 }
 0x3fb   : > { %8906 = vst [vmem:[#allocation57_spill] sm:$0xff] %v7849_v27  ;;  %v1880_v10 = vadd.f32 %v1879_v26, %v8907_v58  ;;  %v2048_v21 = vpop.f32.mrf.mxu1  ;;  %5513 = vpow2.f32 %v3463_v36 }
 0x3fc   : > { %v3930_v54 = vunpack.c.l.b16 %v3786_v33  ;;  %v3801_v3 = vpack.c.bf16 %v3737_v31, %v3737_v31  ;;  %v3467_v38 = vmul.f32 1.442695, %v3370_v14  ;;  %v8914_v14 = vld [vmem:[#allocation28_spill] sm:$0xff] }
 0x3fd   : > { %3317 = vmax.xlane.f32.xlu0 %v7856_v24  ;;  %3599 = vadd.xlane.f32.xlu2 %v7849_v27  ;;  %v2049_v2 = vadd.f32 %v2048_v21, %v1880_v10 }
 0x3fe   : > { %1918 = vmatmul.bf16.gmra.mxu0 %v8909_v42  ;;  %v3945_v37 = vpack.c.b16 %v3930_v54, %v3929_v45  ;;  %v4074_v36 = vunpack.c.l.b16 %v3801_v3  ;;  %v8916_v3 = vld [vmem:[#allocation77_spill] sm:$0xff] }
 0x3ff   : > { %v7864_v62 = vpop.xlane.xlu1 %3541  ;;  %2087 = vmatmul.bf16.gmra.mxu1 %v8910_v20  ;;  %v5510_v4 = vpop.eup %5509 }
 0x400   : > { %v3538_v0 = vpop.xlane.xlu2 %3537  ;;  %v3534_v29 = vpop.xlane.xlu0 %3533  ;;  %v3738_v19 = vmul.f32 %v5510_v4, %v7523_v61  ;;  %4017 = vmatmul.bf16.vlgmr.msrb.gmra.mxu2 %v3945_v37  ;;  %v3887_v61 = vpack.c.bf16 %v2049_v2, %v2049_v2 }
 0x401   : > { %v5512_v22 = vpop.eup %5511  ;;  %5515 = vrcp.f32 %v3534_v29 }
 0x402   : > { %v7868_v32 = vpop.eup %5513  ;;  %5517 = vrcp.f32 %v3568_v56  ;;  %v3802_v28 = vpack.c.bf16 %v3738_v19, %v3738_v19  ;;  %v1881_v11 = vpop.f32.mrf.mxu0  ;;  %v3724_v13 = vmul.f32 %v5512_v22, %v8913_v9  ;;  %v7876_v20 = vunpack.c.l.b16 %v3887_v61 }
 0x403   : > { %8911 = vst [vmem:[#allocation56_spill] sm:$0xff] %v7868_v32  ;;  %v1882_v52 = vadd.f32 %v1881_v11, %v8912_v41  ;;  %v2050_v30 = vpop.f32.mrf.mxu1  ;;  %5519 = vpow2.f32 %v3467_v38  ;;  %v8917_v38 = vld [vmem:[#allocation29_spill] sm:$0xff] }
 0x404   : > { %v4075_v53 = vunpack.c.l.b16 %v3802_v28  ;;  %v3788_v42 = vpack.c.bf16 %v3724_v13, %v3724_v13  ;;  %v8919_v13 = vld [vmem:[#allocation75_spill] sm:$0xff] }
 0x405   : > { %3591 = vadd.xlane.f32.xlu0 %v7868_v32  ;;  %v2051_v26 = vadd.f32 %v2050_v30, %v1882_v52 }
 0x406   : > { %v4090_v33 = vpack.c.b16 %v4075_v53, %v4074_v36  ;;  %v3932_v52 = vunpack.c.l.b16 %v3788_v42  ;;  %v8918_v36 = vld [vmem:[#allocation76_spill] sm:$0xff] }
 0x407   : > { %v7873_v58 = vpop.xlane.xlu1 %3285  ;;  %v5516_v10 = vpop.eup %5515  ;;  %v3888_v21 = vpack.c.bf16 %v2051_v26, %v2051_v26 }
 0x408   : > { %v3282_v56 = vpop.xlane.xlu2 %3281  ;;  %v3566_v31 = vpop.xlane.xlu0 %3565  ;;  %4162 = vmatmul.bf16.vlgmr.msrb.gmra.mxu3 %v4090_v33  ;;  %v3723_v54 = vmul.f32 %v5516_v10, %v8914_v14  ;;  %v8921_v14 = vld [vmem:[#allocation45_spill] sm:$0xff] }
 0x409   : > { %v5518_v45 = vpop.eup %5517  ;;  %5521 = vrcp.f32 %v3566_v31  ;;  %v7878_v4 = vunpack.c.l.b16 %v3888_v21  ;;  %v7891_v26 = vpop.f32.mrf.mxu2  ;;  %v8920_v21 = vld [vmem:[#allocation37_spill] sm:$0xff] }
 0x40a   : > { %v1884_v37 = vpop.f32.mrf.mxu0  ;;  %v3787_v2 = vpack.c.bf16 %v3723_v54, %v3723_v54  ;;  %v7880_v29 = vpop.eup %5519  ;;  %v3740_v28 = vmul.f32 %v5518_v45, %v8917_v38 }
 0x40b   : > { %8915 = vst [vmem:[#allocation55_spill] sm:$0xff] %v7880_v29  ;;  %v1885_v19 = vadd.f32 %v1884_v37, %v8916_v3  ;;  %v2053_v22 = vpop.f32.mrf.mxu1  ;;  %v3060_v37 = vpop.f32.mrf.mxu3 }
 0x40c   : > { %v3931_v41 = vunpack.c.l.b16 %v3787_v2  ;;  %v3804_v45 = vpack.c.bf16 %v3740_v28, %v3740_v28  ;;  %v7903_v38 = vsel %vm3106_vm10, %v3060_v37, -inf }
 0x40d   : > { %3595 = vadd.xlane.f32.xlu0 %v7880_v29  ;;  %v7887_v30 = vadd.f32 %v2053_v22, %v1885_v19  ;;  %8923 = vst [vmem:[#allocation54_spill] sm:$0xff] %v7903_v38  ;;  %v8929_v22 = vld [vmem:[#allocation39_spill] sm:$0xff] }
 0x40e   : > { %1923 = vmatmul.bf16.gmra.mxu0 %v8918_v36  ;;  %v3946_v61 = vpack.c.b16 %v3932_v52, %v3931_v41  ;;  %v4077_v41 = vunpack.c.l.b16 %v3804_v45  ;;  %v8924_v52 = vld [vmem:[#allocation41_spill] sm:$0xff] }
 0x40f   : > { %v5522_v53 = vpop.eup %5521  ;;  %v3576_v9 = vpop.xlane.xlu1 %3575  ;;  %2092 = vmatmul.bf16.gmra.mxu1 %v8919_v13  ;;  %v3373_v36 = vsub.f32 %v8924_v52, %v3282_v56 }
 0x410   : > { %v3572_v33 = vpop.xlane.xlu2 %3571  ;;  %v3278_v10 = vpop.xlane.xlu0 %3277  ;;  %v3739_v31 = vmul.f32 %v5522_v53, %v8920_v21  ;;  %4022 = vmatmul.bf16.gmra.mxu2 %v3946_v61 }
 0x411   : > { %v3371_v54 = vsub.f32 %v8921_v14, %v3278_v10  ;;  %5523 = vrcp.f32 %v3572_v33  ;;  %v2872_v10 = vpop.f32.mrf.mxu2 }
 0x412   : > { %v3803_v42 = vpack.c.bf16 %v3739_v31, %v3739_v31  ;;  %5525 = vrcp.f32 %v7840_v34  ;;  %v7896_v3 = vpop.f32.mrf.mxu0  ;;  %v3473_v31 = vmul.f32 1.442695, %v3373_v36  ;;  %v8931_v36 = vld [vmem:[#allocation80_spill] sm:$0xff] }
 0x413   : > { %v3469_v2 = vmul.f32 1.442695, %v3371_v54  ;;  %5527 = vrcp.f32 %v3538_v0  ;;  %v7898_v19 = vpop.f32.mrf.mxu1  ;;  %v8926_v54 = vld [vmem:[#allocation42_spill] sm:$0xff] }
 0x414   : > { %v4076_v28 = vunpack.c.l.b16 %v3803_v42 }
 0x415   : > { %5529 = vpow2.f32 %v3469_v2  ;;  %3323 = vmax.xlane.f32.xlu0 %v7903_v38  ;;  %v7920_v2 = vsel %vm3108_vm12, %v2872_v10, -inf  ;;  %v8933_v10 = vld [vmem:[#allocation44_spill] sm:$0xff] }
 0x416   : > { %v4091_v53 = vpack.c.b16 %v4077_v41, %v4076_v28  ;;  %8928 = vst [vmem:[#allocation20_spill] sm:$0xff] %v7920_v2  ;;  %v8930_v41 = vld [vmem:[#allocation32_spill] sm:$0xff] }
 0x417   : > { %v7907_v34 = vpop.xlane.xlu1 %3547  ;;  %v5524_v13 = vpop.eup %5523 }
 0x418   : > { %v3544_v61 = vpop.xlane.xlu2 %3543  ;;  %v3540_v0 = vpop.xlane.xlu0 %3539  ;;  %4167 = vmatmul.bf16.gmra.mxu3 %v4091_v53  ;;  %v3742_v37 = vmul.f32 %v5524_v13, %v8926_v54  ;;  %v8932_v13 = vld [vmem:[#allocation78_spill] sm:$0xff] }
 0x419   : > { %v5526_v33 = vpop.eup %5525  ;;  %5531 = vrcp.f32 %v3540_v0 }
 0x41a   : > { %v5528_v21 = vpop.eup %5527  ;;  %v7911_v45 = vpop.f32.mrf.mxu0  ;;  %v3741_v52 = vmul.f32 %v5526_v33, %v8930_v41  ;;  %5533 = vpow2.f32 %v3473_v31  ;;  %v3806_v0 = vpack.c.bf16 %v3742_v37, %v3742_v37 }
 0x41b   : > { %v7909_v14 = vpop.eup %5529  ;;  %v7915_v56 = vpop.f32.mrf.mxu1  ;;  %v3725_v28 = vmul.f32 %v5528_v21, %v8929_v22  ;;  %5535 = vrcp.f32 %v3544_v61 }
 0x41c   : > { %8925 = vst [vmem:[#allocation53_spill] sm:$0xff] %v7909_v14  ;;  %3597 = vadd.xlane.f32.xlu1 %v7909_v14  ;;  %v3805_v14 = vpack.c.bf16 %v3741_v52, %v3741_v52  ;;  %5537 = vrcp.f32 %v7864_v62  ;;  %v4079_v31 = vunpack.c.l.b16 %v3806_v0 }
 0x41d   : > { %3295 = vmax.xlane.f32.xlu0 %v7920_v2  ;;  %v3789_v11 = vpack.c.bf16 %v3725_v28, %v3725_v28  ;;  %5539 = vrcp.f32 %v3576_v9 }
 0x41e   : > { %1928 = vmatmul.bf16.gmra.mxu0 %v8931_v36 }
 0x41f   : > { %v7926_v53 = vpop.xlane.xlu1 %3291  ;;  %2097 = vmatmul.bf16.gmra.mxu1 %v8932_v13  ;;  %v5532_v54 = vpop.eup %5531  ;;  %v3933_v41 = vunpack.c.l.b16 %v3789_v11  ;;  %v4078_v13 = vunpack.c.l.b16 %v3805_v14 }
 0x420   : > { %v7929_v55 = vpop.xlane.xlu2 %3287  ;;  %v7931_v39 = vpop.xlane.xlu0 %3283  ;;  %v3726_v15 = vmul.f32 %v5532_v54, %v8933_v10  ;;  %v8935_v10 = vld [vmem:[#allocation8_spill] sm:$0xff] }
 0x421   : > { %v7937_v22 = vpop.eup %5533  ;;  %v4092_v52 = vpack.c.b16 %v4079_v31, %v4078_v13  ;;  %v8939_v13 = vld [vmem:[#allocation84_spill] sm:$0xff] }
 0x422   : > { %v7935_v33 = vpop.f32.mrf.mxu0  ;;  %v3790_v21 = vpack.c.bf16 %v3726_v15, %v3726_v15  ;;  %8934 = vst [vmem:[#allocation58_spill] sm:$0xff] %v7937_v22  ;;  %v5536_v61 = vpop.eup %5535 }
 0x423   : > { %v7939_v37 = vpop.f32.mrf.mxu1  ;;  %v5538_v0 = vpop.eup %5537 }
 0x424   : > { %v3934_v36 = vunpack.c.l.b16 %v3790_v21  ;;  %v5540_v9 = vpop.eup %5539  ;;  %v8937_v21 = vld [vmem:[#allocation25_spill] sm:$0xff] }
 0x425   : > { %3601 = vadd.xlane.f32.xlu0 %v7937_v22  ;;  %v8936_v22 = vld [vmem:[#allocation12_spill] sm:$0xff]  ;;  %v3727_v31 = vmul.f32 %v5538_v0, %v8937_v21 }
 0x426   : > { %v3947_v28 = vpack.c.b16 %v3934_v36, %v3933_v41  ;;  %v3728_v11 = vmul.f32 %v5536_v61, %v8936_v22  ;;  %v8938_v41 = vld [vmem:[#allocation40_spill] sm:$0xff]  ;;  %v8941_v22 = vld [vmem:[#allocation13_spill] sm:$0xff] }
 0x427   : > { %v3308_v54 = vpop.xlane.xlu1 %3307  ;;  %v3744_v36 = vmul.f32 %v5540_v9, %v8938_v41  ;;  %v3791_v29 = vpack.c.bf16 %v3727_v31, %v3727_v31  ;;  %v7960_v41 = vpop.f32.mrf.mxu3 }
 0x428   : > { %v3386_v62 = vsub.f32 %v8935_v10, %v3308_v54  ;;  %v7943_v27 = vpop.xlane.xlu2 %3577  ;;  %v3574_v15 = vpop.xlane.xlu0 %3573  ;;  %4027 = vmatmul.bf16.gmra.mxu2 %v3947_v28  ;;  %4172 = vmatmul.bf16.gmra.mxu3 %v4092_v52  ;;  %v8940_v10 = vld [vmem:[#allocation83_spill] sm:$0xff]  ;;  %v3792_v28 = vpack.c.bf16 %v3728_v11, %v3728_v11 }
 0x429   : > { %5541 = vrcp.f32 %v3574_v15  ;;  %v3808_v61 = vpack.c.bf16 %v3744_v36, %v3744_v36 }
 0x42a   : > { %v3499_v2 = vmul.f32 1.442695, %v3386_v62  ;;  %v3936_v9 = vunpack.c.l.b16 %v3792_v28 }
 0x42b   : > { %v1894_v38 = vpop.f32.mrf.mxu0  ;;  %v7946_v14 = vpop.f32.mrf.mxu1  ;;  %v4081_v32 = vunpack.c.l.b16 %v3808_v61 }
 0x42c   : > { %5543 = vpow2.f32 %v3499_v2 }
 0x42e   : > { %1933 = vmatmul.bf16.gmra.mxu0 %v8939_v13  ;;  %v3935_v13 = vunpack.c.l.b16 %v3791_v29  ;;  %v7972_v29 = vsel %vm3107_vm11, %v7891_v26, -inf  ;;  %v8950_v26 = vld [vmem:[#allocation87_spill] sm:$0xff] }
 0x42f   : > { %v7951_v54 = vpop.xlane.xlu1 %3581  ;;  %2102 = vmatmul.bf16.gmra.mxu1 %v8940_v10  ;;  %v5542_v52 = vpop.eup %5541  ;;  %8945 = vst [vmem:[#allocation49_spill] sm:$0xff] %v7972_v29 }
 0x430   : > { %v7954_v62 = vpop.xlane.xlu2 %3549  ;;  %v3546_v15 = vpop.xlane.xlu0 %3545  ;;  %v3743_v2 = vmul.f32 %v5542_v52, %v8941_v22  ;;  %v3948_v52 = vpack.c.b16 %v3936_v9, %v3935_v13 }
 0x431   : > { %5545 = vrcp.f32 %v3546_v15 }
 0x432   : > { %v7957_v57 = vpop.eup %5543  ;;  %v3807_v21 = vpack.c.bf16 %v3743_v2, %v3743_v2  ;;  %5547 = vrcp.f32 %v7907_v34 }
 0x433   : > { %8942 = vst [vmem:[#allocation50_spill] sm:$0xff] %v7957_v57  ;;  %v1896_v0 = vpop.f32.mrf.mxu0  ;;  %3627 = vadd.xlane.f32.xlu2 %v7957_v57  ;;  %v2065_v11 = vpop.f32.mrf.mxu1 }
 0x434   : > { %v4080_v10 = vunpack.c.l.b16 %v3807_v21  ;;  %v7976_v21 = vpop.f32.mrf.mxu2  ;;  %v1897_v51 = vadd.f32 %v1896_v0, %v8951_v17 }
 0x436   : > { %v4093_v36 = vpack.c.b16 %v4081_v32, %v4080_v10  ;;  %v8946_v32 = vld [vmem:[#allocation47_spill] sm:$0xff] }
 0x437   : > { %v7963_v31 = vpop.xlane.xlu1 %3553  ;;  %v5546_v22 = vpop.eup %5545 }
 0x438   : > { %v3310_v16 = vpop.xlane.xlu2 %3309  ;;  %v7965_v15 = vpop.xlane.xlu0 %3289  ;;  %4032 = vmatmul.bf16.gmra.mxu2 %v3948_v52  ;;  %4177 = vmatmul.bf16.gmra.mxu3 %v4093_v36  ;;  %v3729_v9 = vmul.f32 %v5546_v22, %v8946_v32  ;;  %v8948_v52 = vld [vmem:[#allocation89_spill] sm:$0xff] }
 0x439   : > { %8943 = vst [vmem:[#allocation16_spill] sm:$0xff] %v7965_v15  ;;  %v3387_v57 = vsub.f32 %v7697_v12, %v3310_v16  ;;  %v5548_v28 = vpop.eup %5547  ;;  %v3065_v12 = vpop.f32.mrf.mxu3  ;;  %v8947_v16 = vld [vmem:[#allocation43_spill] sm:$0xff]  ;;  %v8949_v15 = vld [vmem:[#allocation88_spill] sm:$0xff] }
 0x43a   : > { %v3730_v10 = vmul.f32 %v5548_v28, %v8947_v16  ;;  %v7990_v28 = vsel %vm3108_vm12, %v3065_v12, -inf  ;;  %v8955_v12 = vld [vmem:[#allocation79_spill] sm:$0xff] }
 0x43b   : > { %v3501_v2 = vmul.f32 1.442695, %v3387_v57  ;;  %v1899_v61 = vpop.f32.mrf.mxu0  ;;  %3293 = vmax.xlane.f32.xlu2 %v7972_v29  ;;  %v2068_v13 = vpop.f32.mrf.mxu1  ;;  %v3793_v57 = vpack.c.bf16 %v3729_v9, %v3729_v9 }
 0x43c   : > { %v1900_v36 = vadd.f32 %v1899_v61, %v8948_v52  ;;  %v3794_v43 = vpack.c.bf16 %v3730_v10, %v3730_v10  ;;  %v8953_v61 = vld [vmem:[#allocation82_spill] sm:$0xff]  ;;  %v1887_v52 = vadd.f32 %v7896_v3, %v8955_v12 }
 0x43d   : > { %5549 = vpow2.f32 %v3501_v2  ;;  %v8952_v2 = vld [vmem:[#allocation85_spill] sm:$0xff]  ;;  %v1892_v9 = vadd.f32 %v7935_v33, %v8953_v61  ;;  %v3937_v16 = vunpack.c.l.b16 %v3793_v57 }
 0x43e   : > { %1938 = vmatmul.bf16.gmra.mxu0 %v8949_v15  ;;  %v1895_v25 = vadd.f32 %v1894_v38, %v8952_v2  ;;  %v2069_v47 = vadd.f32 %v2068_v13, %v1900_v36  ;;  %5551 = vrcp.f32 %v7943_v27  ;;  %v8954_v13 = vld [vmem:[#allocation90_spill] sm:$0xff]  ;;  %v8956_v36 = vld [vmem:[#allocation81_spill] sm:$0xff]  ;;  %v2877_v27 = vpop.f32.mrf.mxu2 }
 0x43f   : > { %v3314_v24 = vpop.xlane.xlu1 %3313  ;;  %2107 = vmatmul.bf16.gmra.mxu1 %v8950_v26  ;;  %v1890_v33 = vadd.f32 %v7911_v45, %v8956_v36  ;;  %v3938_v26 = vunpack.c.l.b16 %v3794_v43 }
 0x440   : > { %v7983_v29 = vpop.xlane.xlu2 %3583  ;;  %v3306_v22 = vpop.xlane.xlu0 %3305  ;;  %v3389_v38 = vsub.f32 %v7716_v23, %v3314_v24  ;;  %v2064_v57 = vadd.f32 %v7946_v14, %v1895_v25  ;;  %v8957_v23 = vld [vmem:[#allocation38_spill] sm:$0xff]  ;;  %v2056_v25 = vadd.f32 %v7898_v19, %v1887_v52 }
 0x441   : > { %v3385_v32 = vsub.f32 %v7726_v1, %v3306_v22  ;;  %v2066_v1 = vadd.f32 %v2065_v11, %v1897_v51  ;;  %v3895_v22 = vpack.c.bf16 %v2069_v47, %v2069_v47  ;;  %v3375_v24 = vsub.f32 %v8957_v23, %v7873_v58  ;;  %v3068_v61 = vpop.f32.mrf.mxu3  ;;  %v8959_v19 = vld [vmem:[#allocation6_spill] sm:$0xff] }
 0x442   : > { %v2061_v11 = vadd.f32 %v7939_v37, %v1892_v9  ;;  %v3949_v2 = vpack.c.b16 %v3938_v26, %v3937_v16  ;;  %v2059_v47 = vadd.f32 %v7915_v56, %v1890_v33  ;;  %v8019_v37 = vsel %vm3110_vm14, %v2877_v27, -inf  ;;  %v8961_v33 = vld [vmem:[#allocation91_spill] sm:$0xff] }
 0x443   : > { %v7992_v15 = vpop.eup %5549  ;;  %v3497_v17 = vmul.f32 1.442695, %v3385_v32  ;;  %v1901_v0 = vpop.f32.mrf.mxu0  ;;  %3327 = vmax.xlane.f32.xlu2 %v7990_v28  ;;  %v3894_v3 = vpack.c.bf16 %v2066_v1, %v2066_v1  ;;  %v3893_v9 = vpack.c.bf16 %v2064_v57, %v2064_v57  ;;  %v8029_v12 = vsel %vm3109_vm13, %v3068_v61, -inf }
 0x444   : > { %v1902_v10 = vadd.f32 %v1901_v0, %v8954_v13  ;;  %3629 = vadd.xlane.f32.xlu0 %v7992_v15  ;;  %v2070_v42 = vpop.f32.mrf.mxu1  ;;  %v3505_v0 = vmul.f32 1.442695, %v3389_v38  ;;  %v5552_v14 = vpop.eup %5551  ;;  %v3477_v38 = vmul.f32 1.442695, %v3375_v24  ;;  %v3892_v56 = vpack.c.bf16 %v2061_v11, %v2061_v11 }
 0x445   : > { %5553 = vpow2.f32 %v3497_v17  ;;  %v4281_v17 = vunpack.c.l.b16 %v3895_v22  ;;  %v4280_v52 = vunpack.c.l.b16 %v3894_v3  ;;  %v3890_v27 = vpack.c.bf16 %v2056_v25, %v2056_v25 }
 0x446   : > { %v2071_v51 = vadd.f32 %v2070_v42, %v1902_v10  ;;  %5555 = vrcp.f32 %v7954_v62  ;;  %v3374_v10 = vsub.f32 %v8959_v19, %v7931_v39  ;;  %v8962_v39 = vld [vmem:[#allocation48_spill] sm:$0xff]  ;;  %v4279_v23 = vunpack.c.l.b16 %v3893_v9 }
 0x447   : > { %v8009_v32 = vpop.xlane.xlu1 %3587  ;;  %v3745_v22 = vmul.f32 %v5552_v14, %v8962_v39 }
 0x448   : > { %v3896_v13 = vpack.c.bf16 %v2071_v51, %v2071_v51  ;;  %v8011_v45 = vpop.xlane.xlu2 %3555  ;;  %v3580_v43 = vpop.xlane.xlu0 %3579  ;;  %4037 = vmatmul.bf16.gmra.mxu2 %v3949_v2  ;;  %v3891_v51 = vpack.c.bf16 %v2059_v47, %v2059_v47  ;;  %v3475_v2 = vmul.f32 1.442695, %v3374_v10  ;;  %v4276_v10 = vunpack.c.l.b16 %v3890_v27 }
 0x449   : > { %5557 = vrcp.f32 %v3580_v43 }
 0x44a   : > { %v4282_v16 = vunpack.c.l.b16 %v3896_v13  ;;  %5559 = vpow2.f32 %v3505_v0  ;;  %v3889_v0 = vpack.c.bf16 %v7887_v30, %v7887_v30  ;;  %v8963_v13 = vld [vmem:[#allocation17_spill] sm:$0xff] }
 0x44b   : > { %v8021_v1 = vpop.eup %5553  ;;  %v1904_v42 = vpop.f32.mrf.mxu0  ;;  %3299 = vmax.xlane.f32.xlu2 %v8019_v37  ;;  %5561 = vpow2.f32 %v3477_v38  ;;  %v3376_v43 = vsub.f32 %v8963_v13, %v7929_v55  ;;  %v3809_v38 = vpack.c.bf16 %v3745_v22, %v3745_v22  ;;  %v8050_v55 = vsel %vm3107_vm11, %v7960_v41, -inf }
 0x44c   : > { %v4290_v36 = vpack.c.b16 %v4282_v16, %v4281_v17  ;;  %v1905_v26 = vadd.f32 %v1904_v42, %v8961_v33  ;;  %3329 = vmax.xlane.f32.xlu0 %v8029_v12  ;;  %3625 = vadd.xlane.f32.xlu1 %v8021_v1  ;;  %v2073_v57 = vpop.f32.mrf.mxu1  ;;  %v5556_v11 = vpop.eup %5555  ;;  %v4278_v17 = vunpack.c.l.b16 %v3892_v56  ;;  %v4289_v16 = vpack.c.b16 %v4280_v52, %v4279_v23  ;;  %v8964_v56 = vld [vmem:[#allocation18_spill] sm:$0xff] }
 0x44d   : > { %v4277_v42 = vunpack.c.l.b16 %v3891_v51  ;;  %v3731_v52 = vmul.f32 %v5556_v11, %v8964_v56  ;;  %v4275_v41 = vunpack.c.l.b16 %v3889_v0  ;;  %v4082_v39 = vunpack.c.l.b16 %v3809_v38 }
 0x44e   : > { %v2074_v24 = vadd.f32 %v2073_v57, %v1905_v26  ;;  %4299 = vmatpush.bf16.msra.mxu2 %v4290_v36  ;;  %v3479_v36 = vmul.f32 1.442695, %v3376_v43 }
 0x44f   : > { %v8035_v61 = vpop.xlane.xlu1 %3559  ;;  %v5558_v3 = vpop.eup %5557  ;;  %v4288_v33 = vpack.c.b16 %v4278_v17, %v4277_v42  ;;  %v4287_v11 = vpack.c.b16 %v4276_v10, %v4275_v41  ;;  %v3795_v13 = vpack.c.bf16 %v3731_v52, %v3731_v52 }
 0x450   : > { %v3316_v14 = vpop.xlane.xlu2 %3315  ;;  %v3552_v25 = vpop.xlane.xlu0 %3551  ;;  %v3746_v9 = vmul.f32 %v5558_v3, %v7737_v40  ;;  %v3897_v27 = vpack.c.bf16 %v2074_v24, %v2074_v24 }
 0x451   : > { %v3390_v47 = vsub.f32 %v7769_v63, %v3316_v14  ;;  %5563 = vrcp.f32 %v3552_v25  ;;  %v8043_v19 = vpop.eup %5559 }
 0x452   : > { %5565 = vrcp.f32 %v7983_v29  ;;  %4300 = vmatpush.bf16.msra.mxu2 %v4289_v16  ;;  %v3810_v40 = vpack.c.bf16 %v3746_v9, %v3746_v9  ;;  %v8965_v29 = vld [vmem:[#allocation92_spill] sm:$0xff]  ;;  %v8057_v34 = vpop.eup %5561  ;;  %v8067_v9 = vunpack.c.l.b16 %v3897_v27 }
 0x453   : > { %5567 = vpow2.f32 %v3475_v2  ;;  %v3507_v30 = vmul.f32 1.442695, %v3390_v47  ;;  %v1906_v63 = vpop.f32.mrf.mxu0  ;;  %3633 = vadd.xlane.f32.xlu2 %v8043_v19 }
 0x454   : > { %5569 = vrcp.f32 %v7951_v54  ;;  %v1907_v26 = vadd.f32 %v1906_v63, %v8965_v29  ;;  %3325 = vmax.xlane.f32.xlu1 %v8050_v55  ;;  %v2075_v57 = vpop.f32.mrf.mxu1  ;;  %v4083_v22 = vunpack.c.l.b16 %v3810_v40  ;;  %v8966_v40 = vld [vmem:[#allocation93_spill] sm:$0xff] }
 0x455   : > { %5571 = vpow2.f32 %v3507_v30 }
 0x456   : > { %v2076_v51 = vadd.f32 %v2075_v57, %v1907_v26  ;;  %4301 = vmatpush.bf16.msra.mxu2 %v4288_v33  ;;  %v4094_v3 = vpack.c.b16 %v4083_v22, %v4082_v39  ;;  %5573 = vpow2.f32 %v3479_v36  ;;  %v8967_v33 = vld [vmem:[#allocation11_spill] sm:$0xff]  ;;  %v8968_v57 = vpack.c.b16 %v7878_v4, %v7876_v20 }
 0x457   : > { %v5564_v23 = vpop.eup %5563  ;;  %v3320_v2 = vpop.xlane.xlu1 %3319  ;;  %5575 = vrcp.f32 %v8011_v45  ;;  %v3939_v45 = vunpack.c.l.b16 %v3795_v13 }
 0x458   : > { %v5566_v54 = vpop.eup %5565  ;;  %v3898_v43 = vpack.c.bf16 %v2076_v51, %v2076_v51  ;;  %v3392_v17 = vsub.f32 %v7788_v18, %v3320_v2  ;;  %v8060_v16 = vpop.xlane.xlu2 %3589  ;;  %v3732_v0 = vmul.f32 %v5564_v23, %v7763_v48  ;;  %4182 = vmatmul.bf16.gmra.mxu3 %v4094_v3  ;;  %5577 = vrcp.f32 %v7963_v31 }
 0x459   : > { %v3312_v14 = vpop.xlane.xlu0 %3311  ;;  %v8063_v25 = vpop.eup %5567  ;;  %v3748_v63 = vmul.f32 %v5566_v54, %v7718_v49  ;;  %v8969_v3 = vpack.c.b16 %v7844_v46, %v7842_v44 }
 0x45a   : > { %v3388_v24 = vsub.f32 %v7797_v5, %v3312_v14  ;;  %v5570_v47 = vpop.eup %5569  ;;  %v8069_v38 = vunpack.c.l.b16 %v3898_v43  ;;  %v3511_v10 = vmul.f32 1.442695, %v3392_v17  ;;  %4302 = vmatpush.bf16.msra.mxu2 %v4287_v11  ;;  %v3796_v18 = vpack.c.bf16 %v3732_v0, %v3732_v0  ;;  %v8081_v31 = vpop.f32.mrf.mxu3  ;;  %v8970_v43 = vld [vmem:[#allocation9_spill] sm:$0xff]  ;;  %v8971_v14 = vld [vmem:[#allocation94_spill] sm:$0xff]  ;;  %v9005_v5 = vld [vmem:[#allocation103_spill] sm:$0xff] }
 0x45b   : > { %v8071_v42 = vpop.eup %5571  ;;  %v1909_v30 = vpop.f32.mrf.mxu0  ;;  %3605 = vadd.xlane.f32.xlu2 %v8057_v34  ;;  %v3747_v29 = vmul.f32 %v5570_v47, %v8967_v33  ;;  %v3812_v22 = vpack.c.bf16 %v3748_v63, %v3748_v63  ;;  %v3378_v17 = vsub.f32 %v8970_v43, %v7926_v53 }
 0x45c   : > { %v3503_v48 = vmul.f32 1.442695, %v3388_v24  ;;  %5579 = vpow2.f32 %v3511_v10  ;;  %v1910_v56 = vadd.f32 %v1909_v30, %v8966_v40  ;;  %3635 = vadd.xlane.f32.xlu0 %v8071_v42  ;;  %3603 = vadd.xlane.f32.xlu1 %v8063_v25  ;;  %v2078_v52 = vpop.f32.mrf.mxu1  ;;  %v3940_v36 = vunpack.c.l.b16 %v3796_v18  ;;  %v8084_v26 = vpop.eup %5573 }
 0x45d   : > { %v5576_v39 = vpop.eup %5575  ;;  %v3811_v11 = vpack.c.bf16 %v3747_v29, %v3747_v29  ;;  %v4085_v54 = vunpack.c.l.b16 %v3812_v22  ;;  %v8972_v10 = vpack.c.b16 %v7810_v8, %v7808_v59  ;;  %v3483_v30 = vmul.f32 1.442695, %v3378_v17  ;;  %v8973_v59 = vld [vmem:[#allocation108_spill] sm:$0xff] }
 0x45e   : > { %5581 = vpow2.f32 %v3503_v48  ;;  %v2079_v49 = vadd.f32 %v2078_v52, %v1910_v56  ;;  %4303 = vmatpush.bf16.msra.mxu2 %v8968_v57  ;;  %v3950_v41 = vpack.c.b16 %v3940_v36, %v3939_v45  ;;  %v5578_v23 = vpop.eup %5577  ;;  %v3734_v13 = vmul.f32 %v5576_v39, %v7744_v50  ;;  %v2880_v45 = vpop.f32.mrf.mxu2  ;;  %v8977_v22 = vld [vmem:[#allocation24_spill] sm:$0xff] }
 0x45f   : > { %v3733_v50 = vmul.f32 %v5578_v23, %v7681_v6  ;;  %v4084_v46 = vunpack.c.l.b16 %v3811_v11  ;;  %vm8974_vm1 = vcmp.le.s32.totalorder %v7021_v35, %v8973_v59  ;;  %v8975_v29 = vpack.c.b16 %v7756_v7, %v7754_v60 }
 0x460   : > { %v8089_v27 = vpop.xlane.xlu2 %3593  ;;  %4042 = vmatmul.bf16.gmra.mxu2 %v3950_v41  ;;  %v3899_v24 = vpack.c.bf16 %v2079_v49, %v2079_v49  ;;  %v3798_v53 = vpack.c.bf16 %v3734_v13, %v3734_v13  ;;  %vm8976_vm2 = vmmov %vm8974_vm1  ;;  %v8133_v39 = vsel %vm3109_vm13, %v7976_v21, -inf }
 0x461   : > { %v3586_v51 = vpop.xlane.xlu0 %3585  ;;  %v4095_v48 = vpack.c.b16 %v4085_v54, %v4084_v46  ;;  %v3797_v56 = vpack.c.bf16 %v3733_v50, %v3733_v50  ;;  %v8125_v57 = vsel %vm8976_vm2, %v2880_v45, -inf  ;;  %v8983_v45 = vld [vmem:[#allocation96_spill] sm:$0xff] }
 0x462   : > { %v8091_v2 = vpop.eup %5579  ;;  %5583 = vrcp.f32 %v3586_v51  ;;  %4304 = vmatpush.bf16.msra.mxu2 %v8969_v3  ;;  %v3073_v18 = vpop.f32.mrf.mxu3  ;;  %v8110_v6 = vunpack.c.l.b16 %v3899_v24  ;;  %v3942_v49 = vunpack.c.l.b16 %v3798_v53  ;;  %v8978_v51 = vld [vmem:[#allocation95_spill] sm:$0xff]  ;;  %v8979_v3 = vld [vmem:[#allocation106_spill] sm:$0xff] }
 0x463   : > { %v1911_v4 = vpop.f32.mrf.mxu0  ;;  %3639 = vadd.xlane.f32.xlu2 %v8091_v2  ;;  %5585 = vrcp.f32 %v8009_v32  ;;  %v8117_v8 = vsel %vm8974_vm1, %v3073_v18, -inf  ;;  %v3941_v11 = vunpack.c.l.b16 %v3797_v56 }
 0x464   : > { %v8097_v20 = vpop.eup %5581  ;;  %v1912_v0 = vadd.f32 %v1911_v4, %v8971_v14  ;;  %3607 = vadd.xlane.f32.xlu0 %v8084_v26  ;;  %v2080_v44 = vpop.f32.mrf.mxu1  ;;  %v8980_v4 = vld [vmem:[#allocation7_spill] sm:$0xff] }
 0x465   : > { %3631 = vadd.xlane.f32.xlu1 %v8097_v20  ;;  %v3951_v54 = vpack.c.b16 %v3942_v49, %v3941_v11 }
 0x466   : > { %v2081_v47 = vadd.f32 %v2080_v44, %v1912_v0  ;;  %4305 = vmatpush.bf16.msra.mxu2 %v8972_v10 }
 0x468   : > { %v5584_v32 = vpop.eup %5583  ;;  %v3900_v63 = vpack.c.bf16 %v2081_v47, %v2081_v47  ;;  %4187 = vmatmul.bf16.gmra.mxu3 %v4095_v48  ;;  %v3322_v33 = vpop.xlane.xlu2 %3321  ;;  %v8981_v47 = vld [vmem:[#allocation51_spill] sm:$0xff] }
 0x469   : > { %v3558_v40 = vpop.xlane.xlu0 %3557  ;;  %v5586_v52 = vpop.eup %5585  ;;  %v3749_v60 = vmul.f32 %v5584_v32, %v8977_v22  ;;  %v3393_v13 = vsub.f32 %v8979_v3, %v3322_v33  ;;  %v8157_v32 = vsel %vm3110_vm14, %v8081_v31, -inf }
 0x46a   : > { %5587 = vrcp.f32 %v3558_v40  ;;  %v8112_v36 = vunpack.c.l.b16 %v3900_v63  ;;  %4306 = vmatpush.bf16.msra.mxu2 %v8975_v29  ;;  %v3750_v62 = vmul.f32 %v5586_v52, %v8980_v4  ;;  %v3075_v0 = vpop.f32.mrf.mxu3  ;;  %v8984_v40 = vld [vmem:[#allocation10_spill] sm:$0xff]  ;;  %v8985_v52 = vld [vmem:[#allocation23_spill] sm:$0xff] }
 0x46b   : > { %5589 = vrcp.f32 %v8035_v61  ;;  %v1914_v41 = vpop.f32.mrf.mxu0  ;;  %3333 = vmax.xlane.f32.xlu2 %v8117_v8  ;;  %v3813_v17 = vpack.c.bf16 %v3749_v60, %v3749_v60  ;;  %v3513_v50 = vmul.f32 1.442695, %v3393_v13  ;;  %v8151_v48 = vsel %vm3112_vm15, %v3075_v0, -inf }
 0x46c   : > { %5591 = vpow2.f32 %v3483_v30  ;;  %v1915_v23 = vadd.f32 %v1914_v41, %v8978_v51  ;;  %3301 = vmax.xlane.f32.xlu0 %v8125_v57  ;;  %v2083_v61 = vpop.f32.mrf.mxu1  ;;  %v3814_v46 = vpack.c.bf16 %v3750_v62, %v3750_v62  ;;  %v2882_v41 = vpop.f32.mrf.mxu2 }
 0x46d   : > { %3297 = vmax.xlane.f32.xlu1 %v8133_v39  ;;  %5593 = vrcp.f32 %v8060_v16  ;;  %v4086_v30 = vunpack.c.l.b16 %v3813_v17 }
 0x46e   : > { %v2084_v21 = vadd.f32 %v2083_v61, %v1915_v23  ;;  %5595 = vpow2.f32 %v3513_v50  ;;  %v4087_v59 = vunpack.c.l.b16 %v3814_v46  ;;  %v8989_v50 = vld [vmem:[#allocation16_spill] sm:$0xff]  ;;  %v8990_v46 = vld [vmem:[#allocation15_spill] sm:$0xff] }
 0x46f   : > { %v3377_v35 = vsub.f32 %v8990_v46, %v8989_v50 }
 0x470   : > { %v5588_v43 = vpop.eup %5587  ;;  %4047 = vmatmul.bf16.gmra.mxu2 %v3951_v54  ;;  %v3901_v29 = vpack.c.bf16 %v2084_v21, %v2084_v21  ;;  %v4096_v49 = vpack.c.b16 %v4087_v59, %v4086_v30  ;;  %v8176_v21 = vsel %vm3112_vm15, %v2882_v41, -inf  ;;  %v8991_v30 = vld [vmem:[#allocation56_spill] sm:$0xff] }
 0x471   : > { %v3318_v14 = vpop.xlane.xlu0 %3317  ;;  %v5590_v44 = vpop.eup %5589  ;;  %v3735_v10 = vmul.f32 %v5588_v43, %v8981_v47  ;;  %v8987_v43 = vld [vmem:[#allocation97_spill] sm:$0xff]  ;;  %v8992_v59 = vld [vmem:[#allocation52_spill] sm:$0xff] }
 0x472   : > { %v8143_v24 = vpop.eup %5591  ;;  %v3736_v56 = vmul.f32 %v5590_v44, %v8984_v40  ;;  %v3391_v33 = vsub.f32 %v8985_v52, %v3318_v14  ;;  %v8166_v11 = vunpack.c.l.b16 %v3901_v29  ;;  %v3481_v40 = vmul.f32 1.442695, %v3377_v35 }
 0x473   : > { %v1916_v18 = vpop.f32.mrf.mxu0  ;;  %3611 = vadd.xlane.f32.xlu2 %v8143_v24  ;;  %v3799_v31 = vpack.c.bf16 %v3735_v10, %v3735_v10  ;;  %v5594_v23 = vpop.eup %5593 }
 0x474   : > { %v1917_v63 = vadd.f32 %v1916_v18, %v8983_v45  ;;  %3335 = vmax.xlane.f32.xlu0 %v8151_v48  ;;  %v2085_v16 = vpop.f32.mrf.mxu1  ;;  %v3800_v51 = vpack.c.bf16 %v3736_v56, %v3736_v56  ;;  %v3509_v61 = vmul.f32 1.442695, %v3391_v33  ;;  %v8170_v4 = vpop.eup %5595 }
 0x475   : > { %3331 = vmax.xlane.f32.xlu1 %v8157_v32  ;;  %v3943_v13 = vunpack.c.l.b16 %v3799_v31  ;;  %8986 = vst [vmem:[#allocation107_spill] sm:$0xff] %v8170_v4 }
 0x476   : > { %v2086_v58 = vadd.f32 %v2085_v16, %v1917_v63  ;;  %v3944_v0 = vunpack.c.l.b16 %v3800_v51 }
 0x478   : > { %v3902_v22 = vpack.c.bf16 %v2086_v58, %v2086_v58  ;;  %4192 = vmatmul.bf16.gmra.mxu3 %v4096_v49  ;;  %v3952_v10 = vpack.c.b16 %v3944_v0, %v3943_v13  ;;  %v8993_v58 = vld [vmem:[#allocation98_spill] sm:$0xff] }
 0x479   : > { %v3592_v60 = vpop.xlane.xlu0 %3591 }
 0x47a   : > { %5597 = vrcp.f32 %v3592_v60  ;;  %v8168_v3 = vunpack.c.l.b16 %v3902_v22 }
 0x47b   : > { %5599 = vrcp.f32 %v8089_v27  ;;  %v1919_v62 = vpop.f32.mrf.mxu0  ;;  %v8988_v27 = vld [vmem:[#allocation27_spill] sm:$0xff] }
 0x47c   : > { %v1920_v17 = vadd.f32 %v1919_v62, %v8987_v43  ;;  %3641 = vadd.xlane.f32.xlu0 %v8170_v4  ;;  %v2088_v14 = vpop.f32.mrf.mxu1  ;;  %v3751_v44 = vmul.f32 %v5594_v23, %v8988_v27  ;;  %5601 = vpow2.f32 %v3509_v61  ;;  %v3600_v62 = vpop.xlane.xlu2 %3599  ;;  %v9008_v4 = vld [vmem:[#allocation101_spill] sm:$0xff] }
 0x47d   : > { %3303 = vmax.xlane.f32.xlu1 %v8176_v21 }
 0x47e   : > { %v2089_v47 = vadd.f32 %v2088_v14, %v1920_v17  ;;  %v3815_v63 = vpack.c.bf16 %v3751_v44, %v3751_v44  ;;  %v8994_v17 = vld [vmem:[#allocation55_spill] sm:$0xff]  ;;  %v8995_v44 = vld [vmem:[#allocation54_spill] sm:$0xff] }
 0x480   : > { %v5598_v18 = vpop.eup %5597  ;;  %4052 = vmatmul.bf16.gmra.mxu2 %v3952_v10  ;;  %v4088_v41 = vunpack.c.l.b16 %v3815_v63  ;;  %v3903_v51 = vpack.c.bf16 %v2089_v47, %v2089_v47 }
 0x481   : > { %v3596_v53 = vpop.xlane.xlu0 %3595  ;;  %v3752_v45 = vmul.f32 %v5598_v18, %v8991_v30  ;;  %v5600_v16 = vpop.eup %5599 }
 0x482   : > { %5603 = vrcp.f32 %v3596_v53  ;;  %v8188_v52 = vpop.eup %5601  ;;  %v3753_v29 = vmul.f32 %v5600_v16, %v8992_v59  ;;  %v8202_v46 = vunpack.c.l.b16 %v3903_v51  ;;  %v8996_v16 = vld [vmem:[#allocation99_spill] sm:$0xff] }
 0x483   : > { %v3816_v56 = vpack.c.bf16 %v3752_v45, %v3752_v45  ;;  %v1921_v33 = vpop.f32.mrf.mxu0  ;;  %5605 = vpow2.f32 %v3481_v40  ;;  %v4018_v60 = vpop.f32.mrf.mxu2 }
 0x484   : > { %v1922_v31 = vadd.f32 %v1921_v33, %v8993_v58  ;;  %v2090_v49 = vpop.f32.mrf.mxu1  ;;  %4493 = vst.msk [vmem:[%s8193_s29] sm:$0xff] %vm2401_vm0, %v4018_v60  ;;  %v3817_v43 = vpack.c.bf16 %v3753_v29, %v3753_v29  ;;  %5607 = vrcp.f32 %v3600_v62 }
 0x485   : > { %3637 = vadd.xlane.f32.xlu1 %v8188_v52  ;;  %v4089_v22 = vunpack.c.l.b16 %v3816_v56 }
 0x486   : > { %v2091_v23 = vadd.f32 %v2090_v49, %v1922_v31  ;;  %v4219_v30 = vunpack.c.l.b16 %v3817_v43 }
 0x487   : > { %v4097_v61 = vpack.c.b16 %v4089_v22, %v4088_v41  ;;  %v8997_v22 = vld [vmem:[#allocation20_spill] sm:$0xff] }
 0x488   : > { %v5604_v13 = vpop.eup %5603  ;;  %v3904_v0 = vpack.c.bf16 %v2091_v23, %v2091_v23 }
 0x489   : > { %v3754_v14 = vmul.f32 %v5604_v13, %v8994_v17  ;;  %v3324_v27 = vpop.xlane.xlu0 %3323  ;;  %4197 = vmatmul.bf16.gmra.mxu3 %v4097_v61  ;;  %v8206_v10 = vpop.eup %5605  ;;  %v8998_v13 = vld [vmem:[#allocation57_spill] sm:$0xff] }
 0x48a   : > { %v3394_v50 = vsub.f32 %v8995_v44, %v3324_v27  ;;  %v8204_v47 = vunpack.c.l.b16 %v3904_v0  ;;  %v5608_v49 = vpop.eup %5607  ;;  %v8999_v27 = vld [vmem:[#allocation53_spill] sm:$0xff] }
 0x48b   : > { %v3818_v35 = vpack.c.bf16 %v3754_v14, %v3754_v14  ;;  %v1924_v53 = vpop.f32.mrf.mxu0  ;;  %v4163_v56 = vpop.f32.mrf.mxu3  ;;  %v3756_v62 = vmul.f32 %v5608_v49, %v8998_v13 }
 0x48c   : > { %v3515_v18 = vmul.f32 1.442695, %v3394_v50  ;;  %v1925_v40 = vadd.f32 %v1924_v53, %v8996_v16  ;;  %v2093_v33 = vpop.f32.mrf.mxu1  ;;  %v4020_v59 = vpop.f32.mrf.mxu2  ;;  %4509 = vst.msk [vmem:[%s8193_s29 + $0x80] sm:$0xff] %vm2401_vm0, %v4163_v56 }
 0x48d   : > { %v4220_v45 = vunpack.c.l.b16 %v3818_v35  ;;  %3609 = vadd.xlane.f32.xlu1 %v8206_v10  ;;  %4494 = vst.msk [vmem:[%s8193_s29 + $0x8] sm:$0xff] %vm2401_vm0, %v4020_v59  ;;  %v3820_v50 = vpack.c.bf16 %v3756_v62, %v3756_v62 }
 0x48e   : > { %5609 = vpow2.f32 %v3515_v18  ;;  %v8216_v58 = vadd.f32 %v2093_v33, %v1925_v40 }
 0x48f   : > { %v4235_v29 = vpack.c.b16 %v4220_v45, %v4219_v30  ;;  %v3598_v31 = vpop.xlane.xlu1 %3597  ;;  %v4222_v45 = vunpack.c.l.b16 %v3820_v50 }
 0x490   : > { %5611 = vrcp.f32 %v3598_v31 }
 0x491   : > { %4307 = vmatmul.bf16.vlgmr.msra.gmra.mxu2 %v4235_v29  ;;  %v3296_v41 = vpop.xlane.xlu0 %3295 }
 0x492   : > { %v3380_v60 = vsub.f32 %v8997_v22, %v3296_v41 }
 0x493   : > { %v8221_v61 = vpop.f32.mrf.mxu0  ;;  %v4165_v43 = vpop.f32.mrf.mxu3 }
 0x494   : > { %v8219_v51 = vpop.eup %5609  ;;  %v3487_v23 = vmul.f32 1.442695, %v3380_v60  ;;  %v8225_v17 = vpop.f32.mrf.mxu1  ;;  %4510 = vst.msk [vmem:[%s8193_s29 + $0x88] sm:$0xff] %vm2401_vm0, %v4165_v43  ;;  %v9001_v43 = vld [vmem:[#allocation49_spill] sm:$0xff] }
 0x495   : > { %3643 = vadd.xlane.f32.xlu1 %v8219_v51  ;;  %v4023_v14 = vpop.f32.mrf.mxu2 }
 0x496   : > { %5613 = vpow2.f32 %v3487_v23  ;;  %v5612_v0 = vpop.eup %5611  ;;  %4495 = vst.msk [vmem:[%s8193_s29 + $0x10] sm:$0xff] %vm2401_vm0, %v4023_v14 }
 0x497   : > { %v3755_v44 = vmul.f32 %v5612_v0, %v8999_v27 }
 0x499   : > { %v3819_v35 = vpack.c.bf16 %v3755_v44, %v3755_v44  ;;  %v3602_v62 = vpop.xlane.xlu0 %3601 }
 0x49b   : > { %v8234_v53 = vpop.f32.mrf.mxu0  ;;  %v4221_v30 = vunpack.c.l.b16 %v3819_v35  ;;  %v4168_v16 = vpop.f32.mrf.mxu3 }
 0x49c   : > { %v8232_v18 = vpop.eup %5613  ;;  %v8237_v40 = vpop.f32.mrf.mxu1  ;;  %4511 = vst.msk [vmem:[%s8193_s29 + $0x90] sm:$0xff] %vm2401_vm0, %v4168_v16 }
 0x49d   : > { %9000 = vst [vmem:[#allocation46_spill] sm:$0xff] %v8232_v18  ;;  %3615 = vadd.xlane.f32.xlu0 %v8232_v18  ;;  %v4025_v56 = vpop.f32.mrf.mxu2  ;;  %v4236_v33 = vpack.c.b16 %v4222_v45, %v4221_v30 }
 0x49e   : > { %4496 = vst.msk [vmem:[%s8193_s29 + $0x18] sm:$0xff] %vm2401_vm0, %v4025_v56 }
 0x4a1   : > { %4312 = vmatmul.bf16.gmra.mxu2 %v4236_v33 }
 0x4a3   : > { %v1931_v59 = vpop.f32.mrf.mxu0  ;;  %v4170_v29 = vpop.f32.mrf.mxu3 }
 0x4a4   : > { %v2100_v31 = vpop.f32.mrf.mxu1  ;;  %4512 = vst.msk [vmem:[%s8193_s29 + $0x98] sm:$0xff] %vm2401_vm0, %v4170_v29 }
 0x4a6   : > { %v8245_v49 = vpop.xlane.xlu2 %3627 }
 0x4ab   : > { %v1934_v41 = vpop.f32.mrf.mxu0  ;;  %v4028_v22 = vpop.f32.mrf.mxu2 }
 0x4ac   : > { %v4173_v60 = vpop.f32.mrf.mxu3  ;;  %4497 = vst.msk [vmem:[%s8193_s29 + $0x20] sm:$0xff] %vm2401_vm0, %v4028_v22  ;;  %v2103_v23 = vpop.f32.mrf.mxu1  ;;  %v1935_v7 = vadd.f32 %v1934_v41, %v9005_v5 }
 0x4ad   : > { %4513 = vst.msk [vmem:[%s8193_s29 + $0xa0] sm:$0xff] %vm2401_vm0, %v4173_v60 }
 0x4ae   : > { %v3294_v13 = vpop.xlane.xlu2 %3293  ;;  %v2104_v41 = vadd.f32 %v2103_v23, %v1935_v7 }
 0x4af   : > { %v3379_v14 = vsub.f32 %v9001_v43, %v3294_v13  ;;  %v9003_v43 = vld [vmem:[#allocation5_spill] sm:$0xff] }
 0x4b0   : > { %v3909_v7 = vpack.c.bf16 %v2104_v41, %v2104_v41 }
 0x4b1   : > { %v3485_v0 = vmul.f32 1.442695, %v3379_v14 }
 0x4b3   : > { %5615 = vpow2.f32 %v3485_v0  ;;  %v1936_v27 = vpop.f32.mrf.mxu0  ;;  %v4030_v44 = vpop.f32.mrf.mxu2 }
 0x4b4   : > { %v4175_v50 = vpop.f32.mrf.mxu3  ;;  %4498 = vst.msk [vmem:[%s8193_s29 + $0x28] sm:$0xff] %vm2401_vm0, %v4030_v44  ;;  %v2105_v35 = vpop.f32.mrf.mxu1  ;;  %v9004_v44 = vld [vmem:[#allocation104_spill] sm:$0xff] }
 0x4b5   : > { %4514 = vst.msk [vmem:[%s8193_s29 + $0xa8] sm:$0xff] %vm2401_vm0, %v4175_v50  ;;  %v1937_v50 = vadd.f32 %v1936_v27, %v9004_v44 }
 0x4b6   : > { %v3328_v30 = vpop.xlane.xlu2 %3327 }
 0x4b7   : > { %v3396_v45 = vsub.f32 %v7990_v28, %v3328_v30  ;;  %v8257_v16 = vpop.xlane.xlu0 %3629  ;;  %v2106_v63 = vadd.f32 %v2105_v35, %v1937_v50 }
 0x4b9   : > { %v8259_v56 = vpop.eup %5615  ;;  %v3519_v33 = vmul.f32 1.442695, %v3396_v45  ;;  %v3910_v50 = vpack.c.bf16 %v2106_v63, %v2106_v63 }
 0x4ba   : > { %9002 = vst [vmem:[#allocation61_spill] sm:$0xff] %v8259_v56  ;;  %3613 = vadd.xlane.f32.xlu2 %v8259_v56  ;;  %v9007_v56 = vld [vmem:[#allocation105_spill] sm:$0xff] }
 0x4bb   : > { %5617 = vpow2.f32 %v3519_v33  ;;  %v1939_v29 = vpop.f32.mrf.mxu0  ;;  %v4033_v22 = vpop.f32.mrf.mxu2  ;;  %v4425_v63 = vunpack.c.l.b16 %v3910_v50 }
 0x4bc   : > { %v4178_v60 = vpop.f32.mrf.mxu3  ;;  %4499 = vst.msk [vmem:[%s8193_s29 + $0x30] sm:$0xff] %vm2401_vm0, %v4033_v22  ;;  %v2108_v13 = vpop.f32.mrf.mxu1  ;;  %v1940_v14 = vadd.f32 %v1939_v29, %v9003_v43  ;;  %v9006_v29 = vld [vmem:[#allocation102_spill] sm:$0xff] }
 0x4bd   : > { %4515 = vst.msk [vmem:[%s8193_s29 + $0xb0] sm:$0xff] %vm2401_vm0, %v4178_v60  ;;  %v1932_v60 = vadd.f32 %v1931_v59, %v9006_v29 }
 0x4be   : > { %v3300_v30 = vpop.xlane.xlu2 %3299  ;;  %v2109_v22 = vadd.f32 %v2108_v13, %v1940_v14 }
 0x4bf   : > { %v8267_v0 = vpop.xlane.xlu1 %3625  ;;  %v3330_v28 = vpop.xlane.xlu0 %3329  ;;  %v2101_v35 = vadd.f32 %v2100_v31, %v1932_v60 }
 0x4c0   : > { %v3397_v45 = vsub.f32 %v8029_v12, %v3330_v28  ;;  %v1930_v12 = vadd.f32 %v8234_v53, %v9008_v4  ;;  %v3911_v13 = vpack.c.bf16 %v2109_v22, %v2109_v22  ;;  %v9009_v28 = vld [vmem:[#allocation100_spill] sm:$0xff] }
 0x4c1   : > { %v8271_v33 = vpop.eup %5617  ;;  %v1927_v59 = vadd.f32 %v8221_v61, %v9009_v28  ;;  %v3908_v31 = vpack.c.bf16 %v2101_v35, %v2101_v35  ;;  %v9010_v28 = vld [vmem:[#allocation58_spill] sm:$0xff] }
 0x4c2   : > { %v3521_v54 = vmul.f32 1.442695, %v3397_v45  ;;  %3647 = vadd.xlane.f32.xlu2 %v8271_v33  ;;  %v2099_v4 = vadd.f32 %v8237_v40, %v1930_v12  ;;  %v4426_v23 = vunpack.c.l.b16 %v3911_v13 }
 0x4c3   : > { %v1941_v43 = vpop.f32.mrf.mxu0  ;;  %v4035_v44 = vpop.f32.mrf.mxu2  ;;  %v2096_v61 = vadd.f32 %v8225_v17, %v1927_v59  ;;  %v4423_v17 = vunpack.c.l.b16 %v3908_v31 }
 0x4c4   : > { %5619 = vpow2.f32 %v3521_v54  ;;  %v1942_v27 = vadd.f32 %v1941_v43, %v9007_v56  ;;  %v4180_v18 = vpop.f32.mrf.mxu3  ;;  %4500 = vst.msk [vmem:[%s8193_s29 + $0x38] sm:$0xff] %vm2401_vm0, %v4035_v44  ;;  %v2110_v5 = vpop.f32.mrf.mxu1  ;;  %v3907_v40 = vpack.c.bf16 %v2099_v4, %v2099_v4  ;;  %v4424_v43 = vunpack.c.l.b16 %v3909_v7 }
 0x4c5   : > { %4516 = vst.msk [vmem:[%s8193_s29 + $0xb8] sm:$0xff] %vm2401_vm0, %v4180_v18  ;;  %5621 = vrcp.f32 %v3602_v62  ;;  %v3906_v44 = vpack.c.bf16 %v2096_v61, %v2096_v61 }
 0x4c6   : > { %v2111_v14 = vadd.f32 %v2110_v5, %v1942_v27  ;;  %v8289_v18 = vpop.xlane.xlu2 %3633  ;;  %v4434_v41 = vpack.c.b16 %v4425_v63, %v4424_v43 }
 0x4c7   : > { %v3326_v54 = vpop.xlane.xlu1 %3325  ;;  %v4421_v35 = vunpack.c.l.b16 %v3906_v44 }
 0x4c8   : > { %v3912_v56 = vpack.c.bf16 %v2111_v14, %v2111_v14  ;;  %v3395_v45 = vsub.f32 %v8050_v55, %v3326_v54  ;;  %v3382_v55 = vsub.f32 %v8019_v37, %v3300_v30  ;;  %v3905_v37 = vpack.c.bf16 %v8216_v58, %v8216_v58 }
 0x4c9   : > { %v4422_v30 = vunpack.c.l.b16 %v3907_v40 }
 0x4ca   : > { %v8287_v53 = vpop.eup %5619  ;;  %v4427_v22 = vunpack.c.l.b16 %v3912_v56  ;;  %v3517_v29 = vmul.f32 1.442695, %v3395_v45  ;;  %v3491_v13 = vmul.f32 1.442695, %v3382_v55  ;;  %v4420_v4 = vunpack.c.l.b16 %v3905_v37  ;;  %v9012_v37 = vld [vmem:[#allocation50_spill] sm:$0xff] }
 0x4cb   : > { %3649 = vadd.xlane.f32.xlu2 %v8287_v53  ;;  %v4038_v60 = vpop.f32.mrf.mxu2  ;;  %v5622_v27 = vpop.eup %5621  ;;  %v4433_v54 = vpack.c.b16 %v4423_v17, %v4422_v30 }
 0x4cc   : > { %v4435_v62 = vpack.c.b16 %v4427_v22, %v4426_v23  ;;  %5623 = vpow2.f32 %v3517_v29  ;;  %4501 = vst.msk [vmem:[%s8193_s29 + $0x40] sm:$0xff] %vm2401_vm0, %v4038_v60  ;;  %v3757_v59 = vmul.f32 %v5622_v27, %v9010_v28  ;;  %v4432_v29 = vpack.c.b16 %v4421_v35, %v4420_v4 }
 0x4ce   : > { %4444 = vmatpush.bf16.msra.mxu3 %v4435_v62  ;;  %v3606_v50 = vpop.xlane.xlu2 %3605  ;;  %v3821_v22 = vpack.c.bf16 %v3757_v59, %v3757_v59 }
 0x4cf   : > { %v3604_v12 = vpop.xlane.xlu1 %3603  ;;  %v8296_v5 = vpop.xlane.xlu0 %3635 }
 0x4d0   : > { %5625 = vrcp.f32 %v3604_v12  ;;  %v4223_v63 = vunpack.c.l.b16 %v3821_v22 }
 0x4d1   : > { %5627 = vpow2.f32 %v3491_v13 }
 0x4d2   : > { %v8298_v14 = vpop.eup %5623  ;;  %4445 = vmatpush.bf16.msra.mxu3 %v4434_v41  ;;  %5629 = vrcp.f32 %v8267_v0 }
 0x4d3   : > { %3645 = vadd.xlane.f32.xlu1 %v8298_v14  ;;  %v4040_v56 = vpop.f32.mrf.mxu2  ;;  %5631 = vrcp.f32 %v8245_v49  ;;  %v9011_v49 = vpack.c.b16 %v8204_v47, %v8202_v46  ;;  %v9013_v47 = vpack.c.b16 %v8168_v3, %v8166_v11 }
 0x4d4   : > { %4502 = vst.msk [vmem:[%s8193_s29 + $0x48] sm:$0xff] %vm2401_vm0, %v4040_v56 }
 0x4d6   : > { %v5626_v45 = vpop.eup %5625  ;;  %4446 = vmatpush.bf16.msra.mxu3 %v4433_v54  ;;  %v8314_v40 = vpop.xlane.xlu2 %3639 }
 0x4d7   : > { %v3608_v58 = vpop.xlane.xlu0 %3607  ;;  %v3758_v23 = vmul.f32 %v5626_v45, %v8063_v25  ;;  %v8309_v31 = vpop.eup %5627 }
 0x4d8   : > { %v3632_v7 = vpop.xlane.xlu1 %3631  ;;  %5633 = vrcp.f32 %v3608_v58  ;;  %v5630_v55 = vpop.eup %5629 }
 0x4d9   : > { %v3822_v61 = vpack.c.bf16 %v3758_v23, %v3758_v23  ;;  %5635 = vrcp.f32 %v3606_v50  ;;  %v5632_v25 = vpop.eup %5631  ;;  %v3769_v27 = vmul.f32 %v5630_v55, %v8021_v1 }
 0x4da   : > { %4447 = vmatpush.bf16.msra.mxu3 %v4432_v29  ;;  %v3770_v30 = vmul.f32 %v5632_v25, %v9012_v37 }
 0x4db   : > { %3619 = vadd.xlane.f32.xlu1 %v8309_v31  ;;  %v4224_v0 = vunpack.c.l.b16 %v3822_v61  ;;  %v4183_v62 = vpop.f32.mrf.mxu3  ;;  %v3833_v1 = vpack.c.bf16 %v3769_v27, %v3769_v27 }
 0x4dc   : > { %4517 = vst.msk [vmem:[%s8193_s29 + $0xc0] sm:$0xff] %vm2401_vm0, %v4183_v62  ;;  %v3834_v50 = vpack.c.bf16 %v3770_v30, %v3770_v30 }
 0x4dd   : > { %v4237_v60 = vpack.c.b16 %v4224_v0, %v4223_v63  ;;  %v4364_v11 = vunpack.c.l.b16 %v3833_v1 }
 0x4de   : > { %4448 = vmatpush.bf16.msra.mxu3 %v9011_v49  ;;  %v5634_v43 = vpop.eup %5633  ;;  %v4365_v23 = vunpack.c.l.b16 %v3834_v50 }
 0x4df   : > { %4317 = vmatmul.bf16.gmra.mxu2 %v4237_v60  ;;  %v3302_v12 = vpop.xlane.xlu0 %3301  ;;  %v5636_v17 = vpop.eup %5635  ;;  %v3760_v28 = vmul.f32 %v5634_v43, %v8084_v26  ;;  %v9014_v26 = vpack.c.b16 %v8112_v36, %v8110_v6  ;;  %v9015_v36 = vpack.c.b16 %v8069_v38, %v8067_v9 }
 0x4e0   : > { %v3298_v44 = vpop.xlane.xlu1 %3297  ;;  %v3383_v13 = vsub.f32 %v8125_v57, %v3302_v12  ;;  %v3759_v54 = vmul.f32 %v5636_v17, %v8057_v34  ;;  %v3334_v34 = vpop.xlane.xlu2 %3333 }
 0x4e1   : > { %v3381_v41 = vsub.f32 %v8133_v39, %v3298_v44  ;;  %v3824_v57 = vpack.c.bf16 %v3760_v28, %v3760_v28  ;;  %v3399_v63 = vsub.f32 %v8117_v8, %v3334_v34 }
 0x4e2   : > { %v3493_v46 = vmul.f32 1.442695, %v3383_v13  ;;  %4449 = vmatpush.bf16.msra.mxu3 %v9013_v47  ;;  %v3823_v45 = vpack.c.bf16 %v3759_v54, %v3759_v54 }
 0x4e3   : > { %v3489_v59 = vmul.f32 1.442695, %v3381_v41  ;;  %v4043_v35 = vpop.f32.mrf.mxu2  ;;  %v4185_v39 = vpop.f32.mrf.mxu3  ;;  %v4226_v22 = vunpack.c.l.b16 %v3824_v57  ;;  %v3525_v62 = vmul.f32 1.442695, %v3399_v63 }
 0x4e4   : > { %4503 = vst.msk [vmem:[%s8193_s29 + $0x50] sm:$0xff] %vm2401_vm0, %v4043_v35 }
 0x4e5   : > { %5637 = vpow2.f32 %v3489_v59  ;;  %4518 = vst.msk [vmem:[%s8193_s29 + $0xc8] sm:$0xff] %vm2401_vm0, %v4185_v39 }
 0x4e6   : > { %5639 = vpow2.f32 %v3493_v46  ;;  %4450 = vmatpush.bf16.msra.mxu3 %v9014_v26 }
 0x4e7   : > { %5641 = vrcp.f32 %v3632_v7  ;;  %v3336_v56 = vpop.xlane.xlu0 %3335 }
 0x4e8   : > { %v3332_v3 = vpop.xlane.xlu1 %3331  ;;  %5643 = vrcp.f32 %v8257_v16  ;;  %v3400_v58 = vsub.f32 %v8151_v48, %v3336_v56  ;;  %v4380_v16 = vpack.c.b16 %v4365_v23, %v4364_v11  ;;  %v4225_v48 = vunpack.c.l.b16 %v3823_v45 }
 0x4e9   : > { %v3398_v4 = vsub.f32 %v8157_v32, %v3332_v3 }
 0x4ea   : > { %v3527_v6 = vmul.f32 1.442695, %v3400_v58  ;;  %4451 = vmatpush.bf16.msra.mxu3 %v9015_v36  ;;  %v4238_v9 = vpack.c.b16 %v4226_v22, %v4225_v48 }
 0x4eb   : > { %v8338_v29 = vpop.eup %5637  ;;  %v3523_v7 = vmul.f32 1.442695, %v3398_v4  ;;  %v4045_v32 = vpop.f32.mrf.mxu2 }
 0x4ec   : > { %v8343_v61 = vpop.eup %5639  ;;  %3617 = vadd.xlane.f32.xlu0 %v8338_v29  ;;  %4504 = vst.msk [vmem:[%s8193_s29 + $0x58] sm:$0xff] %vm2401_vm0, %v4045_v32  ;;  %v4188_v55 = vpop.f32.mrf.mxu3 }
 0x4ed   : > { %v5642_v0 = vpop.eup %5641  ;;  %5645 = vpow2.f32 %v3523_v7  ;;  %3621 = vadd.xlane.f32.xlu1 %v8343_v61  ;;  %4519 = vst.msk [vmem:[%s8193_s29 + $0xd0] sm:$0xff] %vm2401_vm0, %v4188_v55  ;;  %4452 = vmatmul.bf16.vlgmr.msra.gmra.mxu3 %v4380_v16 }
 0x4ee   : > { %5647 = vpow2.f32 %v3527_v6  ;;  %v5644_v38 = vpop.eup %5643  ;;  %v3772_v60 = vmul.f32 %v5642_v0, %v8097_v20  ;;  %v3612_v20 = vpop.xlane.xlu2 %3611 }
 0x4ef   : > { %4322 = vmatmul.bf16.gmra.mxu2 %v4238_v9  ;;  %v3771_v49 = vmul.f32 %v5644_v38, %v7992_v15  ;;  %5649 = vpow2.f32 %v3525_v62  ;;  %v3642_v55 = vpop.xlane.xlu0 %3641 }
 0x4f0   : > { %v3304_v8 = vpop.xlane.xlu1 %3303  ;;  %v3836_v17 = vpack.c.bf16 %v3772_v60, %v3772_v60 }
 0x4f1   : > { %v3384_v25 = vsub.f32 %v8176_v21, %v3304_v8  ;;  %v3835_v15 = vpack.c.bf16 %v3771_v49, %v3771_v49  ;;  %v9016_v49 = vld [vmem:[#allocation107_spill] sm:$0xff] }
 0x4f2   : > { %v4367_v13 = vunpack.c.l.b16 %v3836_v17 }
 0x4f3   : > { %v8355_v43 = vpop.eup %5645  ;;  %v3495_v27 = vmul.f32 1.442695, %v3384_v25  ;;  %v4048_v12 = vpop.f32.mrf.mxu2  ;;  %v4366_v30 = vunpack.c.l.b16 %v3835_v15 }
 0x4f4   : > { %v8357_v44 = vpop.eup %5647  ;;  %3651 = vadd.xlane.f32.xlu0 %v8355_v43  ;;  %4505 = vst.msk [vmem:[%s8193_s29 + $0x60] sm:$0xff] %vm2401_vm0, %v4048_v12  ;;  %v4190_v41 = vpop.f32.mrf.mxu3 }
 0x4f5   : > { %5651 = vpow2.f32 %v3495_v27  ;;  %3655 = vadd.xlane.f32.xlu1 %v8357_v44  ;;  %4520 = vst.msk [vmem:[%s8193_s29 + $0xd8] sm:$0xff] %vm2401_vm0, %v4190_v41  ;;  %v8367_v37 = vpop.eup %5649  ;;  %v4381_v46 = vpack.c.b16 %v4367_v13, %v4366_v30 }
 0x4f6   : > { %5653 = vrcp.f32 %v8296_v5 }
 0x4f7   : > { %5655 = vrcp.f32 %v8289_v18 }
 0x4f8   : > { %v3638_v21 = vpop.xlane.xlu1 %3637  ;;  %5657 = vrcp.f32 %v3612_v20 }
 0x4fb   : > { %v8369_v28 = vpop.eup %5651  ;;  %v4050_v59 = vpop.f32.mrf.mxu2 }
 0x4fc   : > { %3653 = vadd.xlane.f32.xlu0 %v8367_v37  ;;  %3623 = vadd.xlane.f32.xlu2 %v8369_v28  ;;  %v5654_v5 = vpop.eup %5653  ;;  %4506 = vst.msk [vmem:[%s8193_s29 + $0x68] sm:$0xff] %vm2401_vm0, %v4050_v59  ;;  %v4193_v47 = vpop.f32.mrf.mxu3 }
 0x4fd   : > { %4521 = vst.msk [vmem:[%s8193_s29 + $0xe0] sm:$0xff] %vm2401_vm0, %v4193_v47  ;;  %4457 = vmatmul.bf16.gmra.mxu3 %v4381_v46  ;;  %v5656_v18 = vpop.eup %5655  ;;  %v3774_v35 = vmul.f32 %v5654_v5, %v8071_v42 }
 0x4fe   : > { %v5658_v54 = vpop.eup %5657  ;;  %v3773_v39 = vmul.f32 %v5656_v18, %v8043_v19  ;;  %v9018_v18 = vld [vmem:[#allocation61_spill] sm:$0xff] }
 0x4ff   : > { %v3838_v57 = vpack.c.bf16 %v3774_v35, %v3774_v35  ;;  %v3762_v26 = vmul.f32 %v5658_v54, %v8143_v24 }
 0x500   : > { %v3610_v1 = vpop.xlane.xlu1 %3609  ;;  %v3837_v3 = vpack.c.bf16 %v3773_v39, %v3773_v39 }
 0x501   : > { %5659 = vrcp.f32 %v3610_v1  ;;  %v4369_v45 = vunpack.c.l.b16 %v3838_v57  ;;  %v3826_v34 = vpack.c.bf16 %v3762_v26, %v3762_v26 }
 0x502   : > { %5661 = vrcp.f32 %v3638_v21  ;;  %v4368_v19 = vunpack.c.l.b16 %v3837_v3 }
 0x503   : > { %v4053_v50 = vpop.f32.mrf.mxu2  ;;  %5663 = vrcp.f32 %v8314_v40  ;;  %v4228_v22 = vunpack.c.l.b16 %v3826_v34 }
 0x504   : > { %4507 = vst.msk [vmem:[%s8193_s29 + $0x70] sm:$0xff] %vm2401_vm0, %v4053_v50  ;;  %v4195_v11 = vpop.f32.mrf.mxu3  ;;  %v4382_v24 = vpack.c.b16 %v4369_v45, %v4368_v19 }
 0x505   : > { %4522 = vst.msk [vmem:[%s8193_s29 + $0xe8] sm:$0xff] %vm2401_vm0, %v4195_v11 }
 0x507   : > { %v5660_v56 = vpop.eup %5659 }
 0x508   : > { %v3761_v42 = vmul.f32 %v5660_v56, %v8206_v10  ;;  %v5662_v7 = vpop.eup %5661  ;;  %v3644_v63 = vpop.xlane.xlu1 %3643 }
 0x509   : > { %v5664_v10 = vpop.eup %5663  ;;  %v3775_v40 = vmul.f32 %v5662_v7, %v8188_v52  ;;  %5665 = vrcp.f32 %v3644_v63 }
 0x50a   : > { %v3825_v4 = vpack.c.bf16 %v3761_v42, %v3761_v42  ;;  %v3776_v16 = vmul.f32 %v5664_v10, %v8091_v2  ;;  %5667 = vrcp.f32 %v3642_v55 }
 0x50b   : > { %v4055_v58 = vpop.f32.mrf.mxu2  ;;  %v3839_v48 = vpack.c.bf16 %v3775_v40, %v3775_v40 }
 0x50c   : > { %v4227_v23 = vunpack.c.l.b16 %v3825_v4  ;;  %4508 = vst.msk [vmem:[%s8193_s29 + $0x78] sm:$0xff] %vm2401_vm0, %v4055_v58  ;;  %v4198_v6 = vpop.f32.mrf.mxu3  ;;  %v3840_v9 = vpack.c.bf16 %v3776_v16, %v3776_v16 }
 0x50d   : > { %4523 = vst.msk [vmem:[%s8193_s29 + $0xf0] sm:$0xff] %vm2401_vm0, %v4198_v6  ;;  %4462 = vmatmul.bf16.gmra.mxu3 %v4382_v24  ;;  %v4370_v38 = vunpack.c.l.b16 %v3839_v48 }
 0x50e   : > { %v4239_v36 = vpack.c.b16 %v4228_v22, %v4227_v23  ;;  %v4371_v62 = vunpack.c.l.b16 %v3840_v9 }
 0x50f   : > { %v5666_v60 = vpop.eup %5665 }
 0x510   : > { %4327 = vmatmul.bf16.gmra.mxu2 %v4239_v36  ;;  %v4383_v52 = vpack.c.b16 %v4371_v62, %v4370_v38  ;;  %v5668_v2 = vpop.eup %5667  ;;  %v3778_v25 = vmul.f32 %v5666_v60, %v8219_v51  ;;  %v3616_v41 = vpop.xlane.xlu0 %3615  ;;  %v9017_v51 = vld [vmem:[#allocation46_spill] sm:$0xff] }
 0x511   : > { %v3777_v27 = vmul.f32 %v5668_v2, %v9016_v49  ;;  %5669 = vrcp.f32 %v3616_v41 }
 0x512   : > { %v3842_v17 = vpack.c.bf16 %v3778_v25, %v3778_v25 }
 0x513   : > { %v3841_v15 = vpack.c.bf16 %v3777_v27, %v3777_v27 }
 0x514   : > { %v4308_v32 = vpop.f32.mrf.mxu2  ;;  %v4200_v0 = vpop.f32.mrf.mxu3  ;;  %v4373_v20 = vunpack.c.l.b16 %v3842_v17 }
 0x515   : > { %4525 = vst.msk [vmem:[%s8193_s29 + $0x100] sm:$0xff] %vm2401_vm0, %v4308_v32  ;;  %v4372_v21 = vunpack.c.l.b16 %v3841_v15 }
 0x516   : > { %4524 = vst.msk [vmem:[%s8193_s29 + $0xf8] sm:$0xff] %vm2401_vm0, %v4200_v0 }
 0x517   : > { %v4384_v30 = vpack.c.b16 %v4373_v20, %v4372_v21  ;;  %v5670_v46 = vpop.eup %5669 }
 0x518   : > { %v3764_v5 = vmul.f32 %v5670_v46, %v9017_v51 }
 0x51a   : > { %v3828_v35 = vpack.c.bf16 %v3764_v5, %v3764_v5 }
 0x51c   : > { %v4310_v8 = vpop.f32.mrf.mxu2  ;;  %v4230_v50 = vunpack.c.l.b16 %v3828_v35 }
 0x51d   : > { %4526 = vst.msk [vmem:[%s8193_s29 + $0x108] sm:$0xff] %vm2401_vm0, %v4310_v8  ;;  %4467 = vmatmul.bf16.gmra.mxu3 %v4383_v52 }
 0x524   : > { %v4313_v12 = vpop.f32.mrf.mxu2 }
 0x525   : > { %4527 = vst.msk [vmem:[%s8193_s29 + $0x110] sm:$0xff] %vm2401_vm0, %v4313_v12 }
 0x52c   : > { %v4315_v13 = vpop.f32.mrf.mxu2 }
 0x52d   : > { %4528 = vst.msk [vmem:[%s8193_s29 + $0x118] sm:$0xff] %vm2401_vm0, %v4315_v13  ;;  %v3614_v59 = vpop.xlane.xlu2 %3613  ;;  %4472 = vmatmul.bf16.gmra.mxu3 %v4384_v30 }
 0x52e   : > { %5671 = vrcp.f32 %v3614_v59 }
 0x534   : > { %v5672_v47 = vpop.eup %5671 }
 0x535   : > { %v3763_v1 = vmul.f32 %v5672_v47, %v9018_v18  ;;  %v3648_v26 = vpop.xlane.xlu2 %3647 }
 0x536   : > { %5673 = vrcp.f32 %v3648_v26 }
 0x537   : > { %v3827_v54 = vpack.c.bf16 %v3763_v1, %v3763_v1 }
 0x539   : > { %v4229_v39 = vunpack.c.l.b16 %v3827_v54 }
 0x53b   : > { %v4240_v57 = vpack.c.b16 %v4230_v50, %v4229_v39 }
 0x53c   : > { %v5674_v3 = vpop.eup %5673 }
 0x53d   : > { %4332 = vmatmul.bf16.gmra.mxu2 %v4240_v57  ;;  %v3780_v56 = vmul.f32 %v5674_v3, %v8271_v33 }
 0x53e   : > { %v3650_v22 = vpop.xlane.xlu2 %3649 }
 0x53f   : > { %v3844_v34 = vpack.c.bf16 %v3780_v56, %v3780_v56 }
 0x541   : > { %v4375_v58 = vunpack.c.l.b16 %v3844_v34 }
 0x546   : > { %v3646_v11 = vpop.xlane.xlu1 %3645 }
 0x547   : > { %5675 = vrcp.f32 %v3646_v11 }
 0x54d   : > { %v5676_v45 = vpop.eup %5675 }
 0x54e   : > { %v3779_v42 = vmul.f32 %v5676_v45, %v8298_v14  ;;  %v3620_v23 = vpop.xlane.xlu1 %3619 }
 0x54f   : > { %5677 = vrcp.f32 %v3620_v23 }
 0x550   : > { %v3843_v19 = vpack.c.bf16 %v3779_v42, %v3779_v42 }
 0x552   : > { %v4374_v4 = vunpack.c.l.b16 %v3843_v19 }
 0x554   : > { %v4385_v24 = vpack.c.b16 %v4375_v58, %v4374_v4 }
 0x555   : > { %v5678_v6 = vpop.eup %5677 }
 0x556   : > { %4477 = vmatmul.bf16.gmra.mxu3 %v4385_v24  ;;  %v3766_v33 = vmul.f32 %v5678_v6, %v8309_v31 }
 0x558   : > { %v3830_v63 = vpack.c.bf16 %v3766_v33, %v3766_v33 }
 0x55a   : > { %v4232_v9 = vunpack.c.l.b16 %v3830_v63 }
 0x55f   : > { %v3618_v7 = vpop.xlane.xlu0 %3617 }
 0x560   : > { %5679 = vrcp.f32 %v3618_v7  ;;  %v3622_v10 = vpop.xlane.xlu1 %3621 }
 0x561   : > { %5681 = vrcp.f32 %v3650_v22 }
 0x562   : > { %v4318_v36 = vpop.f32.mrf.mxu2 }
 0x563   : > { %4529 = vst.msk [vmem:[%s8193_s29 + $0x120] sm:$0xff] %vm2401_vm0, %v4318_v36 }
 0x566   : > { %v5680_v14 = vpop.eup %5679 }
 0x567   : > { %v3652_v40 = vpop.xlane.xlu0 %3651  ;;  %v3765_v16 = vmul.f32 %v5680_v14, %v8338_v29  ;;  %v5682_v32 = vpop.eup %5681 }
 0x568   : > { %5683 = vrcp.f32 %v3652_v40  ;;  %v3781_v38 = vmul.f32 %v5682_v32, %v8287_v53  ;;  %v3656_v8 = vpop.xlane.xlu1 %3655 }
 0x569   : > { %v3829_v48 = vpack.c.bf16 %v3765_v16, %v3765_v16  ;;  %5685 = vrcp.f32 %v3622_v10 }
 0x56a   : > { %v4320_v0 = vpop.f32.mrf.mxu2  ;;  %v3845_v2 = vpack.c.bf16 %v3781_v38, %v3781_v38 }
 0x56b   : > { %v4231_v55 = vunpack.c.l.b16 %v3829_v48  ;;  %4530 = vst.msk [vmem:[%s8193_s29 + $0x128] sm:$0xff] %vm2401_vm0, %v4320_v0 }
 0x56c   : > { %v4376_v12 = vunpack.c.l.b16 %v3845_v2 }
 0x56d   : > { %v4241_v31 = vpack.c.b16 %v4232_v9, %v4231_v55 }
 0x56e   : > { %v5684_v62 = vpop.eup %5683 }
 0x56f   : > { %v3624_v52 = vpop.xlane.xlu2 %3623  ;;  %4337 = vmatmul.bf16.gmra.mxu2 %v4241_v31  ;;  %v3654_v29 = vpop.xlane.xlu0 %3653  ;;  %v3782_v60 = vmul.f32 %v5684_v62, %v8355_v43 }
 0x570   : > { %v5686_v25 = vpop.eup %5685  ;;  %5687 = vrcp.f32 %v3624_v52  ;;  %v4453_v49 = vpop.f32.mrf.mxu3 }
 0x571   : > { %5689 = vrcp.f32 %v3654_v29  ;;  %v3846_v27 = vpack.c.bf16 %v3782_v60, %v3782_v60  ;;  %4541 = vst.msk [vmem:[%s8193_s29 + $0x180] sm:$0xff] %vm2401_vm0, %v4453_v49  ;;  %v3767_v41 = vmul.f32 %v5686_v25, %v8343_v61 }
 0x572   : > { %5691 = vrcp.f32 %v3656_v8  ;;  %v4323_v53 = vpop.f32.mrf.mxu2 }
 0x573   : > { %v4377_v17 = vunpack.c.l.b16 %v3846_v27  ;;  %4531 = vst.msk [vmem:[%s8193_s29 + $0x130] sm:$0xff] %vm2401_vm0, %v4323_v53  ;;  %v3831_v13 = vpack.c.bf16 %v3767_v41, %v3767_v41 }
 0x575   : > { %v4386_v15 = vpack.c.b16 %v4377_v17, %v4376_v12  ;;  %v4233_v47 = vunpack.c.l.b16 %v3831_v13 }
 0x576   : > { %v5688_v43 = vpop.eup %5687 }
 0x577   : > { %v5690_v20 = vpop.eup %5689  ;;  %v3768_v21 = vmul.f32 %v5688_v43, %v8369_v28  ;;  %4482 = vmatmul.bf16.gmra.mxu3 %v4386_v15 }
 0x578   : > { %v5692_v30 = vpop.eup %5691  ;;  %v3783_v59 = vmul.f32 %v5690_v20, %v8367_v37  ;;  %v4455_v46 = vpop.f32.mrf.mxu3 }
 0x579   : > { %v3832_v51 = vpack.c.bf16 %v3768_v21, %v3768_v21  ;;  %4542 = vst.msk [vmem:[%s8193_s29 + $0x188] sm:$0xff] %vm2401_vm0, %v4455_v46  ;;  %v3784_v61 = vmul.f32 %v5692_v30, %v8357_v44 }
 0x57a   : > { %v4325_v5 = vpop.f32.mrf.mxu2  ;;  %v3847_v1 = vpack.c.bf16 %v3783_v59, %v3783_v59 }
 0x57b   : > { %v4234_v18 = vunpack.c.l.b16 %v3832_v51  ;;  %4532 = vst.msk [vmem:[%s8193_s29 + $0x138] sm:$0xff] %vm2401_vm0, %v4325_v5  ;;  %v3848_v35 = vpack.c.bf16 %v3784_v61, %v3784_v61 }
 0x57c   : > { %v4378_v54 = vunpack.c.l.b16 %v3847_v1 }
 0x57d   : > { %v4242_v28 = vpack.c.b16 %v4234_v18, %v4233_v47  ;;  %v4379_v44 = vunpack.c.l.b16 %v3848_v35 }
 0x57f   : > { %4342 = vmatmul.bf16.gmra.mxu2 %v4242_v28  ;;  %v4387_v39 = vpack.c.b16 %v4379_v44, %v4378_v54 }
 0x580   : > { %v4458_v37 = vpop.f32.mrf.mxu3 }
 0x581   : > { %4543 = vst.msk [vmem:[%s8193_s29 + $0x190] sm:$0xff] %vm2401_vm0, %v4458_v37 }
 0x587   : > { %4487 = vmatmul.bf16.gmra.mxu3 %v4387_v39 }
 0x588   : > { %v4460_v50 = vpop.f32.mrf.mxu3 }
 0x589   : > { %4544 = vst.msk [vmem:[%s8193_s29 + $0x198] sm:$0xff] %vm2401_vm0, %v4460_v50 }
 0x590   : > { %v4463_v57 = vpop.f32.mrf.mxu3 }
 0x591   : > { %4545 = vst.msk [vmem:[%s8193_s29 + $0x1a0] sm:$0xff] %vm2401_vm0, %v4463_v57 }
 0x593   : > { %v4328_v26 = vpop.f32.mrf.mxu2 }
 0x594   : > { %4533 = vst.msk [vmem:[%s8193_s29 + $0x140] sm:$0xff] %vm2401_vm0, %v4328_v26 }
 0x598   : > { %v4465_v11 = vpop.f32.mrf.mxu3 }
 0x599   : > { %4546 = vst.msk [vmem:[%s8193_s29 + $0x1a8] sm:$0xff] %vm2401_vm0, %v4465_v11 }
 0x59b   : > { %v4330_v3 = vpop.f32.mrf.mxu2 }
 0x59c   : > { %4534 = vst.msk [vmem:[%s8193_s29 + $0x148] sm:$0xff] %vm2401_vm0, %v4330_v3 }
 0x5a0   : > { %v4468_v56 = vpop.f32.mrf.mxu3 }
 0x5a1   : > { %4547 = vst.msk [vmem:[%s8193_s29 + $0x1b0] sm:$0xff] %vm2401_vm0, %v4468_v56 }
 0x5a8   : > { %v4470_v45 = vpop.f32.mrf.mxu3 }
 0x5a9   : > { %4548 = vst.msk [vmem:[%s8193_s29 + $0x1b8] sm:$0xff] %vm2401_vm0, %v4470_v45 }
 0x5b0   : > { %v4473_v42 = vpop.f32.mrf.mxu3 }
 0x5b1   : > { %4549 = vst.msk [vmem:[%s8193_s29 + $0x1c0] sm:$0xff] %vm2401_vm0, %v4473_v42 }
 0x5b8   : > { %v4475_v34 = vpop.f32.mrf.mxu3 }
 0x5b9   : > { %4550 = vst.msk [vmem:[%s8193_s29 + $0x1c8] sm:$0xff] %vm2401_vm0, %v4475_v34 }
 0x5c0   : > { %v4333_v19 = vpop.f32.mrf.mxu2 }
 0x5c1   : > { %4535 = vst.msk [vmem:[%s8193_s29 + $0x150] sm:$0xff] %vm2401_vm0, %v4333_v19 }
 0x5c8   : > { %v4335_v4 = vpop.f32.mrf.mxu2 }
 0x5c9   : > { %4536 = vst.msk [vmem:[%s8193_s29 + $0x158] sm:$0xff] %vm2401_vm0, %v4335_v4 }
 0x5d9   : > { %v4478_v58 = vpop.f32.mrf.mxu3 }
 0x5da   : > { %4551 = vst.msk [vmem:[%s8193_s29 + $0x1d0] sm:$0xff] %vm2401_vm0, %v4478_v58 }
 0x5e1   : > { %v4480_v24 = vpop.f32.mrf.mxu3 }
 0x5e2   : > { %4552 = vst.msk [vmem:[%s8193_s29 + $0x1d8] sm:$0xff] %vm2401_vm0, %v4480_v24 }
 0x5f2   : > { %v4338_v23 = vpop.f32.mrf.mxu2 }
 0x5f3   : > { %4537 = vst.msk [vmem:[%s8193_s29 + $0x160] sm:$0xff] %vm2401_vm0, %v4338_v23 }
 0x5fa   : > { %v4340_v22 = vpop.f32.mrf.mxu2  ;;  %v4483_v7 = vpop.f32.mrf.mxu3 }
 0x5fb   : > { %4538 = vst.msk [vmem:[%s8193_s29 + $0x168] sm:$0xff] %vm2401_vm0, %v4340_v22 }
 0x5fc   : > { %4553 = vst.msk [vmem:[%s8193_s29 + $0x1e0] sm:$0xff] %vm2401_vm0, %v4483_v7 }
 0x602   : > { %v4343_v6 = vpop.f32.mrf.mxu2  ;;  %v4485_v36 = vpop.f32.mrf.mxu3 }
 0x603   : > { %4539 = vst.msk [vmem:[%s8193_s29 + $0x170] sm:$0xff] %vm2401_vm0, %v4343_v6 }
 0x604   : > { %4554 = vst.msk [vmem:[%s8193_s29 + $0x1e8] sm:$0xff] %vm2401_vm0, %v4485_v36 }
 0x60a   : > { %v4345_v33 = vpop.f32.mrf.mxu2  ;;  %v4488_v10 = vpop.f32.mrf.mxu3 }
 0x60b   : > { %4540 = vst.msk [vmem:[%s8193_s29 + $0x178] sm:$0xff] %vm2401_vm0, %v4345_v33 }
 0x60c   : > { %4555 = vst.msk [vmem:[%s8193_s29 + $0x1f0] sm:$0xff] %vm2401_vm0, %v4488_v10 }
 0x612   : > { %v4490_v14 = vpop.f32.mrf.mxu3 }
 0x613   : > { %4556 = vst.msk [vmem:[%s8193_s29 + $0x1f8] sm:$0xff] %vm2401_vm0, %v4490_v14 }
 0x614 PF: > { %p12_p7 = scmp.ge.s32.totalorder %s5797_s14, 4   ;;  %s9019_s9 = smov %s5749_s10 }
 0x615   : > { %s9020_s10 = smov %s5753_s11  ;;  %s9021_s11 = smov %s5807_s17 }
 0x616   : > { %s9022_s12 = smov %s5797_s14  ;;  %14 = sbr.rel (!%p12_p7) target bundleno = 3 (0x3), region = 68 }
 0x61b   :  { %4581 = vsyncpa [#allocation3], 1 }
 0x61c   :  { %4583 = vsyncpa [#allocation3 + $0x1], 1 }

</bundles_post_ra>
